<compile_context>
chip_gen: v5e
topology: v5e:2x2
jax: 0.10.0
libtpu: 0.0.40
codegen_flags: <defaults>
</compile_context>

<pallas_src>
import math
from functools import partial

import jax
import jax.numpy as jnp
from jax.experimental import pallas as pl
from jax.experimental.pallas import tpu as pltpu


# ----------------------------------------------------------------------------
# small helpers
# ----------------------------------------------------------------------------

def _fs(shape):
    """Full-array VMEM block spec for a grid-less pallas_call."""
    return pl.BlockSpec(shape, lambda *_, n=len(shape): (0,) * n)


def _ln_2d(x, g, b):
    """LayerNorm over the last dim (f32 VPU math, eps matches torch)."""
    mu = jnp.mean(x, axis=-1, keepdims=True)
    xc = x - mu
    var = jnp.mean(xc * xc, axis=-1, keepdims=True)
    return xc * jax.lax.rsqrt(var + 1e-5) * g + b


# ----------------------------------------------------------------------------
# kernels
# ----------------------------------------------------------------------------

def _img_stem_kernel(xp_ref, w_ref, base_ref, g_ref, b_ref, o_ref):
    # patch conv (as matmul, no bias) + (cls|pos) base slab + ln_pre, fused.
    # One (B*S_pad, D) full-lane store; padded rows are masked later in attn.
    emb = jnp.dot(xp_ref[...].astype(jnp.bfloat16), w_ref[...],
                  preferred_element_type=jnp.float32)
    o_ref[...] = _ln_2d(emb + base_ref[...], g_ref[...], b_ref[...])


def _encoder_layer_kernel(rows_ref, mask_ref, x_ref,
                          ln1g_ref, ln1b_ref, inw_ref, inb_ref,
                          outw_ref, outb_ref, ln2g_ref, ln2b_ref,
                          fcw_ref, fcb_ref, pw_ref, pb_ref,
                          sel_ref, act_ref, *, n_heads):
    """One residual block per (batch, layer) grid step.

    The (S, D) activation of the current batch element stays resident in
    `act_ref` (VMEM scratch) across the layer axis; the selected CLS/EOT row is
    emitted only on the last layer.
    """
    b = pl.program_id(0)
    layer = pl.program_id(1)

    @pl.when(layer == 0)
    def _():
        act_ref[...] = x_ref[...]

    x = act_ref[...]                              # (S, D) f32 residual stream
    S, D = x.shape
    dh = D // n_heads
    scale = 1.0 / math.sqrt(dh)

    # ---- multi-head self-attention (batched over heads) -----------------
    xn = _ln_2d(x, ln1g_ref[...], ln1b_ref[...])
    qkv = (jnp.dot(xn.astype(jnp.bfloat16), inw_ref[...],
                   preferred_element_type=jnp.float32)
           + inb_ref[...]).astype(jnp.bfloat16)   # (S, 3D), cast to bf16 once

    q = jnp.stack([qkv[:, h * dh:(h + 1) * dh] for h in range(n_heads)], 0)
    k = jnp.stack([qkv[:, D + h * dh:D + (h + 1) * dh]
                   for h in range(n_heads)], 0)
    v = jnp.stack([qkv[:, 2 * D + h * dh:2 * D + (h + 1) * dh]
                   for h in range(n_heads)], 0)   # (H, S, dh) bf16 each

    s = jnp.einsum('hqd,hkd->hqk', q, k,
                   preferred_element_type=jnp.float32) * scale
    s = s + mask_ref[...]                         # causal / key-padding mask
    s = s - jnp.max(s, axis=-1, keepdims=True)
    p = jnp.exp(s)
    # NOTE: approx reciprocal + bf16 probs -> tiny deviation from fp32 softmax.
    p = p * pl.reciprocal(jnp.sum(p, axis=-1, keepdims=True), approx=True)
    o = jnp.einsum('hqk,hkd->hqd', p.astype(jnp.bfloat16), v,
                   preferred_element_type=jnp.float32)        # (H, S, dh)
    attn = jnp.concatenate([o[h] for h in range(n_heads)], axis=-1)  # (S, D)

    x = x + (jnp.dot(attn.astype(jnp.bfloat16), outw_ref[...],
                     preferred_element_type=jnp.float32) + outb_ref[...])

    # ---- MLP (QuickGELU) -------------------------------------------------
    xn = _ln_2d(x, ln2g_ref[...], ln2b_ref[...])
    m = (jnp.dot(xn.astype(jnp.bfloat16), fcw_ref[...],
                 preferred_element_type=jnp.float32) + fcb_ref[...])
    m = m * jax.nn.sigmoid(1.702 * m)
    x = x + (jnp.dot(m.astype(jnp.bfloat16), pw_ref[...],
                     preferred_element_type=jnp.float32) + pb_ref[...])

    act_ref[...] = x                              # full-lane (S, D) store

    @pl.when(layer == pl.num_programs(1) - 1)
    def _():
        r = rows_ref[b]                           # CLS (=0) or EOT position
        sel_ref[...] = act_ref[pl.ds(r, 1), :]    # (1, D) emitted row


def _tail_kernel(img_ref, txt_ref, lpg_ref, lpb_ref, proj_ref,
                 lfg_ref, lfb_ref, tproj_ref, s_ref, li_ref):
    # image head (ln_post + proj + L2norm), text head (ln_final + proj +
    # L2norm) and logits_per_image, all in one kernel.
    fi = jnp.dot(_ln_2d(img_ref[...], lpg_ref[...], lpb_ref[...]
                        ).astype(jnp.bfloat16),
                 proj_ref[...], preferred_element_type=jnp.float32)
    fi = fi * jax.lax.rsqrt(jnp.sum(fi * fi, axis=-1, keepdims=True) + 1e-12)
    ft = jnp.dot(_ln_2d(txt_ref[...], lfg_ref[...], lfb_ref[...]
                        ).astype(jnp.bfloat16),
                 tproj_ref[...], preferred_element_type=jnp.float32)
    ft = ft * jax.lax.rsqrt(jnp.sum(ft * ft, axis=-1, keepdims=True) + 1e-12)
    s = s_ref[0, 0]                               # exp(logit_scale), SMEM
    dn = (((1,), (1,)), ((), ()))                 # "be,ce->bc"
    li_ref[...] = s * jax.lax.dot_general(fi, ft, dn,
                                          preferred_element_type=jnp.float32)


# ----------------------------------------------------------------------------
# pallas_call wrappers
# ----------------------------------------------------------------------------

def image_stem(patches_pad, conv_w, base, g, b):
    M, CPP = patches_pad.shape
    D = conv_w.shape[1]
    return pl.pallas_call(
        _img_stem_kernel,
        out_shape=jax.ShapeDtypeStruct((M, D), jnp.float32),
        in_specs=[_fs((M, CPP)), _fs(conv_w.shape), _fs((M, D)),
                  _fs(g.shape), _fs(b.shape)],
        out_specs=_fs((M, D)),
    )(patches_pad, conv_w, base, g, b)


def run_encoder(x3d, rows, mask, blocks, n_heads):
    """x3d: (B, S, D) f32, rows: (B,) int32 local row to keep, mask: (S, S)."""
    B, S, D = x3d.shape
    L = blocks["ln1_g"].shape[0]
    assert S % 8 == 0 and D % 128 == 0

    def wspec(a, b):   # stacked (L, a, b) matrix -> per-layer (a, b) view
        return pl.BlockSpec((None, a, b), lambda bb, l, rr: (l, 0, 0))

    def vspec(n):      # stacked (L, 1, n) vector -> per-layer (1, n) view
        return pl.BlockSpec((None, 1, n), lambda bb, l, rr: (l, 0, 0))

    kernel = partial(_encoder_layer_kernel, n_heads=n_heads)
    sel = pl.pallas_call(
        kernel,
        out_shape=jax.ShapeDtypeStruct((B, 1, D), jnp.float32),
        grid_spec=pltpu.PrefetchScalarGridSpec(
            num_scalar_prefetch=1,                # rows (B,) int32 in SMEM
            grid=(B, L),
            in_specs=[
                pl.BlockSpec((S, S), lambda bb, l, rr: (0, 0)),        # mask
                pl.BlockSpec((None, S, D), lambda bb, l, rr: (bb, 0, 0)),  # x
                vspec(D), vspec(D),                                    # ln1
                wspec(D, 3 * D), vspec(3 * D),                         # qkv
                wspec(D, D), vspec(D),                                 # out
                vspec(D), vspec(D),                                    # ln2
                wspec(D, 4 * D), vspec(4 * D),                         # fc
                wspec(4 * D, D), vspec(D),                             # proj
            ],
            out_specs=pl.BlockSpec((None, 1, D), lambda bb, l, rr: (bb, 0, 0)),
            scratch_shapes=[pltpu.VMEM((S, D), jnp.float32)],
        ),
        compiler_params=pltpu.CompilerParams(
            dimension_semantics=("parallel", "arbitrary")),
    )(rows, mask, x3d,
      blocks["ln1_g"], blocks["ln1_b"],
      blocks["in_w"], blocks["in_b"],
      blocks["out_w"], blocks["out_b"],
      blocks["ln2_g"], blocks["ln2_b"],
      blocks["fc_w"], blocks["fc_b"],
      blocks["proj_w"], blocks["proj_b"])
    return sel[:, 0, :]                           # (B, D)


def tail(img, txt, vp, tp, scale):
    B, _ = img.shape
    return pl.pallas_call(
        _tail_kernel,
        out_shape=jax.ShapeDtypeStruct((B, B), jnp.float32),
        in_specs=[_fs(img.shape), _fs(txt.shape),
                  _fs(vp["ln_post_g"].shape), _fs(vp["ln_post_b"].shape),
                  _fs(vp["proj"].shape),
                  _fs(tp["ln_f_g"].shape), _fs(tp["ln_f_b"].shape),
                  _fs(tp["text_proj"].shape),
                  pl.BlockSpec(memory_space=pltpu.MemorySpace.SMEM)],
        out_specs=_fs((B, B)),
    )(img, txt, vp["ln_post_g"], vp["ln_post_b"], vp["proj"],
      tp["ln_f_g"], tp["ln_f_b"], tp["text_proj"], scale)


# ----------------------------------------------------------------------------
# CLIP forward built on the fused kernels
# ----------------------------------------------------------------------------

def encode_image(image, vp, cfg):
    # image: (B, C, R, R) NCHW, already resized/cropped to input_resolution.
    B, C, R, _ = image.shape
    P = cfg["patch"]
    G = R // P
    GG = G * G
    S = GG + 1
    S_pad = 8 * ((S + 7) // 8)                    # pad seq to sublane multiple
    D = cfg["v_width"]
    CPP = C * P * P

    # patch extraction + padding (glue); rows per batch: [cls-slot, patches, 0s]
    patches = image.reshape(B, C, G, P, G, P).transpose(0, 2, 4, 1, 3, 5)
    patches = patches.reshape(B, GG, CPP)
    pat_pad = jnp.zeros((B, S_pad, CPP), jnp.float32).at[:, 1:1 + GG, :].set(patches)
    pat_pad = pat_pad.reshape(B * S_pad, CPP)

    # (cls + pos0 | pos1..posGG | zeros) base slab, tiled over batch (glue)
    base = jnp.zeros((S_pad, D), jnp.float32)
    base = base.at[0, :].set(vp["class_emb"][0] + vp["pos_emb"][0])
    base = base.at[1:S, :].set(vp["pos_emb"][1:S])
    base = jnp.tile(base, (B, 1))

    x = image_stem(pat_pad, vp["conv_w"], base,
                   vp["ln_pre_g"], vp["ln_pre_b"]).reshape(B, S_pad, D)

    # key-padding mask so the padded rows contribute exactly zero attention
    col = jnp.arange(S_pad)
    mask = jnp.broadcast_to(
        jnp.where(col[None, :] >= S, -1e9, 0.0).astype(jnp.float32),
        (S_pad, S_pad))
    rows = jnp.zeros((B,), jnp.int32)             # CLS is local row 0
    return run_encoder(x, rows, mask, vp["blocks"], cfg["v_heads"])   # (B, D)


def encode_text(tokens, tp, cfg):
    B, L = tokens.shape
    D = cfg["t_width"]
    assert L % 8 == 0
    # embedding gather + pos add (glue)
    x = jnp.take(tp["token_emb"], tokens, axis=0) + tp["pos_emb"][None, :L]
    r = jnp.arange(L)
    mask = jnp.where(r[None, :] > r[:, None], -1e9, 0.0).astype(jnp.float32)
    rows = jnp.argmax(tokens, axis=-1).astype(jnp.int32)   # EOT positions
    return run_encoder(x, rows, mask, tp["blocks"], cfg["t_heads"])   # (B, D)


def frozen_clip_forward(image, tokens, params, cfg):
    # normalize=True branch: features are L2-normalized inside the tail kernel.
    img_cls = encode_image(image, params["visual"], cfg)
    txt_eot = encode_text(tokens, params["text"], cfg)
    # n_repeat=1: the (b, 1, d) text features are squeezed back to 2-D so that
    # `image_features @ text_features.t()` is well defined.
    scale = jnp.exp(params["logit_scale"]).reshape(1, 1)
    logits_per_image = tail(img_cls, txt_eot, params["visual"],
                            params["text"], scale)
    logits_per_text = logits_per_image.T          # exact transpose (as torch)
    return logits_per_image, logits_per_text


# ----------------------------------------------------------------------------
# deterministic synthetic parameters (lane-dense D = 128)
# ----------------------------------------------------------------------------

CFG = dict(
    resolution=16, patch=8, channels=3,
    v_width=128, v_heads=4, v_layers=2,
    t_width=128, t_heads=4, t_layers=2,
    vocab=64, context=8, embed=128,
)


def init_params(key, cfg):
    keys = iter(jax.random.split(key, 64))

    def nrm(shape, std=0.02, dtype=jnp.float32):
        return (std * jax.random.normal(next(keys), shape)).astype(dtype)

    def make_blocks(L, D):
        # weights stacked per-layer; matmul weights in bf16 (MXU inputs),
        # layernorm params / biases in f32 (VPU math).
        return dict(
            ln1_g=jnp.ones((L, 1, D), jnp.float32),
            ln1_b=jnp.zeros((L, 1, D), jnp.float32),
            in_w=nrm((L, D, 3 * D), dtype=jnp.bfloat16),
            in_b=nrm((L, 1, 3 * D)),
            out_w=nrm((L, D, D), dtype=jnp.bfloat16),
            out_b=nrm((L, 1, D)),
            ln2_g=jnp.ones((L, 1, D), jnp.float32),
            ln2_b=jnp.zeros((L, 1, D), jnp.float32),
            fc_w=nrm((L, D, 4 * D), dtype=jnp.bfloat16),
            fc_b=nrm((L, 1, 4 * D)),
            proj_w=nrm((L, 4 * D, D), dtype=jnp.bfloat16),
            proj_b=nrm((L, 1, D)),
        )

    C, P = cfg["channels"], cfg["patch"]
    Dv, Dt, E = cfg["v_width"], cfg["t_width"], cfg["embed"]
    G = cfg["resolution"] // P
    S = G * G + 1
    visual = dict(
        conv_w=nrm((C * P * P, Dv), dtype=jnp.bfloat16),   # flattened conv wt
        class_emb=nrm((1, Dv)),
        pos_emb=nrm((S, Dv)),
        ln_pre_g=jnp.ones((1, Dv), jnp.float32),
        ln_pre_b=jnp.zeros((1, Dv), jnp.float32),
        blocks=make_blocks(cfg["v_layers"], Dv),
        ln_post_g=jnp.ones((1, Dv), jnp.float32),
        ln_post_b=jnp.zeros((1, Dv), jnp.float32),
        proj=nrm((Dv, E), dtype=jnp.bfloat16),
    )
    text = dict(
        token_emb=nrm((cfg["vocab"], Dt)),
        pos_emb=nrm((cfg["context"], Dt)),
        blocks=make_blocks(cfg["t_layers"], Dt),
        ln_f_g=jnp.ones((1, Dt), jnp.float32),
        ln_f_b=jnp.zeros((1, Dt), jnp.float32),
        text_proj=nrm((Dt, E), dtype=jnp.bfloat16),
    )
    return dict(
        visual=visual,
        text=text,
        logit_scale=jnp.asarray(math.log(1.0 / 0.07), jnp.float32),
    )


# ----------------------------------------------------------------------------
# main
# ----------------------------------------------------------------------------

if __name__ == "__main__":
    key = jax.random.PRNGKey(0)
    kp, ki, kt = jax.random.split(key, 3)
    params = init_params(kp, CFG)

    B = 2
    # image: NCHW, already at input_resolution (Resize/CenterCrop is identity)
    image = jax.random.normal(
        ki, (B, CFG["channels"], CFG["resolution"], CFG["resolution"]),
        dtype=jnp.float32)
    # pre-tokenized text ids; last position holds the (largest) EOT token id
    tokens = jax.random.randint(kt, (B, CFG["context"]), 1, CFG["vocab"] - 16,
                                dtype=jnp.int32)
    tokens = tokens.at[:, -1].set(CFG["vocab"] - 1)

    fwd = jax.jit(partial(frozen_clip_forward, params=params, cfg=CFG))
    logits_per_image, logits_per_text = fwd(image, tokens)
    jax.block_until_ready((logits_per_image, logits_per_text))

    assert logits_per_image.shape == (B, B)
    assert logits_per_text.shape == (B, B)
    assert bool(jnp.all(jnp.isfinite(logits_per_image)))
    assert bool(jnp.all(jnp.isfinite(logits_per_text)))
    print("KERNEL_OK")
</pallas_src>

<mosaic_0001>
module attributes {stable_mosaic.version = 11 : i64} {
  func.func @_img_stem_kernel(%arg0: memref<16x192xf32, #tpu.memory_space<vmem>>, %arg1: memref<192x128xbf16, #tpu.memory_space<vmem>>, %arg2: memref<16x128xf32, #tpu.memory_space<vmem>>, %arg3: memref<1x128xf32, #tpu.memory_space<vmem>>, %arg4: memref<1x128xf32, #tpu.memory_space<vmem>>, %arg5: memref<16x128xf32, #tpu.memory_space<vmem>>) attributes {dimension_semantics = [], scalar_prefetch = 0 : i64, scratch_operands = 0 : i64, tpu.core_type = #tpu.core_type<tc>} {
    %c0 = arith.constant 0 : index
    %c0_0 = arith.constant 0 : index
    %0 = vector.load %arg0[%c0, %c0_0] : memref<16x192xf32, #tpu.memory_space<vmem>>, vector<16x192xf32>
    %1 = arith.truncf %0 : vector<16x192xf32> to vector<16x192xbf16>
    %c0_1 = arith.constant 0 : index
    %c0_2 = arith.constant 0 : index
    %2 = vector.load %arg1[%c0_1, %c0_2] : memref<192x128xbf16, #tpu.memory_space<vmem>>, vector<192x128xbf16>
    %cst = arith.constant dense<0.000000e+00> : vector<16x128xf32>
    %3 = tpu.matmul %1, %2, %cst {dimension_numbers = #tpu.dot_dimension_numbers<[1], [0], [0], [1], [0, 0, 1, 1], [], []>} : vector<16x192xbf16>, vector<192x128xbf16>, vector<16x128xf32> -> vector<16x128xf32>
    %c0_3 = arith.constant 0 : index
    %c0_4 = arith.constant 0 : index
    %4 = vector.load %arg2[%c0_3, %c0_4] : memref<16x128xf32, #tpu.memory_space<vmem>>, vector<16x128xf32>
    %5 = arith.addf %3, %4 : vector<16x128xf32>
    %c0_5 = arith.constant 0 : index
    %c0_6 = arith.constant 0 : index
    %6 = vector.load %arg3[%c0_5, %c0_6] : memref<1x128xf32, #tpu.memory_space<vmem>>, vector<1x128xf32>
    %c0_7 = arith.constant 0 : index
    %c0_8 = arith.constant 0 : index
    %7 = vector.load %arg4[%c0_7, %c0_8] : memref<1x128xf32, #tpu.memory_space<vmem>>, vector<1x128xf32>
    %cst_9 = arith.constant dense<0.000000e+00> : vector<16xf32>
    %8 = vector.multi_reduction <add>, %5, %cst_9 [1] : vector<16x128xf32> to vector<16xf32>
    %9 = vector.shape_cast %8 : vector<16xf32> to vector<16x1xf32>
    %cst_10 = arith.constant 1.280000e+02 : f32
    %10 = vector.broadcast %cst_10 : f32 to vector<16x1xf32>
    %11 = arith.divf %9, %10 : vector<16x1xf32>
    %12 = vector.broadcast %11 : vector<16x1xf32> to vector<16x128xf32>
    %13 = arith.subf %5, %12 : vector<16x128xf32>
    %14 = arith.mulf %13, %13 : vector<16x128xf32>
    %cst_11 = arith.constant dense<0.000000e+00> : vector<16xf32>
    %15 = vector.multi_reduction <add>, %14, %cst_11 [1] : vector<16x128xf32> to vector<16xf32>
    %16 = vector.shape_cast %15 : vector<16xf32> to vector<16x1xf32>
    %cst_12 = arith.constant 1.280000e+02 : f32
    %17 = vector.broadcast %cst_12 : f32 to vector<16x1xf32>
    %18 = arith.divf %16, %17 : vector<16x1xf32>
    %cst_13 = arith.constant 9.99999974E-6 : f32
    %19 = vector.broadcast %cst_13 : f32 to vector<16x1xf32>
    %20 = arith.addf %18, %19 : vector<16x1xf32>
    %21 = math.rsqrt %20 : vector<16x1xf32>
    %22 = vector.broadcast %21 : vector<16x1xf32> to vector<16x128xf32>
    %23 = arith.mulf %13, %22 : vector<16x128xf32>
    %24 = vector.broadcast %6 : vector<1x128xf32> to vector<16x128xf32>
    %25 = arith.mulf %23, %24 : vector<16x128xf32>
    %26 = vector.broadcast %7 : vector<1x128xf32> to vector<16x128xf32>
    %27 = arith.addf %25, %26 : vector<16x128xf32>
    %c0_14 = arith.constant 0 : index
    %c0_15 = arith.constant 0 : index
    %28 = vector.load %arg5[%c0_14, %c0_15] : memref<16x128xf32, #tpu.memory_space<vmem>>, vector<16x128xf32>
    tpu.vector_store %arg5[%c0_14, %c0_15], %27 {strides = array<i32>} : memref<16x128xf32, #tpu.memory_space<vmem>>, vector<16x128xf32>,
    return
  }
}

module attributes {stable_mosaic.version = 11 : i64} {
  func.func @_encoder_layer_kernel(%arg0: i32, %arg1: i32, %arg2: memref<2xi32, #tpu.memory_space<smem>>, %arg3: memref<8x8xf32, #tpu.memory_space<vmem>>, %arg4: memref<1x8x128xf32, #tpu.memory_space<vmem>>, %arg5: memref<1x1x128xf32, #tpu.memory_space<vmem>>, %arg6: memref<1x1x128xf32, #tpu.memory_space<vmem>>, %arg7: memref<1x128x384xbf16, #tpu.memory_space<vmem>>, %arg8: memref<1x1x384xf32, #tpu.memory_space<vmem>>, %arg9: memref<1x128x128xbf16, #tpu.memory_space<vmem>>, %arg10: memref<1x1x128xf32, #tpu.memory_space<vmem>>, %arg11: memref<1x1x128xf32, #tpu.memory_space<vmem>>, %arg12: memref<1x1x128xf32, #tpu.memory_space<vmem>>, %arg13: memref<1x128x512xbf16, #tpu.memory_space<vmem>>, %arg14: memref<1x1x512xf32, #tpu.memory_space<vmem>>, %arg15: memref<1x512x128xbf16, #tpu.memory_space<vmem>>, %arg16: memref<1x1x128xf32, #tpu.memory_space<vmem>>, %arg17: memref<1x1x128xf32, #tpu.memory_space<vmem>>, %arg18: memref<8x128xf32, #tpu.memory_space<vmem>>) attributes {dimension_semantics = [#tpu.dimension_semantics<parallel>, #tpu.dimension_semantics<arbitrary>], iteration_bounds = array<i64: 2, 2>, scalar_prefetch = 1 : i64, scratch_operands = 1 : i64, tpu.core_type = #tpu.core_type<tc>, window_params = [{pipeline_mode = #tpu.pipeline_mode<synchronous>, transform_indices = @transform_0, window_bounds = array<i64: 8, 8>}, {transform_indices = @transform_1, window_bounds = array<i64: 1, 8, 128>}, {transform_indices = @transform_2, window_bounds = array<i64: 1, 1, 128>}, {transform_indices = @transform_3, window_bounds = array<i64: 1, 1, 128>}, {transform_indices = @transform_4, window_bounds = array<i64: 1, 128, 384>}, {transform_indices = @transform_5, window_bounds = array<i64: 1, 1, 384>}, {transform_indices = @transform_6, window_bounds = array<i64: 1, 128, 128>}, {transform_indices = @transform_7, window_bounds = array<i64: 1, 1, 128>}, {transform_indices = @transform_8, window_bounds = array<i64: 1, 1, 128>}, {transform_indices = @transform_9, window_bounds = array<i64: 1, 1, 128>}, {transform_indices = @transform_10, window_bounds = array<i64: 1, 128, 512>}, {transform_indices = @transform_11, window_bounds = array<i64: 1, 1, 512>}, {transform_indices = @transform_12, window_bounds = array<i64: 1, 512, 128>}, {transform_indices = @transform_13, window_bounds = array<i64: 1, 1, 128>}, {transform_indices = @transform_14, window_bounds = array<i64: 1, 1, 128>}]} {
    %c0_i32 = arith.constant 0 : i32
    %0 = arith.cmpi eq, %arg1, %c0_i32 : i32
    %1 = arith.extui %0 : i1 to i32
    %c0_i32_0 = arith.constant 0 : i32
    %2 = arith.cmpi ne, %1, %c0_i32_0 : i32
    scf.if %2 {
      %c0_63 = arith.constant 0 : index
      %c0_64 = arith.constant 0 : index
      %c0_65 = arith.constant 0 : index
      %154 = vector.load %arg4[%c0_63, %c0_64, %c0_65] : memref<1x8x128xf32, #tpu.memory_space<vmem>>, vector<1x8x128xf32>
      %155 = vector.shape_cast %154 : vector<1x8x128xf32> to vector<8x128xf32>
      %c0_66 = arith.constant 0 : index
      %c0_67 = arith.constant 0 : index
      %156 = vector.load %arg18[%c0_66, %c0_67] : memref<8x128xf32, #tpu.memory_space<vmem>>, vector<8x128xf32>
      tpu.vector_store %arg18[%c0_66, %c0_67], %155 {strides = array<i32>} : memref<8x128xf32, #tpu.memory_space<vmem>>, vector<8x128xf32>,
    } else {
    }
    %c0 = arith.constant 0 : index
    %c0_1 = arith.constant 0 : index
    %3 = vector.load %arg18[%c0, %c0_1] : memref<8x128xf32, #tpu.memory_space<vmem>>, vector<8x128xf32>
    %c0_2 = arith.constant 0 : index
    %c0_3 = arith.constant 0 : index
    %c0_4 = arith.constant 0 : index
    %4 = vector.load %arg5[%c0_2, %c0_3, %c0_4] : memref<1x1x128xf32, #tpu.memory_space<vmem>>, vector<1x1x128xf32>
    %5 = vector.shape_cast %4 : vector<1x1x128xf32> to vector<1x128xf32>
    %c0_5 = arith.constant 0 : index
    %c0_6 = arith.constant 0 : index
    %c0_7 = arith.constant 0 : index
    %6 = vector.load %arg6[%c0_5, %c0_6, %c0_7] : memref<1x1x128xf32, #tpu.memory_space<vmem>>, vector<1x1x128xf32>
    %7 = vector.shape_cast %6 : vector<1x1x128xf32> to vector<1x128xf32>
    %cst = arith.constant dense<0.000000e+00> : vector<8xf32>
    %8 = vector.multi_reduction <add>, %3, %cst [1] : vector<8x128xf32> to vector<8xf32>
    %9 = vector.shape_cast %8 : vector<8xf32> to vector<8x1xf32>
    %cst_8 = arith.constant 1.280000e+02 : f32
    %10 = vector.broadcast %cst_8 : f32 to vector<8x1xf32>
    %11 = arith.divf %9, %10 : vector<8x1xf32>
    %12 = vector.broadcast %11 : vector<8x1xf32> to vector<8x128xf32>
    %13 = arith.subf %3, %12 : vector<8x128xf32>
    %14 = arith.mulf %13, %13 : vector<8x128xf32>
    %cst_9 = arith.constant dense<0.000000e+00> : vector<8xf32>
    %15 = vector.multi_reduction <add>, %14, %cst_9 [1] : vector<8x128xf32> to vector<8xf32>
    %16 = vector.shape_cast %15 : vector<8xf32> to vector<8x1xf32>
    %cst_10 = arith.constant 1.280000e+02 : f32
    %17 = vector.broadcast %cst_10 : f32 to vector<8x1xf32>
    %18 = arith.divf %16, %17 : vector<8x1xf32>
    %cst_11 = arith.constant 9.99999974E-6 : f32
    %19 = vector.broadcast %cst_11 : f32 to vector<8x1xf32>
    %20 = arith.addf %18, %19 : vector<8x1xf32>
    %21 = math.rsqrt %20 : vector<8x1xf32>
    %22 = vector.broadcast %21 : vector<8x1xf32> to vector<8x128xf32>
    %23 = arith.mulf %13, %22 : vector<8x128xf32>
    %24 = vector.broadcast %5 : vector<1x128xf32> to vector<8x128xf32>
    %25 = arith.mulf %23, %24 : vector<8x128xf32>
    %26 = vector.broadcast %7 : vector<1x128xf32> to vector<8x128xf32>
    %27 = arith.addf %25, %26 : vector<8x128xf32>
    %28 = arith.truncf %27 : vector<8x128xf32> to vector<8x128xbf16>
    %c0_12 = arith.constant 0 : index
    %c0_13 = arith.constant 0 : index
    %c0_14 = arith.constant 0 : index
    %29 = vector.load %arg7[%c0_12, %c0_13, %c0_14] : memref<1x128x384xbf16, #tpu.memory_space<vmem>>, vector<1x128x384xbf16>
    %30 = vector.shape_cast %29 : vector<1x128x384xbf16> to vector<128x384xbf16>
    %cst_15 = arith.constant dense<0.000000e+00> : vector<8x384xf32>
    %31 = tpu.matmul %28, %30, %cst_15 {dimension_numbers = #tpu.dot_dimension_numbers<[1], [0], [0], [1], [0, 0, 1, 1], [], []>} : vector<8x128xbf16>, vector<128x384xbf16>, vector<8x384xf32> -> vector<8x384xf32>
    %c0_16 = arith.constant 0 : index
    %c0_17 = arith.constant 0 : index
    %c0_18 = arith.constant 0 : index
    %32 = vector.load %arg8[%c0_16, %c0_17, %c0_18] : memref<1x1x384xf32, #tpu.memory_space<vmem>>, vector<1x1x384xf32>
    %33 = vector.shape_cast %32 : vector<1x1x384xf32> to vector<1x384xf32>
    %34 = vector.broadcast %33 : vector<1x384xf32> to vector<8x384xf32>
    %35 = arith.addf %31, %34 : vector<8x384xf32>
    %36 = arith.truncf %35 : vector<8x384xf32> to vector<8x384xbf16>
    %37 = vector.extract_strided_slice %36 {offsets = [0, 0], sizes = [8, 32], strides = [1, 1]} : vector<8x384xbf16> to vector<8x32xbf16>
    %38 = vector.extract_strided_slice %36 {offsets = [0, 32], sizes = [8, 32], strides = [1, 1]} : vector<8x384xbf16> to vector<8x32xbf16>
    %39 = vector.extract_strided_slice %36 {offsets = [0, 64], sizes = [8, 32], strides = [1, 1]} : vector<8x384xbf16> to vector<8x32xbf16>
    %40 = vector.extract_strided_slice %36 {offsets = [0, 96], sizes = [8, 32], strides = [1, 1]} : vector<8x384xbf16> to vector<8x32xbf16>
    %41 = vector.shape_cast %37 : vector<8x32xbf16> to vector<1x8x32xbf16>
    %42 = vector.shape_cast %38 : vector<8x32xbf16> to vector<1x8x32xbf16>
    %43 = vector.shape_cast %39 : vector<8x32xbf16> to vector<1x8x32xbf16>
    %44 = vector.shape_cast %40 : vector<8x32xbf16> to vector<1x8x32xbf16>
    %45 = tpu.concatenate %41, %42, %43, %44 in 0 : vector<1x8x32xbf16>, vector<1x8x32xbf16>, vector<1x8x32xbf16>, vector<1x8x32xbf16> -> vector<4x8x32xbf16>
    %46 = vector.extract_strided_slice %36 {offsets = [0, 128], sizes = [8, 32], strides = [1, 1]} : vector<8x384xbf16> to vector<8x32xbf16>
    %47 = vector.extract_strided_slice %36 {offsets = [0, 160], sizes = [8, 32], strides = [1, 1]} : vector<8x384xbf16> to vector<8x32xbf16>
    %48 = vector.extract_strided_slice %36 {offsets = [0, 192], sizes = [8, 32], strides = [1, 1]} : vector<8x384xbf16> to vector<8x32xbf16>
    %49 = vector.extract_strided_slice %36 {offsets = [0, 224], sizes = [8, 32], strides = [1, 1]} : vector<8x384xbf16> to vector<8x32xbf16>
    %50 = vector.shape_cast %46 : vector<8x32xbf16> to vector<1x8x32xbf16>
    %51 = vector.shape_cast %47 : vector<8x32xbf16> to vector<1x8x32xbf16>
    %52 = vector.shape_cast %48 : vector<8x32xbf16> to vector<1x8x32xbf16>
    %53 = vector.shape_cast %49 : vector<8x32xbf16> to vector<1x8x32xbf16>
    %54 = tpu.concatenate %50, %51, %52, %53 in 0 : vector<1x8x32xbf16>, vector<1x8x32xbf16>, vector<1x8x32xbf16>, vector<1x8x32xbf16> -> vector<4x8x32xbf16>
    %55 = vector.extract_strided_slice %36 {offsets = [0, 256], sizes = [8, 32], strides = [1, 1]} : vector<8x384xbf16> to vector<8x32xbf16>
    %56 = vector.extract_strided_slice %36 {offsets = [0, 288], sizes = [8, 32], strides = [1, 1]} : vector<8x384xbf16> to vector<8x32xbf16>
    %57 = vector.extract_strided_slice %36 {offsets = [0, 320], sizes = [8, 32], strides = [1, 1]} : vector<8x384xbf16> to vector<8x32xbf16>
    %58 = vector.extract_strided_slice %36 {offsets = [0, 352], sizes = [8, 32], strides = [1, 1]} : vector<8x384xbf16> to vector<8x32xbf16>
    %59 = vector.shape_cast %55 : vector<8x32xbf16> to vector<1x8x32xbf16>
    %60 = vector.shape_cast %56 : vector<8x32xbf16> to vector<1x8x32xbf16>
    %61 = vector.shape_cast %57 : vector<8x32xbf16> to vector<1x8x32xbf16>
    %62 = vector.shape_cast %58 : vector<8x32xbf16> to vector<1x8x32xbf16>
    %63 = tpu.concatenate %59, %60, %61, %62 in 0 : vector<1x8x32xbf16>, vector<1x8x32xbf16>, vector<1x8x32xbf16>, vector<1x8x32xbf16> -> vector<4x8x32xbf16>
    "tpu.trace_start"() <{level = 10 : i32, message = "hqd,hkd->hqk"}> : () -> ()
    %cst_19 = arith.constant dense<0.000000e+00> : vector<4x8x8xf32>
    %64 = tpu.matmul %45, %54, %cst_19 {dimension_numbers = #tpu.dot_dimension_numbers<[2], [2], [1], [1], [0, 0, 0, 1, 1, 1], [0], [0]>} : vector<4x8x32xbf16>, vector<4x8x32xbf16>, vector<4x8x8xf32> -> vector<4x8x8xf32>
    "tpu.trace_stop"() : () -> ()
    %cst_20 = arith.constant 0.176776692 : f32
    %65 = vector.broadcast %cst_20 : f32 to vector<4x8x8xf32>
    %66 = arith.mulf %64, %65 : vector<4x8x8xf32>
    %c0_21 = arith.constant 0 : index
    %c0_22 = arith.constant 0 : index
    %67 = vector.load %arg3[%c0_21, %c0_22] : memref<8x8xf32, #tpu.memory_space<vmem>>, vector<8x8xf32>
    %68 = vector.shape_cast %67 : vector<8x8xf32> to vector<1x8x8xf32>
    %69 = vector.broadcast %68 : vector<1x8x8xf32> to vector<4x8x8xf32>
    %70 = arith.addf %66, %69 : vector<4x8x8xf32>
    %cst_23 = arith.constant dense<0xFF800000> : vector<4x8xf32>
    %71 = vector.multi_reduction <maximumf>, %70, %cst_23 [2] : vector<4x8x8xf32> to vector<4x8xf32>
    %72 = vector.shape_cast %71 : vector<4x8xf32> to vector<4x8x1xf32>
    %73 = vector.broadcast %72 : vector<4x8x1xf32> to vector<4x8x8xf32>
    %74 = arith.subf %70, %73 : vector<4x8x8xf32>
    %75 = math.exp %74 : vector<4x8x8xf32>
    %cst_24 = arith.constant dense<0.000000e+00> : vector<4x8xf32>
    %76 = vector.multi_reduction <add>, %75, %cst_24 [2] : vector<4x8x8xf32> to vector<4x8xf32>
    %77 = vector.shape_cast %76 : vector<4x8xf32> to vector<4x8x1xf32>
    %78 = tpu.reciprocal %77 {approx = true} : vector<4x8x1xf32> -> vector<4x8x1xf32>
    %79 = vector.broadcast %78 : vector<4x8x1xf32> to vector<4x8x8xf32>
    %80 = arith.mulf %75, %79 : vector<4x8x8xf32>
    %81 = arith.truncf %80 : vector<4x8x8xf32> to vector<4x8x8xbf16>
    "tpu.trace_start"() <{level = 10 : i32, message = "hqk,hkd->hqd"}> : () -> ()
    %cst_25 = arith.constant dense<0.000000e+00> : vector<4x8x32xf32>
    %82 = tpu.matmul %81, %63, %cst_25 {dimension_numbers = #tpu.dot_dimension_numbers<[2], [1], [1], [2], [0, 0, 0, 1, 1, 2], [0], [0]>} : vector<4x8x8xbf16>, vector<4x8x32xbf16>, vector<4x8x32xf32> -> vector<4x8x32xf32>
    "tpu.trace_stop"() : () -> ()
    %83 = vector.extract_strided_slice %82 {offsets = [0, 0, 0], sizes = [1, 8, 32], strides = [1, 1, 1]} : vector<4x8x32xf32> to vector<1x8x32xf32>
    %84 = vector.shape_cast %83 : vector<1x8x32xf32> to vector<8x32xf32>
    %85 = vector.extract_strided_slice %82 {offsets = [1, 0, 0], sizes = [1, 8, 32], strides = [1, 1, 1]} : vector<4x8x32xf32> to vector<1x8x32xf32>
    %86 = vector.shape_cast %85 : vector<1x8x32xf32> to vector<8x32xf32>
    %87 = vector.extract_strided_slice %82 {offsets = [2, 0, 0], sizes = [1, 8, 32], strides = [1, 1, 1]} : vector<4x8x32xf32> to vector<1x8x32xf32>
    %88 = vector.shape_cast %87 : vector<1x8x32xf32> to vector<8x32xf32>
    %89 = vector.extract_strided_slice %82 {offsets = [3, 0, 0], sizes = [1, 8, 32], strides = [1, 1, 1]} : vector<4x8x32xf32> to vector<1x8x32xf32>
    %90 = vector.shape_cast %89 : vector<1x8x32xf32> to vector<8x32xf32>
    %91 = tpu.concatenate %84, %86, %88, %90 in 1 : vector<8x32xf32>, vector<8x32xf32>, vector<8x32xf32>, vector<8x32xf32> -> vector<8x128xf32>
    %92 = arith.truncf %91 : vector<8x128xf32> to vector<8x128xbf16>
    %c0_26 = arith.constant 0 : index
    %c0_27 = arith.constant 0 : index
    %c0_28 = arith.constant 0 : index
    %93 = vector.load %arg9[%c0_26, %c0_27, %c0_28] : memref<1x128x128xbf16, #tpu.memory_space<vmem>>, vector<1x128x128xbf16>
    %94 = vector.shape_cast %93 : vector<1x128x128xbf16> to vector<128x128xbf16>
    %cst_29 = arith.constant dense<0.000000e+00> : vector<8x128xf32>
    %95 = tpu.matmul %92, %94, %cst_29 {dimension_numbers = #tpu.dot_dimension_numbers<[1], [0], [0], [1], [0, 0, 1, 1], [], []>} : vector<8x128xbf16>, vector<128x128xbf16>, vector<8x128xf32> -> vector<8x128xf32>
    %c0_30 = arith.constant 0 : index
    %c0_31 = arith.constant 0 : index
    %c0_32 = arith.constant 0 : index
    %96 = vector.load %arg10[%c0_30, %c0_31, %c0_32] : memref<1x1x128xf32, #tpu.memory_space<vmem>>, vector<1x1x128xf32>
    %97 = vector.shape_cast %96 : vector<1x1x128xf32> to vector<1x128xf32>
    %98 = vector.broadcast %97 : vector<1x128xf32> to vector<8x128xf32>
    %99 = arith.addf %95, %98 : vector<8x128xf32>
    %100 = arith.addf %3, %99 : vector<8x128xf32>
    %c0_33 = arith.constant 0 : index
    %c0_34 = arith.constant 0 : index
    %c0_35 = arith.constant 0 : index
    %101 = vector.load %arg11[%c0_33, %c0_34, %c0_35] : memref<1x1x128xf32, #tpu.memory_space<vmem>>, vector<1x1x128xf32>
    %102 = vector.shape_cast %101 : vector<1x1x128xf32> to vector<1x128xf32>
    %c0_36 = arith.constant 0 : index
    %c0_37 = arith.constant 0 : index
    %c0_38 = arith.constant 0 : index
    %103 = vector.load %arg12[%c0_36, %c0_37, %c0_38] : memref<1x1x128xf32, #tpu.memory_space<vmem>>, vector<1x1x128xf32>
    %104 = vector.shape_cast %103 : vector<1x1x128xf32> to vector<1x128xf32>
    %cst_39 = arith.constant dense<0.000000e+00> : vector<8xf32>
    %105 = vector.multi_reduction <add>, %100, %cst_39 [1] : vector<8x128xf32> to vector<8xf32>
    %106 = vector.shape_cast %105 : vector<8xf32> to vector<8x1xf32>
    %cst_40 = arith.constant 1.280000e+02 : f32
    %107 = vector.broadcast %cst_40 : f32 to vector<8x1xf32>
    %108 = arith.divf %106, %107 : vector<8x1xf32>
    %109 = vector.broadcast %108 : vector<8x1xf32> to vector<8x128xf32>
    %110 = arith.subf %100, %109 : vector<8x128xf32>
    %111 = arith.mulf %110, %110 : vector<8x128xf32>
    %cst_41 = arith.constant dense<0.000000e+00> : vector<8xf32>
    %112 = vector.multi_reduction <add>, %111, %cst_41 [1] : vector<8x128xf32> to vector<8xf32>
    %113 = vector.shape_cast %112 : vector<8xf32> to vector<8x1xf32>
    %cst_42 = arith.constant 1.280000e+02 : f32
    %114 = vector.broadcast %cst_42 : f32 to vector<8x1xf32>
    %115 = arith.divf %113, %114 : vector<8x1xf32>
    %cst_43 = arith.constant 9.99999974E-6 : f32
    %116 = vector.broadcast %cst_43 : f32 to vector<8x1xf32>
    %117 = arith.addf %115, %116 : vector<8x1xf32>
    %118 = math.rsqrt %117 : vector<8x1xf32>
    %119 = vector.broadcast %118 : vector<8x1xf32> to vector<8x128xf32>
    %120 = arith.mulf %110, %119 : vector<8x128xf32>
    %121 = vector.broadcast %102 : vector<1x128xf32> to vector<8x128xf32>
    %122 = arith.mulf %120, %121 : vector<8x128xf32>
    %123 = vector.broadcast %104 : vector<1x128xf32> to vector<8x128xf32>
    %124 = arith.addf %122, %123 : vector<8x128xf32>
    %125 = arith.truncf %124 : vector<8x128xf32> to vector<8x128xbf16>
    %c0_44 = arith.constant 0 : index
    %c0_45 = arith.constant 0 : index
    %c0_46 = arith.constant 0 : index
    %126 = vector.load %arg13[%c0_44, %c0_45, %c0_46] : memref<1x128x512xbf16, #tpu.memory_space<vmem>>, vector<1x128x512xbf16>
    %127 = vector.shape_cast %126 : vector<1x128x512xbf16> to vector<128x512xbf16>
    %cst_47 = arith.constant dense<0.000000e+00> : vector<8x512xf32>
    %128 = tpu.matmul %125, %127, %cst_47 {dimension_numbers = #tpu.dot_dimension_numbers<[1], [0], [0], [1], [0, 0, 1, 1], [], []>} : vector<8x128xbf16>, vector<128x512xbf16>, vector<8x512xf32> -> vector<8x512xf32>
    %c0_48 = arith.constant 0 : index
    %c0_49 = arith.constant 0 : index
    %c0_50 = arith.constant 0 : index
    %129 = vector.load %arg14[%c0_48, %c0_49, %c0_50] : memref<1x1x512xf32, #tpu.memory_space<vmem>>, vector<1x1x512xf32>
    %130 = vector.shape_cast %129 : vector<1x1x512xf32> to vector<1x512xf32>
    %131 = vector.broadcast %130 : vector<1x512xf32> to vector<8x512xf32>
    %132 = arith.addf %128, %131 : vector<8x512xf32>
    %cst_51 = arith.constant 1.702000e+00 : f32
    %133 = vector.broadcast %cst_51 : f32 to vector<8x512xf32>
    %134 = arith.mulf %133, %132 : vector<8x512xf32>
    %135 = arith.negf %134 : vector<8x512xf32>
    %136 = math.exp %135 : vector<8x512xf32>
    %cst_52 = arith.constant 1.000000e+00 : f32
    %137 = vector.broadcast %cst_52 : f32 to vector<8x512xf32>
    %138 = arith.addf %137, %136 : vector<8x512xf32>
    %139 = arith.divf %137, %138 : vector<8x512xf32>
    %140 = arith.mulf %132, %139 : vector<8x512xf32>
    %141 = arith.truncf %140 : vector<8x512xf32> to vector<8x512xbf16>
    %c0_53 = arith.constant 0 : index
    %c0_54 = arith.constant 0 : index
    %c0_55 = arith.constant 0 : index
    %142 = vector.load %arg15[%c0_53, %c0_54, %c0_55] : memref<1x512x128xbf16, #tpu.memory_space<vmem>>, vector<1x512x128xbf16>
    %143 = vector.shape_cast %142 : vector<1x512x128xbf16> to vector<512x128xbf16>
    %cst_56 = arith.constant dense<0.000000e+00> : vector<8x128xf32>
    %144 = tpu.matmul %141, %143, %cst_56 {dimension_numbers = #tpu.dot_dimension_numbers<[1], [0], [0], [1], [0, 0, 1, 1], [], []>} : vector<8x512xbf16>, vector<512x128xbf16>, vector<8x128xf32> -> vector<8x128xf32>
    %c0_57 = arith.constant 0 : index
    %c0_58 = arith.constant 0 : index
    %c0_59 = arith.constant 0 : index
    %145 = vector.load %arg16[%c0_57, %c0_58, %c0_59] : memref<1x1x128xf32, #tpu.memory_space<vmem>>, vector<1x1x128xf32>
    %146 = vector.shape_cast %145 : vector<1x1x128xf32> to vector<1x128xf32>
    %147 = vector.broadcast %146 : vector<1x128xf32> to vector<8x128xf32>
    %148 = arith.addf %144, %147 : vector<8x128xf32>
    %149 = arith.addf %100, %148 : vector<8x128xf32>
    %c0_60 = arith.constant 0 : index
    %c0_61 = arith.constant 0 : index
    %150 = vector.load %arg18[%c0_60, %c0_61] : memref<8x128xf32, #tpu.memory_space<vmem>>, vector<8x128xf32>
    tpu.vector_store %arg18[%c0_60, %c0_61], %149 {strides = array<i32>} : memref<8x128xf32, #tpu.memory_space<vmem>>, vector<8x128xf32>,
    %c1_i32 = arith.constant 1 : i32
    %151 = arith.cmpi eq, %arg1, %c1_i32 : i32
    %152 = arith.extui %151 : i1 to i32
    %c0_i32_62 = arith.constant 0 : i32
    %153 = arith.cmpi ne, %152, %c0_i32_62 : i32
    scf.if %153 {
      %154 = arith.index_cast %arg0 : i32 to index
      %155 = memref.load %arg2[%154] : memref<2xi32, #tpu.memory_space<smem>>
      %156 = arith.index_cast %155 : i32 to index
      %c0_63 = arith.constant 0 : index
      %157 = vector.load %arg18[%156, %c0_63] : memref<8x128xf32, #tpu.memory_space<vmem>>, vector<1x128xf32>
      %c0_64 = arith.constant 0 : index
      %c0_65 = arith.constant 0 : index
      %c0_66 = arith.constant 0 : index
      %158 = vector.load %arg17[%c0_64, %c0_65, %c0_66] : memref<1x1x128xf32, #tpu.memory_space<vmem>>, vector<1x1x128xf32>
      %159 = vector.shape_cast %158 : vector<1x1x128xf32> to vector<1x128xf32>
      %160 = vector.shape_cast %157 : vector<1x128xf32> to vector<1x1x128xf32>
      tpu.vector_store %arg17[%c0_64, %c0_65, %c0_66], %160 {strides = array<i32>} : memref<1x1x128xf32, #tpu.memory_space<vmem>>, vector<1x1x128xf32>,
    } else {
    }
    return
  }
  func.func @transform_0(%arg0: i32, %arg1: i32, %arg2: memref<2xi32, #tpu.memory_space<smem>>) -> (i32, i32) {
    %c0_i32 = arith.constant 0 : i32
    %c0_i32_0 = arith.constant 0 : i32
    %c0_i32_1 = arith.constant 0 : i32
    return %c0_i32, %c0_i32_0 : i32, i32
  }
  func.func @transform_1(%arg0: i32, %arg1: i32, %arg2: memref<2xi32, #tpu.memory_space<smem>>) -> (i32, i32, i32) {
    %c0_i32 = arith.constant 0 : i32
    %c0_i32_0 = arith.constant 0 : i32
    %c0_i32_1 = arith.constant 0 : i32
    return %arg0, %c0_i32, %c0_i32_0 : i32, i32, i32
  }
  func.func @transform_2(%arg0: i32, %arg1: i32, %arg2: memref<2xi32, #tpu.memory_space<smem>>) -> (i32, i32, i32) {
    %c0_i32 = arith.constant 0 : i32
    %c0_i32_0 = arith.constant 0 : i32
    %c0_i32_1 = arith.constant 0 : i32
    return %arg1, %c0_i32, %c0_i32_0 : i32, i32, i32
  }
  func.func @transform_3(%arg0: i32, %arg1: i32, %arg2: memref<2xi32, #tpu.memory_space<smem>>) -> (i32, i32, i32) {
    %c0_i32 = arith.constant 0 : i32
    %c0_i32_0 = arith.constant 0 : i32
    %c0_i32_1 = arith.constant 0 : i32
    return %arg1, %c0_i32, %c0_i32_0 : i32, i32, i32
  }
  func.func @transform_4(%arg0: i32, %arg1: i32, %arg2: memref<2xi32, #tpu.memory_space<smem>>) -> (i32, i32, i32) {
    %c0_i32 = arith.constant 0 : i32
    %c0_i32_0 = arith.constant 0 : i32
    %c0_i32_1 = arith.constant 0 : i32
    return %arg1, %c0_i32, %c0_i32_0 : i32, i32, i32
  }
  func.func @transform_5(%arg0: i32, %arg1: i32, %arg2: memref<2xi32, #tpu.memory_space<smem>>) -> (i32, i32, i32) {
    %c0_i32 = arith.constant 0 : i32
    %c0_i32_0 = arith.constant 0 : i32
    %c0_i32_1 = arith.constant 0 : i32
    return %arg1, %c0_i32, %c0_i32_0 : i32, i32, i32
  }
  func.func @transform_6(%arg0: i32, %arg1: i32, %arg2: memref<2xi32, #tpu.memory_space<smem>>) -> (i32, i32, i32) {
    %c0_i32 = arith.constant 0 : i32
    %c0_i32_0 = arith.constant 0 : i32
    %c0_i32_1 = arith.constant 0 : i32
    return %arg1, %c0_i32, %c0_i32_0 : i32, i32, i32
  }
  func.func @transform_7(%arg0: i32, %arg1: i32, %arg2: memref<2xi32, #tpu.memory_space<smem>>) -> (i32, i32, i32) {
    %c0_i32 = arith.constant 0 : i32
    %c0_i32_0 = arith.constant 0 : i32
    %c0_i32_1 = arith.constant 0 : i32
    return %arg1, %c0_i32, %c0_i32_0 : i32, i32, i32
  }
  func.func @transform_8(%arg0: i32, %arg1: i32, %arg2: memref<2xi32, #tpu.memory_space<smem>>) -> (i32, i32, i32) {
    %c0_i32 = arith.constant 0 : i32
    %c0_i32_0 = arith.constant 0 : i32
    %c0_i32_1 = arith.constant 0 : i32
    return %arg1, %c0_i32, %c0_i32_0 : i32, i32, i32
  }
  func.func @transform_9(%arg0: i32, %arg1: i32, %arg2: memref<2xi32, #tpu.memory_space<smem>>) -> (i32, i32, i32) {
    %c0_i32 = arith.constant 0 : i32
    %c0_i32_0 = arith.constant 0 : i32
    %c0_i32_1 = arith.constant 0 : i32
    return %arg1, %c0_i32, %c0_i32_0 : i32, i32, i32
  }
  func.func @transform_10(%arg0: i32, %arg1: i32, %arg2: memref<2xi32, #tpu.memory_space<smem>>) -> (i32, i32, i32) {
    %c0_i32 = arith.constant 0 : i32
    %c0_i32_0 = arith.constant 0 : i32
    %c0_i32_1 = arith.constant 0 : i32
    return %arg1, %c0_i32, %c0_i32_0 : i32, i32, i32
  }
  func.func @transform_11(%arg0: i32, %arg1: i32, %arg2: memref<2xi32, #tpu.memory_space<smem>>) -> (i32, i32, i32) {
    %c0_i32 = arith.constant 0 : i32
    %c0_i32_0 = arith.constant 0 : i32
    %c0_i32_1 = arith.constant 0 : i32
    return %arg1, %c0_i32, %c0_i32_0 : i32, i32, i32
  }
  func.func @transform_12(%arg0: i32, %arg1: i32, %arg2: memref<2xi32, #tpu.memory_space<smem>>) -> (i32, i32, i32) {
    %c0_i32 = arith.constant 0 : i32
    %c0_i32_0 = arith.constant 0 : i32
    %c0_i32_1 = arith.constant 0 : i32
    return %arg1, %c0_i32, %c0_i32_0 : i32, i32, i32
  }
  func.func @transform_13(%arg0: i32, %arg1: i32, %arg2: memref<2xi32, #tpu.memory_space<smem>>) -> (i32, i32, i32) {
    %c0_i32 = arith.constant 0 : i32
    %c0_i32_0 = arith.constant 0 : i32
    %c0_i32_1 = arith.constant 0 : i32
    return %arg1, %c0_i32, %c0_i32_0 : i32, i32, i32
  }
  func.func @transform_14(%arg0: i32, %arg1: i32, %arg2: memref<2xi32, #tpu.memory_space<smem>>) -> (i32, i32, i32) {
    %c0_i32 = arith.constant 0 : i32
    %c0_i32_0 = arith.constant 0 : i32
    %c0_i32_1 = arith.constant 0 : i32
    return %arg0, %c0_i32, %c0_i32_0 : i32, i32, i32
  }
}

module attributes {stable_mosaic.version = 11 : i64} {
  func.func @_encoder_layer_kernel(%arg0: i32, %arg1: i32, %arg2: memref<2xi32, #tpu.memory_space<smem>>, %arg3: memref<8x8xf32, #tpu.memory_space<vmem>>, %arg4: memref<1x8x128xf32, #tpu.memory_space<vmem>>, %arg5: memref<1x1x128xf32, #tpu.memory_space<vmem>>, %arg6: memref<1x1x128xf32, #tpu.memory_space<vmem>>, %arg7: memref<1x128x384xbf16, #tpu.memory_space<vmem>>, %arg8: memref<1x1x384xf32, #tpu.memory_space<vmem>>, %arg9: memref<1x128x128xbf16, #tpu.memory_space<vmem>>, %arg10: memref<1x1x128xf32, #tpu.memory_space<vmem>>, %arg11: memref<1x1x128xf32, #tpu.memory_space<vmem>>, %arg12: memref<1x1x128xf32, #tpu.memory_space<vmem>>, %arg13: memref<1x128x512xbf16, #tpu.memory_space<vmem>>, %arg14: memref<1x1x512xf32, #tpu.memory_space<vmem>>, %arg15: memref<1x512x128xbf16, #tpu.memory_space<vmem>>, %arg16: memref<1x1x128xf32, #tpu.memory_space<vmem>>, %arg17: memref<1x1x128xf32, #tpu.memory_space<vmem>>, %arg18: memref<8x128xf32, #tpu.memory_space<vmem>>) attributes {dimension_semantics = [#tpu.dimension_semantics<parallel>, #tpu.dimension_semantics<arbitrary>], iteration_bounds = array<i64: 2, 2>, scalar_prefetch = 1 : i64, scratch_operands = 1 : i64, tpu.core_type = #tpu.core_type<tc>, window_params = [{pipeline_mode = #tpu.pipeline_mode<synchronous>, transform_indices = @transform_0, window_bounds = array<i64: 8, 8>}, {transform_indices = @transform_1, window_bounds = array<i64: 1, 8, 128>}, {transform_indices = @transform_2, window_bounds = array<i64: 1, 1, 128>}, {transform_indices = @transform_3, window_bounds = array<i64: 1, 1, 128>}, {transform_indices = @transform_4, window_bounds = array<i64: 1, 128, 384>}, {transform_indices = @transform_5, window_bounds = array<i64: 1, 1, 384>}, {transform_indices = @transform_6, window_bounds = array<i64: 1, 128, 128>}, {transform_indices = @transform_7, window_bounds = array<i64: 1, 1, 128>}, {transform_indices = @transform_8, window_bounds = array<i64: 1, 1, 128>}, {transform_indices = @transform_9, window_bounds = array<i64: 1, 1, 128>}, {transform_indices = @transform_10, window_bounds = array<i64: 1, 128, 512>}, {transform_indices = @transform_11, window_bounds = array<i64: 1, 1, 512>}, {transform_indices = @transform_12, window_bounds = array<i64: 1, 512, 128>}, {transform_indices = @transform_13, window_bounds = array<i64: 1, 1, 128>}, {transform_indices = @transform_14, window_bounds = array<i64: 1, 1, 128>}]} {
    %c0_i32 = arith.constant 0 : i32
    %0 = arith.cmpi eq, %arg1, %c0_i32 : i32
    %1 = arith.extui %0 : i1 to i32
    %c0_i32_0 = arith.constant 0 : i32
    %2 = arith.cmpi ne, %1, %c0_i32_0 : i32
    scf.if %2 {
      %c0_63 = arith.constant 0 : index
      %c0_64 = arith.constant 0 : index
      %c0_65 = arith.constant 0 : index
      %154 = vector.load %arg4[%c0_63, %c0_64, %c0_65] : memref<1x8x128xf32, #tpu.memory_space<vmem>>, vector<1x8x128xf32>
      %155 = vector.shape_cast %154 : vector<1x8x128xf32> to vector<8x128xf32>
      %c0_66 = arith.constant 0 : index
      %c0_67 = arith.constant 0 : index
      %156 = vector.load %arg18[%c0_66, %c0_67] : memref<8x128xf32, #tpu.memory_space<vmem>>, vector<8x128xf32>
      tpu.vector_store %arg18[%c0_66, %c0_67], %155 {strides = array<i32>} : memref<8x128xf32, #tpu.memory_space<vmem>>, vector<8x128xf32>,
    } else {
    }
    %c0 = arith.constant 0 : index
    %c0_1 = arith.constant 0 : index
    %3 = vector.load %arg18[%c0, %c0_1] : memref<8x128xf32, #tpu.memory_space<vmem>>, vector<8x128xf32>
    %c0_2 = arith.constant 0 : index
    %c0_3 = arith.constant 0 : index
    %c0_4 = arith.constant 0 : index
    %4 = vector.load %arg5[%c0_2, %c0_3, %c0_4] : memref<1x1x128xf32, #tpu.memory_space<vmem>>, vector<1x1x128xf32>
    %5 = vector.shape_cast %4 : vector<1x1x128xf32> to vector<1x128xf32>
    %c0_5 = arith.constant 0 : index
    %c0_6 = arith.constant 0 : index
    %c0_7 = arith.constant 0 : index
    %6 = vector.load %arg6[%c0_5, %c0_6, %c0_7] : memref<1x1x128xf32, #tpu.memory_space<vmem>>, vector<1x1x128xf32>
    %7 = vector.shape_cast %6 : vector<1x1x128xf32> to vector<1x128xf32>
    %cst = arith.constant dense<0.000000e+00> : vector<8xf32>
    %8 = vector.multi_reduction <add>, %3, %cst [1] : vector<8x128xf32> to vector<8xf32>
    %9 = vector.shape_cast %8 : vector<8xf32> to vector<8x1xf32>
    %cst_8 = arith.constant 1.280000e+02 : f32
    %10 = vector.broadcast %cst_8 : f32 to vector<8x1xf32>
    %11 = arith.divf %9, %10 : vector<8x1xf32>
    %12 = vector.broadcast %11 : vector<8x1xf32> to vector<8x128xf32>
    %13 = arith.subf %3, %12 : vector<8x128xf32>
    %14 = arith.mulf %13, %13 : vector<8x128xf32>
    %cst_9 = arith.constant dense<0.000000e+00> : vector<8xf32>
    %15 = vector.multi_reduction <add>, %14, %cst_9 [1] : vector<8x128xf32> to vector<8xf32>
    %16 = vector.shape_cast %15 : vector<8xf32> to vector<8x1xf32>
    %cst_10 = arith.constant 1.280000e+02 : f32
    %17 = vector.broadcast %cst_10 : f32 to vector<8x1xf32>
    %18 = arith.divf %16, %17 : vector<8x1xf32>
    %cst_11 = arith.constant 9.99999974E-6 : f32
    %19 = vector.broadcast %cst_11 : f32 to vector<8x1xf32>
    %20 = arith.addf %18, %19 : vector<8x1xf32>
    %21 = math.rsqrt %20 : vector<8x1xf32>
    %22 = vector.broadcast %21 : vector<8x1xf32> to vector<8x128xf32>
    %23 = arith.mulf %13, %22 : vector<8x128xf32>
    %24 = vector.broadcast %5 : vector<1x128xf32> to vector<8x128xf32>
    %25 = arith.mulf %23, %24 : vector<8x128xf32>
    %26 = vector.broadcast %7 : vector<1x128xf32> to vector<8x128xf32>
    %27 = arith.addf %25, %26 : vector<8x128xf32>
    %28 = arith.truncf %27 : vector<8x128xf32> to vector<8x128xbf16>
    %c0_12 = arith.constant 0 : index
    %c0_13 = arith.constant 0 : index
    %c0_14 = arith.constant 0 : index
    %29 = vector.load %arg7[%c0_12, %c0_13, %c0_14] : memref<1x128x384xbf16, #tpu.memory_space<vmem>>, vector<1x128x384xbf16>
    %30 = vector.shape_cast %29 : vector<1x128x384xbf16> to vector<128x384xbf16>
    %cst_15 = arith.constant dense<0.000000e+00> : vector<8x384xf32>
    %31 = tpu.matmul %28, %30, %cst_15 {dimension_numbers = #tpu.dot_dimension_numbers<[1], [0], [0], [1], [0, 0, 1, 1], [], []>} : vector<8x128xbf16>, vector<128x384xbf16>, vector<8x384xf32> -> vector<8x384xf32>
    %c0_16 = arith.constant 0 : index
    %c0_17 = arith.constant 0 : index
    %c0_18 = arith.constant 0 : index
    %32 = vector.load %arg8[%c0_16, %c0_17, %c0_18] : memref<1x1x384xf32, #tpu.memory_space<vmem>>, vector<1x1x384xf32>
    %33 = vector.shape_cast %32 : vector<1x1x384xf32> to vector<1x384xf32>
    %34 = vector.broadcast %33 : vector<1x384xf32> to vector<8x384xf32>
    %35 = arith.addf %31, %34 : vector<8x384xf32>
    %36 = arith.truncf %35 : vector<8x384xf32> to vector<8x384xbf16>
    %37 = vector.extract_strided_slice %36 {offsets = [0, 0], sizes = [8, 32], strides = [1, 1]} : vector<8x384xbf16> to vector<8x32xbf16>
    %38 = vector.extract_strided_slice %36 {offsets = [0, 32], sizes = [8, 32], strides = [1, 1]} : vector<8x384xbf16> to vector<8x32xbf16>
    %39 = vector.extract_strided_slice %36 {offsets = [0, 64], sizes = [8, 32], strides = [1, 1]} : vector<8x384xbf16> to vector<8x32xbf16>
    %40 = vector.extract_strided_slice %36 {offsets = [0, 96], sizes = [8, 32], strides = [1, 1]} : vector<8x384xbf16> to vector<8x32xbf16>
    %41 = vector.shape_cast %37 : vector<8x32xbf16> to vector<1x8x32xbf16>
    %42 = vector.shape_cast %38 : vector<8x32xbf16> to vector<1x8x32xbf16>
    %43 = vector.shape_cast %39 : vector<8x32xbf16> to vector<1x8x32xbf16>
    %44 = vector.shape_cast %40 : vector<8x32xbf16> to vector<1x8x32xbf16>
    %45 = tpu.concatenate %41, %42, %43, %44 in 0 : vector<1x8x32xbf16>, vector<1x8x32xbf16>, vector<1x8x32xbf16>, vector<1x8x32xbf16> -> vector<4x8x32xbf16>
    %46 = vector.extract_strided_slice %36 {offsets = [0, 128], sizes = [8, 32], strides = [1, 1]} : vector<8x384xbf16> to vector<8x32xbf16>
    %47 = vector.extract_strided_slice %36 {offsets = [0, 160], sizes = [8, 32], strides = [1, 1]} : vector<8x384xbf16> to vector<8x32xbf16>
    %48 = vector.extract_strided_slice %36 {offsets = [0, 192], sizes = [8, 32], strides = [1, 1]} : vector<8x384xbf16> to vector<8x32xbf16>
    %49 = vector.extract_strided_slice %36 {offsets = [0, 224], sizes = [8, 32], strides = [1, 1]} : vector<8x384xbf16> to vector<8x32xbf16>
    %50 = vector.shape_cast %46 : vector<8x32xbf16> to vector<1x8x32xbf16>
    %51 = vector.shape_cast %47 : vector<8x32xbf16> to vector<1x8x32xbf16>
    %52 = vector.shape_cast %48 : vector<8x32xbf16> to vector<1x8x32xbf16>
    %53 = vector.shape_cast %49 : vector<8x32xbf16> to vector<1x8x32xbf16>
    %54 = tpu.concatenate %50, %51, %52, %53 in 0 : vector<1x8x32xbf16>, vector<1x8x32xbf16>, vector<1x8x32xbf16>, vector<1x8x32xbf16> -> vector<4x8x32xbf16>
    %55 = vector.extract_strided_slice %36 {offsets = [0, 256], sizes = [8, 32], strides = [1, 1]} : vector<8x384xbf16> to vector<8x32xbf16>
    %56 = vector.extract_strided_slice %36 {offsets = [0, 288], sizes = [8, 32], strides = [1, 1]} : vector<8x384xbf16> to vector<8x32xbf16>
    %57 = vector.extract_strided_slice %36 {offsets = [0, 320], sizes = [8, 32], strides = [1, 1]} : vector<8x384xbf16> to vector<8x32xbf16>
    %58 = vector.extract_strided_slice %36 {offsets = [0, 352], sizes = [8, 32], strides = [1, 1]} : vector<8x384xbf16> to vector<8x32xbf16>
    %59 = vector.shape_cast %55 : vector<8x32xbf16> to vector<1x8x32xbf16>
    %60 = vector.shape_cast %56 : vector<8x32xbf16> to vector<1x8x32xbf16>
    %61 = vector.shape_cast %57 : vector<8x32xbf16> to vector<1x8x32xbf16>
    %62 = vector.shape_cast %58 : vector<8x32xbf16> to vector<1x8x32xbf16>
    %63 = tpu.concatenate %59, %60, %61, %62 in 0 : vector<1x8x32xbf16>, vector<1x8x32xbf16>, vector<1x8x32xbf16>, vector<1x8x32xbf16> -> vector<4x8x32xbf16>
    "tpu.trace_start"() <{level = 10 : i32, message = "hqd,hkd->hqk"}> : () -> ()
    %cst_19 = arith.constant dense<0.000000e+00> : vector<4x8x8xf32>
    %64 = tpu.matmul %45, %54, %cst_19 {dimension_numbers = #tpu.dot_dimension_numbers<[2], [2], [1], [1], [0, 0, 0, 1, 1, 1], [0], [0]>} : vector<4x8x32xbf16>, vector<4x8x32xbf16>, vector<4x8x8xf32> -> vector<4x8x8xf32>
    "tpu.trace_stop"() : () -> ()
    %cst_20 = arith.constant 0.176776692 : f32
    %65 = vector.broadcast %cst_20 : f32 to vector<4x8x8xf32>
    %66 = arith.mulf %64, %65 : vector<4x8x8xf32>
    %c0_21 = arith.constant 0 : index
    %c0_22 = arith.constant 0 : index
    %67 = vector.load %arg3[%c0_21, %c0_22] : memref<8x8xf32, #tpu.memory_space<vmem>>, vector<8x8xf32>
    %68 = vector.shape_cast %67 : vector<8x8xf32> to vector<1x8x8xf32>
    %69 = vector.broadcast %68 : vector<1x8x8xf32> to vector<4x8x8xf32>
    %70 = arith.addf %66, %69 : vector<4x8x8xf32>
    %cst_23 = arith.constant dense<0xFF800000> : vector<4x8xf32>
    %71 = vector.multi_reduction <maximumf>, %70, %cst_23 [2] : vector<4x8x8xf32> to vector<4x8xf32>
    %72 = vector.shape_cast %71 : vector<4x8xf32> to vector<4x8x1xf32>
    %73 = vector.broadcast %72 : vector<4x8x1xf32> to vector<4x8x8xf32>
    %74 = arith.subf %70, %73 : vector<4x8x8xf32>
    %75 = math.exp %74 : vector<4x8x8xf32>
    %cst_24 = arith.constant dense<0.000000e+00> : vector<4x8xf32>
    %76 = vector.multi_reduction <add>, %75, %cst_24 [2] : vector<4x8x8xf32> to vector<4x8xf32>
    %77 = vector.shape_cast %76 : vector<4x8xf32> to vector<4x8x1xf32>
    %78 = tpu.reciprocal %77 {approx = true} : vector<4x8x1xf32> -> vector<4x8x1xf32>
    %79 = vector.broadcast %78 : vector<4x8x1xf32> to vector<4x8x8xf32>
    %80 = arith.mulf %75, %79 : vector<4x8x8xf32>
    %81 = arith.truncf %80 : vector<4x8x8xf32> to vector<4x8x8xbf16>
    "tpu.trace_start"() <{level = 10 : i32, message = "hqk,hkd->hqd"}> : () -> ()
    %cst_25 = arith.constant dense<0.000000e+00> : vector<4x8x32xf32>
    %82 = tpu.matmul %81, %63, %cst_25 {dimension_numbers = #tpu.dot_dimension_numbers<[2], [1], [1], [2], [0, 0, 0, 1, 1, 2], [0], [0]>} : vector<4x8x8xbf16>, vector<4x8x32xbf16>, vector<4x8x32xf32> -> vector<4x8x32xf32>
    "tpu.trace_stop"() : () -> ()
    %83 = vector.extract_strided_slice %82 {offsets = [0, 0, 0], sizes = [1, 8, 32], strides = [1, 1, 1]} : vector<4x8x32xf32> to vector<1x8x32xf32>
    %84 = vector.shape_cast %83 : vector<1x8x32xf32> to vector<8x32xf32>
    %85 = vector.extract_strided_slice %82 {offsets = [1, 0, 0], sizes = [1, 8, 32], strides = [1, 1, 1]} : vector<4x8x32xf32> to vector<1x8x32xf32>
    %86 = vector.shape_cast %85 : vector<1x8x32xf32> to vector<8x32xf32>
    %87 = vector.extract_strided_slice %82 {offsets = [2, 0, 0], sizes = [1, 8, 32], strides = [1, 1, 1]} : vector<4x8x32xf32> to vector<1x8x32xf32>
    %88 = vector.shape_cast %87 : vector<1x8x32xf32> to vector<8x32xf32>
    %89 = vector.extract_strided_slice %82 {offsets = [3, 0, 0], sizes = [1, 8, 32], strides = [1, 1, 1]} : vector<4x8x32xf32> to vector<1x8x32xf32>
    %90 = vector.shape_cast %89 : vector<1x8x32xf32> to vector<8x32xf32>
    %91 = tpu.concatenate %84, %86, %88, %90 in 1 : vector<8x32xf32>, vector<8x32xf32>, vector<8x32xf32>, vector<8x32xf32> -> vector<8x128xf32>
    %92 = arith.truncf %91 : vector<8x128xf32> to vector<8x128xbf16>
    %c0_26 = arith.constant 0 : index
    %c0_27 = arith.constant 0 : index
    %c0_28 = arith.constant 0 : index
    %93 = vector.load %arg9[%c0_26, %c0_27, %c0_28] : memref<1x128x128xbf16, #tpu.memory_space<vmem>>, vector<1x128x128xbf16>
    %94 = vector.shape_cast %93 : vector<1x128x128xbf16> to vector<128x128xbf16>
    %cst_29 = arith.constant dense<0.000000e+00> : vector<8x128xf32>
    %95 = tpu.matmul %92, %94, %cst_29 {dimension_numbers = #tpu.dot_dimension_numbers<[1], [0], [0], [1], [0, 0, 1, 1], [], []>} : vector<8x128xbf16>, vector<128x128xbf16>, vector<8x128xf32> -> vector<8x128xf32>
    %c0_30 = arith.constant 0 : index
    %c0_31 = arith.constant 0 : index
    %c0_32 = arith.constant 0 : index
    %96 = vector.load %arg10[%c0_30, %c0_31, %c0_32] : memref<1x1x128xf32, #tpu.memory_space<vmem>>, vector<1x1x128xf32>
    %97 = vector.shape_cast %96 : vector<1x1x128xf32> to vector<1x128xf32>
    %98 = vector.broadcast %97 : vector<1x128xf32> to vector<8x128xf32>
    %99 = arith.addf %95, %98 : vector<8x128xf32>
    %100 = arith.addf %3, %99 : vector<8x128xf32>
    %c0_33 = arith.constant 0 : index
    %c0_34 = arith.constant 0 : index
    %c0_35 = arith.constant 0 : index
    %101 = vector.load %arg11[%c0_33, %c0_34, %c0_35] : memref<1x1x128xf32, #tpu.memory_space<vmem>>, vector<1x1x128xf32>
    %102 = vector.shape_cast %101 : vector<1x1x128xf32> to vector<1x128xf32>
    %c0_36 = arith.constant 0 : index
    %c0_37 = arith.constant 0 : index
    %c0_38 = arith.constant 0 : index
    %103 = vector.load %arg12[%c0_36, %c0_37, %c0_38] : memref<1x1x128xf32, #tpu.memory_space<vmem>>, vector<1x1x128xf32>
    %104 = vector.shape_cast %103 : vector<1x1x128xf32> to vector<1x128xf32>
    %cst_39 = arith.constant dense<0.000000e+00> : vector<8xf32>
    %105 = vector.multi_reduction <add>, %100, %cst_39 [1] : vector<8x128xf32> to vector<8xf32>
    %106 = vector.shape_cast %105 : vector<8xf32> to vector<8x1xf32>
    %cst_40 = arith.constant 1.280000e+02 : f32
    %107 = vector.broadcast %cst_40 : f32 to vector<8x1xf32>
    %108 = arith.divf %106, %107 : vector<8x1xf32>
    %109 = vector.broadcast %108 : vector<8x1xf32> to vector<8x128xf32>
    %110 = arith.subf %100, %109 : vector<8x128xf32>
    %111 = arith.mulf %110, %110 : vector<8x128xf32>
    %cst_41 = arith.constant dense<0.000000e+00> : vector<8xf32>
    %112 = vector.multi_reduction <add>, %111, %cst_41 [1] : vector<8x128xf32> to vector<8xf32>
    %113 = vector.shape_cast %112 : vector<8xf32> to vector<8x1xf32>
    %cst_42 = arith.constant 1.280000e+02 : f32
    %114 = vector.broadcast %cst_42 : f32 to vector<8x1xf32>
    %115 = arith.divf %113, %114 : vector<8x1xf32>
    %cst_43 = arith.constant 9.99999974E-6 : f32
    %116 = vector.broadcast %cst_43 : f32 to vector<8x1xf32>
    %117 = arith.addf %115, %116 : vector<8x1xf32>
    %118 = math.rsqrt %117 : vector<8x1xf32>
    %119 = vector.broadcast %118 : vector<8x1xf32> to vector<8x128xf32>
    %120 = arith.mulf %110, %119 : vector<8x128xf32>
    %121 = vector.broadcast %102 : vector<1x128xf32> to vector<8x128xf32>
    %122 = arith.mulf %120, %121 : vector<8x128xf32>
    %123 = vector.broadcast %104 : vector<1x128xf32> to vector<8x128xf32>
    %124 = arith.addf %122, %123 : vector<8x128xf32>
    %125 = arith.truncf %124 : vector<8x128xf32> to vector<8x128xbf16>
    %c0_44 = arith.constant 0 : index
    %c0_45 = arith.constant 0 : index
    %c0_46 = arith.constant 0 : index
    %126 = vector.load %arg13[%c0_44, %c0_45, %c0_46] : memref<1x128x512xbf16, #tpu.memory_space<vmem>>, vector<1x128x512xbf16>
    %127 = vector.shape_cast %126 : vector<1x128x512xbf16> to vector<128x512xbf16>
    %cst_47 = arith.constant dense<0.000000e+00> : vector<8x512xf32>
    %128 = tpu.matmul %125, %127, %cst_47 {dimension_numbers = #tpu.dot_dimension_numbers<[1], [0], [0], [1], [0, 0, 1, 1], [], []>} : vector<8x128xbf16>, vector<128x512xbf16>, vector<8x512xf32> -> vector<8x512xf32>
    %c0_48 = arith.constant 0 : index
    %c0_49 = arith.constant 0 : index
    %c0_50 = arith.constant 0 : index
    %129 = vector.load %arg14[%c0_48, %c0_49, %c0_50] : memref<1x1x512xf32, #tpu.memory_space<vmem>>, vector<1x1x512xf32>
    %130 = vector.shape_cast %129 : vector<1x1x512xf32> to vector<1x512xf32>
    %131 = vector.broadcast %130 : vector<1x512xf32> to vector<8x512xf32>
    %132 = arith.addf %128, %131 : vector<8x512xf32>
    %cst_51 = arith.constant 1.702000e+00 : f32
    %133 = vector.broadcast %cst_51 : f32 to vector<8x512xf32>
    %134 = arith.mulf %133, %132 : vector<8x512xf32>
    %135 = arith.negf %134 : vector<8x512xf32>
    %136 = math.exp %135 : vector<8x512xf32>
    %cst_52 = arith.constant 1.000000e+00 : f32
    %137 = vector.broadcast %cst_52 : f32 to vector<8x512xf32>
    %138 = arith.addf %137, %136 : vector<8x512xf32>
    %139 = arith.divf %137, %138 : vector<8x512xf32>
    %140 = arith.mulf %132, %139 : vector<8x512xf32>
    %141 = arith.truncf %140 : vector<8x512xf32> to vector<8x512xbf16>
    %c0_53 = arith.constant 0 : index
    %c0_54 = arith.constant 0 : index
    %c0_55 = arith.constant 0 : index
    %142 = vector.load %arg15[%c0_53, %c0_54, %c0_55] : memref<1x512x128xbf16, #tpu.memory_space<vmem>>, vector<1x512x128xbf16>
    %143 = vector.shape_cast %142 : vector<1x512x128xbf16> to vector<512x128xbf16>
    %cst_56 = arith.constant dense<0.000000e+00> : vector<8x128xf32>
    %144 = tpu.matmul %141, %143, %cst_56 {dimension_numbers = #tpu.dot_dimension_numbers<[1], [0], [0], [1], [0, 0, 1, 1], [], []>} : vector<8x512xbf16>, vector<512x128xbf16>, vector<8x128xf32> -> vector<8x128xf32>
    %c0_57 = arith.constant 0 : index
    %c0_58 = arith.constant 0 : index
    %c0_59 = arith.constant 0 : index
    %145 = vector.load %arg16[%c0_57, %c0_58, %c0_59] : memref<1x1x128xf32, #tpu.memory_space<vmem>>, vector<1x1x128xf32>
    %146 = vector.shape_cast %145 : vector<1x1x128xf32> to vector<1x128xf32>
    %147 = vector.broadcast %146 : vector<1x128xf32> to vector<8x128xf32>
    %148 = arith.addf %144, %147 : vector<8x128xf32>
    %149 = arith.addf %100, %148 : vector<8x128xf32>
    %c0_60 = arith.constant 0 : index
    %c0_61 = arith.constant 0 : index
    %150 = vector.load %arg18[%c0_60, %c0_61] : memref<8x128xf32, #tpu.memory_space<vmem>>, vector<8x128xf32>
    tpu.vector_store %arg18[%c0_60, %c0_61], %149 {strides = array<i32>} : memref<8x128xf32, #tpu.memory_space<vmem>>, vector<8x128xf32>,
    %c1_i32 = arith.constant 1 : i32
    %151 = arith.cmpi eq, %arg1, %c1_i32 : i32
    %152 = arith.extui %151 : i1 to i32
    %c0_i32_62 = arith.constant 0 : i32
    %153 = arith.cmpi ne, %152, %c0_i32_62 : i32
    scf.if %153 {
      %154 = arith.index_cast %arg0 : i32 to index
      %155 = memref.load %arg2[%154] : memref<2xi32, #tpu.memory_space<smem>>
      %156 = arith.index_cast %155 : i32 to index
      %c0_63 = arith.constant 0 : index
      %157 = vector.load %arg18[%156, %c0_63] : memref<8x128xf32, #tpu.memory_space<vmem>>, vector<1x128xf32>
      %c0_64 = arith.constant 0 : index
      %c0_65 = arith.constant 0 : index
      %c0_66 = arith.constant 0 : index
      %158 = vector.load %arg17[%c0_64, %c0_65, %c0_66] : memref<1x1x128xf32, #tpu.memory_space<vmem>>, vector<1x1x128xf32>
      %159 = vector.shape_cast %158 : vector<1x1x128xf32> to vector<1x128xf32>
      %160 = vector.shape_cast %157 : vector<1x128xf32> to vector<1x1x128xf32>
      tpu.vector_store %arg17[%c0_64, %c0_65, %c0_66], %160 {strides = array<i32>} : memref<1x1x128xf32, #tpu.memory_space<vmem>>, vector<1x1x128xf32>,
    } else {
    }
    return
  }
  func.func @transform_0(%arg0: i32, %arg1: i32, %arg2: memref<2xi32, #tpu.memory_space<smem>>) -> (i32, i32) {
    %c0_i32 = arith.constant 0 : i32
    %c0_i32_0 = arith.constant 0 : i32
    %c0_i32_1 = arith.constant 0 : i32
    return %c0_i32, %c0_i32_0 : i32, i32
  }
  func.func @transform_1(%arg0: i32, %arg1: i32, %arg2: memref<2xi32, #tpu.memory_space<smem>>) -> (i32, i32, i32) {
    %c0_i32 = arith.constant 0 : i32
    %c0_i32_0 = arith.constant 0 : i32
    %c0_i32_1 = arith.constant 0 : i32
    return %arg0, %c0_i32, %c0_i32_0 : i32, i32, i32
  }
  func.func @transform_2(%arg0: i32, %arg1: i32, %arg2: memref<2xi32, #tpu.memory_space<smem>>) -> (i32, i32, i32) {
    %c0_i32 = arith.constant 0 : i32
    %c0_i32_0 = arith.constant 0 : i32
    %c0_i32_1 = arith.constant 0 : i32
    return %arg1, %c0_i32, %c0_i32_0 : i32, i32, i32
  }
  func.func @transform_3(%arg0: i32, %arg1: i32, %arg2: memref<2xi32, #tpu.memory_space<smem>>) -> (i32, i32, i32) {
    %c0_i32 = arith.constant 0 : i32
    %c0_i32_0 = arith.constant 0 : i32
    %c0_i32_1 = arith.constant 0 : i32
    return %arg1, %c0_i32, %c0_i32_0 : i32, i32, i32
  }
  func.func @transform_4(%arg0: i32, %arg1: i32, %arg2: memref<2xi32, #tpu.memory_space<smem>>) -> (i32, i32, i32) {
    %c0_i32 = arith.constant 0 : i32
    %c0_i32_0 = arith.constant 0 : i32
    %c0_i32_1 = arith.constant 0 : i32
    return %arg1, %c0_i32, %c0_i32_0 : i32, i32, i32
  }
  func.func @transform_5(%arg0: i32, %arg1: i32, %arg2: memref<2xi32, #tpu.memory_space<smem>>) -> (i32, i32, i32) {
    %c0_i32 = arith.constant 0 : i32
    %c0_i32_0 = arith.constant 0 : i32
    %c0_i32_1 = arith.constant 0 : i32
    return %arg1, %c0_i32, %c0_i32_0 : i32, i32, i32
  }
  func.func @transform_6(%arg0: i32, %arg1: i32, %arg2: memref<2xi32, #tpu.memory_space<smem>>) -> (i32, i32, i32) {
    %c0_i32 = arith.constant 0 : i32
    %c0_i32_0 = arith.constant 0 : i32
    %c0_i32_1 = arith.constant 0 : i32
    return %arg1, %c0_i32, %c0_i32_0 : i32, i32, i32
  }
  func.func @transform_7(%arg0: i32, %arg1: i32, %arg2: memref<2xi32, #tpu.memory_space<smem>>) -> (i32, i32, i32) {
    %c0_i32 = arith.constant 0 : i32
    %c0_i32_0 = arith.constant 0 : i32
    %c0_i32_1 = arith.constant 0 : i32
    return %arg1, %c0_i32, %c0_i32_0 : i32, i32, i32
  }
  func.func @transform_8(%arg0: i32, %arg1: i32, %arg2: memref<2xi32, #tpu.memory_space<smem>>) -> (i32, i32, i32) {
    %c0_i32 = arith.constant 0 : i32
    %c0_i32_0 = arith.constant 0 : i32
    %c0_i32_1 = arith.constant 0 : i32
    return %arg1, %c0_i32, %c0_i32_0 : i32, i32, i32
  }
  func.func @transform_9(%arg0: i32, %arg1: i32, %arg2: memref<2xi32, #tpu.memory_space<smem>>) -> (i32, i32, i32) {
    %c0_i32 = arith.constant 0 : i32
    %c0_i32_0 = arith.constant 0 : i32
    %c0_i32_1 = arith.constant 0 : i32
    return %arg1, %c0_i32, %c0_i32_0 : i32, i32, i32
  }
  func.func @transform_10(%arg0: i32, %arg1: i32, %arg2: memref<2xi32, #tpu.memory_space<smem>>) -> (i32, i32, i32) {
    %c0_i32 = arith.constant 0 : i32
    %c0_i32_0 = arith.constant 0 : i32
    %c0_i32_1 = arith.constant 0 : i32
    return %arg1, %c0_i32, %c0_i32_0 : i32, i32, i32
  }
  func.func @transform_11(%arg0: i32, %arg1: i32, %arg2: memref<2xi32, #tpu.memory_space<smem>>) -> (i32, i32, i32) {
    %c0_i32 = arith.constant 0 : i32
    %c0_i32_0 = arith.constant 0 : i32
    %c0_i32_1 = arith.constant 0 : i32
    return %arg1, %c0_i32, %c0_i32_0 : i32, i32, i32
  }
  func.func @transform_12(%arg0: i32, %arg1: i32, %arg2: memref<2xi32, #tpu.memory_space<smem>>) -> (i32, i32, i32) {
    %c0_i32 = arith.constant 0 : i32
    %c0_i32_0 = arith.constant 0 : i32
    %c0_i32_1 = arith.constant 0 : i32
    return %arg1, %c0_i32, %c0_i32_0 : i32, i32, i32
  }
  func.func @transform_13(%arg0: i32, %arg1: i32, %arg2: memref<2xi32, #tpu.memory_space<smem>>) -> (i32, i32, i32) {
    %c0_i32 = arith.constant 0 : i32
    %c0_i32_0 = arith.constant 0 : i32
    %c0_i32_1 = arith.constant 0 : i32
    return %arg1, %c0_i32, %c0_i32_0 : i32, i32, i32
  }
  func.func @transform_14(%arg0: i32, %arg1: i32, %arg2: memref<2xi32, #tpu.memory_space<smem>>) -> (i32, i32, i32) {
    %c0_i32 = arith.constant 0 : i32
    %c0_i32_0 = arith.constant 0 : i32
    %c0_i32_1 = arith.constant 0 : i32
    return %arg0, %c0_i32, %c0_i32_0 : i32, i32, i32
  }
}

module attributes {stable_mosaic.version = 11 : i64} {
  func.func @_tail_kernel(%arg0: memref<2x128xf32, #tpu.memory_space<vmem>>, %arg1: memref<2x128xf32, #tpu.memory_space<vmem>>, %arg2: memref<1x128xf32, #tpu.memory_space<vmem>>, %arg3: memref<1x128xf32, #tpu.memory_space<vmem>>, %arg4: memref<128x128xbf16, #tpu.memory_space<vmem>>, %arg5: memref<1x128xf32, #tpu.memory_space<vmem>>, %arg6: memref<1x128xf32, #tpu.memory_space<vmem>>, %arg7: memref<128x128xbf16, #tpu.memory_space<vmem>>, %arg8: memref<1x1xf32, #tpu.memory_space<smem>>, %arg9: memref<2x2xf32, #tpu.memory_space<vmem>>) attributes {dimension_semantics = [], scalar_prefetch = 0 : i64, scratch_operands = 0 : i64, tpu.core_type = #tpu.core_type<tc>} {
    %c0 = arith.constant 0 : index
    %c0_0 = arith.constant 0 : index
    %0 = vector.load %arg0[%c0, %c0_0] : memref<2x128xf32, #tpu.memory_space<vmem>>, vector<2x128xf32>
    %c0_1 = arith.constant 0 : index
    %c0_2 = arith.constant 0 : index
    %1 = vector.load %arg2[%c0_1, %c0_2] : memref<1x128xf32, #tpu.memory_space<vmem>>, vector<1x128xf32>
    %c0_3 = arith.constant 0 : index
    %c0_4 = arith.constant 0 : index
    %2 = vector.load %arg3[%c0_3, %c0_4] : memref<1x128xf32, #tpu.memory_space<vmem>>, vector<1x128xf32>
    %cst = arith.constant dense<0.000000e+00> : vector<2xf32>
    %3 = vector.multi_reduction <add>, %0, %cst [1] : vector<2x128xf32> to vector<2xf32>
    %4 = vector.shape_cast %3 : vector<2xf32> to vector<2x1xf32>
    %cst_5 = arith.constant 1.280000e+02 : f32
    %5 = vector.broadcast %cst_5 : f32 to vector<2x1xf32>
    %6 = arith.divf %4, %5 : vector<2x1xf32>
    %7 = vector.broadcast %6 : vector<2x1xf32> to vector<2x128xf32>
    %8 = arith.subf %0, %7 : vector<2x128xf32>
    %9 = arith.mulf %8, %8 : vector<2x128xf32>
    %cst_6 = arith.constant dense<0.000000e+00> : vector<2xf32>
    %10 = vector.multi_reduction <add>, %9, %cst_6 [1] : vector<2x128xf32> to vector<2xf32>
    %11 = vector.shape_cast %10 : vector<2xf32> to vector<2x1xf32>
    %cst_7 = arith.constant 1.280000e+02 : f32
    %12 = vector.broadcast %cst_7 : f32 to vector<2x1xf32>
    %13 = arith.divf %11, %12 : vector<2x1xf32>
    %cst_8 = arith.constant 9.99999974E-6 : f32
    %14 = vector.broadcast %cst_8 : f32 to vector<2x1xf32>
    %15 = arith.addf %13, %14 : vector<2x1xf32>
    %16 = math.rsqrt %15 : vector<2x1xf32>
    %17 = vector.broadcast %16 : vector<2x1xf32> to vector<2x128xf32>
    %18 = arith.mulf %8, %17 : vector<2x128xf32>
    %19 = vector.broadcast %1 : vector<1x128xf32> to vector<2x128xf32>
    %20 = arith.mulf %18, %19 : vector<2x128xf32>
    %21 = vector.broadcast %2 : vector<1x128xf32> to vector<2x128xf32>
    %22 = arith.addf %20, %21 : vector<2x128xf32>
    %23 = arith.truncf %22 : vector<2x128xf32> to vector<2x128xbf16>
    %c0_9 = arith.constant 0 : index
    %c0_10 = arith.constant 0 : index
    %24 = vector.load %arg4[%c0_9, %c0_10] : memref<128x128xbf16, #tpu.memory_space<vmem>>, vector<128x128xbf16>
    %cst_11 = arith.constant dense<0.000000e+00> : vector<2x128xf32>
    %25 = tpu.matmul %23, %24, %cst_11 {dimension_numbers = #tpu.dot_dimension_numbers<[1], [0], [0], [1], [0, 0, 1, 1], [], []>} : vector<2x128xbf16>, vector<128x128xbf16>, vector<2x128xf32> -> vector<2x128xf32>
    %26 = arith.mulf %25, %25 : vector<2x128xf32>
    %cst_12 = arith.constant dense<0.000000e+00> : vector<2xf32>
    %27 = vector.multi_reduction <add>, %26, %cst_12 [1] : vector<2x128xf32> to vector<2xf32>
    %28 = vector.shape_cast %27 : vector<2xf32> to vector<2x1xf32>
    %cst_13 = arith.constant 9.99999996E-13 : f32
    %29 = vector.broadcast %cst_13 : f32 to vector<2x1xf32>
    %30 = arith.addf %28, %29 : vector<2x1xf32>
    %31 = math.rsqrt %30 : vector<2x1xf32>
    %32 = vector.broadcast %31 : vector<2x1xf32> to vector<2x128xf32>
    %33 = arith.mulf %25, %32 : vector<2x128xf32>
    %c0_14 = arith.constant 0 : index
    %c0_15 = arith.constant 0 : index
    %34 = vector.load %arg1[%c0_14, %c0_15] : memref<2x128xf32, #tpu.memory_space<vmem>>, vector<2x128xf32>
    %c0_16 = arith.constant 0 : index
    %c0_17 = arith.constant 0 : index
    %35 = vector.load %arg5[%c0_16, %c0_17] : memref<1x128xf32, #tpu.memory_space<vmem>>, vector<1x128xf32>
    %c0_18 = arith.constant 0 : index
    %c0_19 = arith.constant 0 : index
    %36 = vector.load %arg6[%c0_18, %c0_19] : memref<1x128xf32, #tpu.memory_space<vmem>>, vector<1x128xf32>
    %cst_20 = arith.constant dense<0.000000e+00> : vector<2xf32>
    %37 = vector.multi_reduction <add>, %34, %cst_20 [1] : vector<2x128xf32> to vector<2xf32>
    %38 = vector.shape_cast %37 : vector<2xf32> to vector<2x1xf32>
    %cst_21 = arith.constant 1.280000e+02 : f32
    %39 = vector.broadcast %cst_21 : f32 to vector<2x1xf32>
    %40 = arith.divf %38, %39 : vector<2x1xf32>
    %41 = vector.broadcast %40 : vector<2x1xf32> to vector<2x128xf32>
    %42 = arith.subf %34, %41 : vector<2x128xf32>
    %43 = arith.mulf %42, %42 : vector<2x128xf32>
    %cst_22 = arith.constant dense<0.000000e+00> : vector<2xf32>
    %44 = vector.multi_reduction <add>, %43, %cst_22 [1] : vector<2x128xf32> to vector<2xf32>
    %45 = vector.shape_cast %44 : vector<2xf32> to vector<2x1xf32>
    %cst_23 = arith.constant 1.280000e+02 : f32
    %46 = vector.broadcast %cst_23 : f32 to vector<2x1xf32>
    %47 = arith.divf %45, %46 : vector<2x1xf32>
    %cst_24 = arith.constant 9.99999974E-6 : f32
    %48 = vector.broadcast %cst_24 : f32 to vector<2x1xf32>
    %49 = arith.addf %47, %48 : vector<2x1xf32>
    %50 = math.rsqrt %49 : vector<2x1xf32>
    %51 = vector.broadcast %50 : vector<2x1xf32> to vector<2x128xf32>
    %52 = arith.mulf %42, %51 : vector<2x128xf32>
    %53 = vector.broadcast %35 : vector<1x128xf32> to vector<2x128xf32>
    %54 = arith.mulf %52, %53 : vector<2x128xf32>
    %55 = vector.broadcast %36 : vector<1x128xf32> to vector<2x128xf32>
    %56 = arith.addf %54, %55 : vector<2x128xf32>
    %57 = arith.truncf %56 : vector<2x128xf32> to vector<2x128xbf16>
    %c0_25 = arith.constant 0 : index
    %c0_26 = arith.constant 0 : index
    %58 = vector.load %arg7[%c0_25, %c0_26] : memref<128x128xbf16, #tpu.memory_space<vmem>>, vector<128x128xbf16>
    %cst_27 = arith.constant dense<0.000000e+00> : vector<2x128xf32>
    %59 = tpu.matmul %57, %58, %cst_27 {dimension_numbers = #tpu.dot_dimension_numbers<[1], [0], [0], [1], [0, 0, 1, 1], [], []>} : vector<2x128xbf16>, vector<128x128xbf16>, vector<2x128xf32> -> vector<2x128xf32>
    %60 = arith.mulf %59, %59 : vector<2x128xf32>
    %cst_28 = arith.constant dense<0.000000e+00> : vector<2xf32>
    %61 = vector.multi_reduction <add>, %60, %cst_28 [1] : vector<2x128xf32> to vector<2xf32>
    %62 = vector.shape_cast %61 : vector<2xf32> to vector<2x1xf32>
    %cst_29 = arith.constant 9.99999996E-13 : f32
    %63 = vector.broadcast %cst_29 : f32 to vector<2x1xf32>
    %64 = arith.addf %62, %63 : vector<2x1xf32>
    %65 = math.rsqrt %64 : vector<2x1xf32>
    %66 = vector.broadcast %65 : vector<2x1xf32> to vector<2x128xf32>
    %67 = arith.mulf %59, %66 : vector<2x128xf32>
    %c0_30 = arith.constant 0 : index
    %c0_31 = arith.constant 0 : index
    %68 = memref.load %arg8[%c0_30, %c0_31] : memref<1x1xf32, #tpu.memory_space<smem>>
    %cst_32 = arith.constant dense<0.000000e+00> : vector<2x2xf32>
    %69 = tpu.matmul %33, %67, %cst_32 {dimension_numbers = #tpu.dot_dimension_numbers<[1], [1], [0], [0], [0, 0, 1, 0], [], []>} : vector<2x128xf32>, vector<2x128xf32>, vector<2x2xf32> -> vector<2x2xf32>
    %70 = vector.broadcast %68 : f32 to vector<2x2xf32>
    %71 = arith.mulf %70, %69 : vector<2x2xf32>
    %c0_33 = arith.constant 0 : index
    %c0_34 = arith.constant 0 : index
    %72 = vector.load %arg9[%c0_33, %c0_34] : memref<2x2xf32, #tpu.memory_space<vmem>>, vector<2x2xf32>
    tpu.vector_store %arg9[%c0_33, %c0_34], %71 {strides = array<i32>} : memref<2x2xf32, #tpu.memory_space<vmem>>, vector<2x2xf32>,
    return
  }
}

</mosaic_0001>

<bundles_post_ra>
// kernel: frozen_clip_forward.4
= control target key start
LH: loop header
LB: loop body
LE: loop exit
PB: predicated region body
PF: predicated region fallthrough
CT: control target
= control target key end

     0   :  { %10 = vsyncpa [#allocation3], 0  ;;  %s338_s21 = smov [#allocation2]   ;;  %s339_s23 = smov 64   ;;  %s405_s0 = inlined_call_operand.vmem [shape: f32[16,192], index: 0, kind: input, shape index: {}]   ;;  %s406_s1 = inlined_call_operand.hbm [shape: bf16[192,128], index: 1, kind: input, shape index: {}]   ;;  %s407_s2 = inlined_call_operand.vmem [shape: f32[16,128], index: 2, kind: input, shape index: {}]   ;;  %s408_s3 = inlined_call_operand.vmem [shape: f32[1,128], index: 3, kind: input, shape index: {}]   ;;  %s409_s4 = inlined_call_operand.vmem [shape: f32[1,128], index: 4, kind: input, shape index: {}]   ;;  %s410_s5 = inlined_call_operand.vmem [shape: f32[16,128], index: 5, kind: output, shape index: {}]  }
   0x1   :  { %s17_s20 = sshll.u32 %s406_s1, 4  ;;  %s19_s22 = sshll.u32 %s338_s21, 4  ;;  %s18_s20 = int_to_ptr.hbm [resolvable:$true] %s17_s20  ;;  %s20_s22 = int_to_ptr.vmem [resolvable:$true] %s19_s22 }
   0x2   :  { %s340_s24 = smov 4  }
   0x3   :  { %25 = dma.hbm_to_vmem [thread:$0]  %s18_s20, 1536, %s20_s22, [#allocation3], %s339_s23, %s339_s23, %s340_s24  }
   0x4   :  { %336 = dma.done.wait [#allocation3], 1536  }
   0x5   :  { %337 = vsyncadd [#allocation3], 4294965760  ;;  %v295_v0 = vld [vmem:[#allocation2 + $0x38] sm:$0xff]  ;;  %v294_v2 = vld [vmem:[#allocation2 + $0x30] sm:$0xff]  ;;  %vm141_vm0 = vcmask 523264   ;;  %v341_v28 = vmov 128.0  }
   0x6   :  { %v299_v1 = vld [vmem:[#allocation2 + $0x58] sm:$0xff]  ;;  %145 = vmatpush.bf16.msra.mxu0 %v295_v0  ;;  %v298_v3 = vld [vmem:[#allocation2 + $0x50] sm:$0xff]  ;;  %v293_v4 = vld [vmem:[#allocation2 + $0x28] sm:$0xff]  ;;  %306 = vrcp.f32 %v341_v28 }
   0x7   :  { %163 = vmatpush.bf16.msra.mxu1 %v299_v1  ;;  %v297_v5 = vld [vmem:[#allocation2 + $0x48] sm:$0xff]  ;;  %v292_v6 = vld [vmem:[#allocation2 + $0x20] sm:$0xff]  ;;  %v40_v9 = vld [vmem:[%s405_s0 + $0x18] sm:$0xff] }
   0x8   :  { %v296_v7 = vld [vmem:[#allocation2 + $0x40] sm:$0xff]  ;;  %v38_v8 = vld [vmem:[%s405_s0 + $0x8] sm:$0xff]  ;;  %v291_v10 = vld [vmem:[#allocation2 + $0x18] sm:$0xff] }
   0x9   :  { %v42_v11 = vpack.c.bf16 %v40_v9, %v38_v8  ;;  %v290_v12 = vld [vmem:[#allocation2 + $0x10] sm:$0xff]  ;;  %v289_v13 = vld [vmem:[#allocation2 + $0x8] sm:$0xff]  ;;  %v288_v14 = vld [vmem:[#allocation2] sm:$0xff] }
   0xa   :  { %146 = vmatpush.bf16.msra.mxu0 %v294_v2  ;;  %v37_v15 = vld [vmem:[%s405_s0] sm:$0xff]  ;;  %v39_v16 = vld [vmem:[%s405_s0 + $0x10] sm:$0xff]  ;;  %v68_v23 = vld [vmem:[%s407_s2 + $0x8] sm:$0xff] }
   0xb   :  { %164 = vmatpush.bf16.msra.mxu1 %v298_v3  ;;  %v41_v17 = vpack.c.bf16 %v39_v16, %v37_v15  ;;  %v67_v18 = vld [vmem:[%s407_s2] sm:$0xff] }
   0xc   :  { %v307_v29 = vpop.eup %306  ;;  %v304_v57 = vld [vmem:[%s408_s3] ss:$0 sm:$0xff] }
   0xd   :  { %v180_v30 = vmul.f32 128.0, %v307_v29  ;;  %vm184_vm1 = vweird.f32 %v307_v29  ;;  %v305_v60 = vld [vmem:[%s409_s4] ss:$0 sm:$0xff] }
   0xe   :  { %147 = vmatpush.bf16.msra.mxu0 %v293_v4 }
   0xf   :  { %165 = vmatpush.bf16.msra.mxu1 %v297_v5  ;;  %v181_v31 = vsub.f32 1.0, %v180_v30 }
  0x11   :  { %v182_v32 = vmul.f32 %v307_v29, %v181_v31 }
  0x12   :  { %148 = vmatpush.bf16.msra.mxu0 %v292_v6 }
  0x13   :  { %166 = vmatpush.bf16.msra.mxu1 %v296_v7  ;;  %v183_v33 = vadd.f32 %v307_v29, %v182_v32 }
  0x15   :  { %v185_v34 = vsel %vm184_vm1, %v307_v29, %v183_v33 }
  0x16   :  { %149 = vmatpush.bf16.msra.mxu0 %v291_v10  ;;  %287 = vmatmul.msk.bf16.vlgmr.msra.gmra.mxu1 %vm141_vm0, %v42_v11 }
  0x1a   :  { %150 = vmatpush.bf16.msra.mxu0 %v290_v12 }
  0x1e   :  { %151 = vmatpush.bf16.msra.mxu0 %v289_v13 }
  0x22   :  { %152 = vmatpush.bf16.msra.mxu0 %v288_v14 }
  0x25   :  { %153 = vmatmul.bf16.vlgmr.msra.gmra.mxu0 %v41_v17 }
  0x93   :  { %v168_v19 = vpop.f32.mrf.mxu1 }
  0x9b   :  { %v170_v26 = vpop.f32.mrf.mxu1 }
  0xa2   :  { %v154_v20 = vpop.f32.mrf.mxu0 }
  0xa3   :  { %v155_v21 = vadd.f32 %v154_v20, %v67_v18 }
  0xa5   :  { %v169_v22 = vadd.f32 %v168_v19, %v155_v21 }
  0xa7   :  { %175 = vadd.xlane.f32.xlu0 %v169_v22 }
  0xaa   :  { %v156_v24 = vpop.f32.mrf.mxu0 }
  0xab   :  { %v157_v25 = vadd.f32 %v156_v24, %v68_v23 }
  0xad   :  { %v171_v27 = vadd.f32 %v170_v26, %v157_v25 }
  0xaf   :  { %177 = vadd.xlane.f32.xlu0 %v171_v27 }
 0x11a   :  { %v176_v35 = vpop.xlane.xlu0 %175 }
 0x11b   :  { %v186_v36 = vmul.f32 %v185_v34, %v176_v35 }
 0x11d   :  { %v188_v37 = vsub.f32 %v169_v22, %v186_v36 }
 0x11f   :  { %v190_v38 = vmul.f32 %v188_v37, %v188_v37 }
 0x121   :  { %192 = vadd.xlane.f32.xlu1 %v190_v38 }
 0x122   :  { %v178_v39 = vpop.xlane.xlu0 %177 }
 0x123   :  { %v187_v40 = vmul.f32 %v185_v34, %v178_v39 }
 0x125   :  { %v189_v41 = vsub.f32 %v171_v27, %v187_v40 }
 0x127   :  { %v191_v42 = vmul.f32 %v189_v41, %v189_v41 }
 0x129   :  { %194 = vadd.xlane.f32.xlu1 %v191_v42 }
 0x194   :  { %v193_v43 = vpop.xlane.xlu1 %192 }
 0x195   :  { %v196_v44 = vmul.f32 %v193_v43, %v185_v34 }
 0x197   :  { %v198_v45 = vadd.f32 1e-05, %v196_v44 }
 0x199   :  { %308 = vrsqrt.f32 %v198_v45  ;;  %vm206_vm3 = vweird.f32 %v198_v45 }
 0x19c   :  { %v195_v46 = vpop.xlane.xlu1 %194 }
 0x19d   :  { %v197_v47 = vmul.f32 %v195_v46, %v185_v34 }
 0x19f   :  { %v309_v48 = vpop.eup %308  ;;  %v199_v49 = vadd.f32 1e-05, %v197_v47 }
 0x1a0   :  { %v201_v50 = vmul.f32 %v309_v48, %v198_v45  ;;  %vm207_vm2 = vweird.f32 %v309_v48 }
 0x1a1   :  { %310 = vrsqrt.f32 %v199_v49  ;;  %vm208_vm4 = vmor %vm206_vm3, %vm207_vm2  ;;  %vm216_vm6 = vweird.f32 %v199_v49 }
 0x1a2   :  { %v202_v51 = vmul.f32 %v309_v48, %v201_v50 }
 0x1a4   :  { %v203_v52 = vmul.f32 0.5, %v202_v51 }
 0x1a6   :  { %v204_v53 = vsub.f32 1.5, %v203_v52 }
 0x1a7   :  { %v311_v54 = vpop.eup %310 }
 0x1a8   :  { %v205_v55 = vmul.f32 %v309_v48, %v204_v53  ;;  %v211_v56 = vmul.f32 %v311_v54, %v199_v49  ;;  %vm217_vm5 = vweird.f32 %v311_v54 }
 0x1a9   :  { %vm218_vm7 = vmor %vm216_vm6, %vm217_vm5 }
 0x1aa   :  { %v209_v58 = vsel %vm208_vm4, %v309_v48, %v205_v55  ;;  %v212_v59 = vmul.f32 %v311_v54, %v211_v56 }
 0x1ab   :  { %v220_v61 = vmul.f32 %v209_v58, %v188_v37 }
 0x1ac   :  { %v213_v62 = vmul.f32 0.5, %v212_v59 }
 0x1ad   :  { %v225_v63 = vmul.f32 %v304_v57, %v220_v61 }
 0x1ae   :  { %v214_v0 = vsub.f32 1.5, %v213_v62 }
 0x1af   :  { %v230_v1 = vadd.f32 %v305_v60, %v225_v63 }
 0x1b0   :  { %v215_v2 = vmul.f32 %v311_v54, %v214_v0 }
 0x1b1   :  { %232 = vst [vmem:[%s410_s5] sm:$0xff] %v230_v1 }
 0x1b2   :  { %v219_v3 = vsel %vm218_vm7, %v311_v54, %v215_v2 }
 0x1b3   :  { %v221_v4 = vmul.f32 %v219_v3, %v189_v41 }
 0x1b5   :  { %v226_v5 = vmul.f32 %v304_v57, %v221_v4 }
 0x1b7   :  { %v231_v6 = vadd.f32 %v305_v60, %v226_v5 }
 0x1b9   :  { %233 = vst [vmem:[%s410_s5 + $0x8] sm:$0xff] %v231_v6 }
 0x1ba   :  { %238 = vsyncpa [#allocation3], 1 }

// kernel: frozen_clip_forward.7
= control target key start
LH: loop header
LB: loop body
LE: loop exit
PB: predicated region body
PF: predicated region fallthrough
CT: control target
= control target key end

     0   :  { %15 = vsyncpa [#allocation4], 0  ;;  %s465_s12 = smov [#allocation3]   ;;  %s466_s14 = smov 64   ;;  %s586_s0 = inlined_call_operand.vmem [shape: f32[2,128], index: 0, kind: input, shape index: {}]   ;;  %s587_s1 = inlined_call_operand.vmem [shape: f32[2,128], index: 1, kind: input, shape index: {}]   ;;  %s588_s2 = inlined_call_operand.vmem [shape: f32[1,128], index: 2, kind: input, shape index: {}, may-alias: {2,5}]   ;;  %s589_s3 = inlined_call_operand.vmem [shape: f32[1,128], index: 3, kind: input, shape index: {}, may-alias: {3,6}]   ;;  %s590_s4 = inlined_call_operand.vmem [shape: bf16[128,128], index: 4, kind: input, shape index: {}]   ;;  %s591_s5 = inlined_call_operand.vmem [shape: f32[1,128], index: 5, kind: input, shape index: {}, may-alias: {2,5}]   ;;  %s592_s6 = inlined_call_operand.vmem [shape: f32[1,128], index: 6, kind: input, shape index: {}, may-alias: {3,6}]   ;;  %s593_s7 = inlined_call_operand.hbm [shape: bf16[128,128], index: 7, kind: input, shape index: {}]   ;;  %s594_s8 = inlined_call_operand.<no memory space> [shape: f32[1,1], index: 8, kind: input, shape index: {}]   ;;  %s595_s9 = inlined_call_operand.vmem [shape: f32[2,2], index: 9, kind: output, shape index: {}]  }
   0x1   :  { %s34_s11 = sshll.u32 %s593_s7, 4  ;;  %s36_s13 = sshll.u32 %s465_s12, 4  ;;  %s35_s11 = int_to_ptr.hbm [resolvable:$true] %s34_s11  ;;  %s37_s13 = int_to_ptr.vmem [resolvable:$true] %s36_s13 }
   0x2   :  { %s467_s15 = smov 4  }
   0x3   :  { %42 = dma.hbm_to_vmem [thread:$0]  %s35_s11, 1024, %s37_s13, [#allocation4], %s466_s14, %s466_s14, %s467_s15  }
   0x4   :  { %463 = dma.done.wait [#allocation4], 1024  }
   0x5   :  { %464 = vsyncadd [#allocation4], 4294966272  ;;  %vm52_vm0 = vcmask 1041408   ;;  %v184_v0 = vld [vmem:[%s587_s1] sm:$0x3]  ;;  %v468_v4 = vmov 128.0  }
   0x6   :  { %v187_v1 = vsel %vm52_vm0, %v184_v0, 0.0  ;;  %v49_v2 = vld [vmem:[%s586_s0] sm:$0x3]  ;;  %429 = vrcp.f32 %v468_v4  ;;  %v420_v7 = vld [vmem:[#allocation3 + $0x38] sm:$0xff]  ;;  %v419_v22 = vld [vmem:[#allocation3 + $0x30] sm:$0xff]  ;;  %vm334_vm14 = vcmask 9216  }
   0x7   :  { %188 = vadd.xlane.f32.xlu0 %v187_v1  ;;  %v53_v3 = vsel %vm52_vm0, %v49_v2, 0.0  ;;  %282 = vmatpush.bf16.msra.mxu1 %v420_v7  ;;  %v412_v23 = vld [vmem:[%s590_s4 + $0x38] sm:$0xff]  ;;  %v418_v24 = vld [vmem:[#allocation3 + $0x28] sm:$0xff]  ;;  %v411_v25 = vld [vmem:[%s590_s4 + $0x30] sm:$0xff] }
   0x8   :  { %155 = vmatpush.bf16.msra.mxu0 %v412_v23  ;;  %v417_v26 = vld [vmem:[#allocation3 + $0x20] sm:$0xff]  ;;  %v410_v27 = vld [vmem:[%s590_s4 + $0x28] sm:$0xff]  ;;  %v416_v28 = vld [vmem:[#allocation3 + $0x18] sm:$0xff] }
   0x9   :  { %v409_v29 = vld [vmem:[%s590_s4 + $0x20] sm:$0xff]  ;;  %v415_v30 = vld [vmem:[#allocation3 + $0x10] sm:$0xff]  ;;  %v408_v31 = vld [vmem:[%s590_s4 + $0x18] sm:$0xff] }
   0xa   :  { %v414_v32 = vld [vmem:[#allocation3 + $0x8] sm:$0xff]  ;;  %v407_v33 = vld [vmem:[%s590_s4 + $0x10] sm:$0xff]  ;;  %v413_v34 = vld [vmem:[#allocation3] sm:$0xff] }
   0xb   :  { %283 = vmatpush.bf16.msra.mxu1 %v419_v22  ;;  %v406_v35 = vld [vmem:[%s590_s4 + $0x8] sm:$0xff]  ;;  %v405_v37 = vld [vmem:[%s590_s4] sm:$0xff] }
   0xc   :  { %v430_v5 = vpop.eup %429  ;;  %156 = vmatpush.bf16.msra.mxu0 %v411_v25  ;;  %v425_v51 = vld [vmem:[%s591_s5] ss:$0 sm:$0xff] }
   0xd   :  { %v57_v6 = vmul.f32 128.0, %v430_v5  ;;  %vm61_vm1 = vweird.f32 %v430_v5  ;;  %v426_v55 = vld [vmem:[%s592_s6] ss:$0 sm:$0xff] }
   0xe   :  { %v427_v62 = vld [vmem:[%s588_s2] ss:$0 sm:$0xff] }
   0xf   :  { %54 = vadd.xlane.f32.xlu0 %v53_v3  ;;  %v58_v8 = vsub.f32 1.0, %v57_v6  ;;  %284 = vmatpush.bf16.msra.mxu1 %v418_v24  ;;  %v428_v1 = vld [vmem:[%s589_s3] ss:$0 sm:$0xff] }
  0x10   :  { %157 = vmatpush.bf16.msra.mxu0 %v410_v27 }
  0x11   :  { %v59_v9 = vmul.f32 %v430_v5, %v58_v8 }
  0x13   :  { %v60_v10 = vadd.f32 %v430_v5, %v59_v9  ;;  %285 = vmatpush.bf16.msra.mxu1 %v417_v26 }
  0x14   :  { %158 = vmatpush.bf16.msra.mxu0 %v409_v29 }
  0x15   :  { %v62_v11 = vsel %vm61_vm1, %v430_v5, %v60_v10 }
  0x17   :  { %286 = vmatpush.bf16.msra.mxu1 %v416_v28 }
  0x18   :  { %159 = vmatpush.bf16.msra.mxu0 %v408_v31 }
  0x1b   :  { %287 = vmatpush.bf16.msra.mxu1 %v415_v30 }
  0x1c   :  { %160 = vmatpush.bf16.msra.mxu0 %v407_v33  ;;  %v332_v33 = vstv %s594_s8 }
  0x1f   :  { %288 = vmatpush.bf16.msra.mxu1 %v414_v32 }
  0x20   :  { %161 = vmatpush.bf16.msra.mxu0 %v406_v35 }
  0x23   :  { %289 = vmatpush.bf16.msra.mxu1 %v413_v34 }
  0x24   :  { %162 = vmatpush.bf16.msra.mxu0 %v405_v37 }
  0x7a   :  { %v189_v12 = vpop.xlane.xlu0 %188 }
  0x7b   :  { %v190_v13 = vmul.f32 %v189_v12, %v62_v11 }
  0x7d   :  { %v530_v14 = vsub.f32 %v184_v0, %v190_v13 }
  0x7f   :  { %v192_v15 = vmul.f32 %v530_v14, %v530_v14 }
  0x81   :  { %v193_v16 = vsel %vm52_vm0, %v192_v15, 0.0 }
  0x82   :  { %194 = vadd.xlane.f32.xlu1 %v193_v16  ;;  %v55_v17 = vpop.xlane.xlu0 %54 }
  0x83   :  { %v63_v18 = vmul.f32 %v62_v11, %v55_v17 }
  0x85   :  { %v535_v19 = vsub.f32 %v49_v2, %v63_v18 }
  0x87   :  { %v65_v20 = vmul.f32 %v535_v19, %v535_v19 }
  0x89   :  { %v66_v21 = vsel %vm52_vm0, %v65_v20, 0.0 }
  0x8a   :  { %67 = vadd.xlane.f32.xlu1 %v66_v21 }
  0xf5   :  { %v195_v36 = vpop.xlane.xlu1 %194 }
  0xf6   :  { %v196_v38 = vmul.f32 %v195_v36, %v62_v11 }
  0xf8   :  { %v197_v39 = vadd.f32 1e-05, %v196_v38 }
  0xfa   :  { %431 = vrsqrt.f32 %v197_v39  ;;  %vm204_vm3 = vweird.f32 %v197_v39 }
  0xfd   :  { %v68_v40 = vpop.xlane.xlu1 %67 }
  0xfe   :  { %v69_v41 = vmul.f32 %v68_v40, %v62_v11 }
 0x100   :  { %v432_v42 = vpop.eup %431  ;;  %v70_v43 = vadd.f32 1e-05, %v69_v41 }
 0x101   :  { %v199_v44 = vmul.f32 %v432_v42, %v197_v39  ;;  %vm205_vm2 = vweird.f32 %v432_v42 }
 0x102   :  { %433 = vrsqrt.f32 %v70_v43  ;;  %vm206_vm4 = vmor %vm204_vm3, %vm205_vm2  ;;  %vm77_vm6 = vweird.f32 %v70_v43 }
 0x103   :  { %v200_v45 = vmul.f32 %v432_v42, %v199_v44 }
 0x105   :  { %v201_v46 = vmul.f32 0.5, %v200_v45 }
 0x107   :  { %v202_v47 = vsub.f32 1.5, %v201_v46 }
 0x108   :  { %v434_v48 = vpop.eup %433 }
 0x109   :  { %v203_v49 = vmul.f32 %v432_v42, %v202_v47  ;;  %v72_v50 = vmul.f32 %v434_v48, %v70_v43  ;;  %vm78_vm5 = vweird.f32 %v434_v48 }
 0x10a   :  { %vm79_vm7 = vmor %vm77_vm6, %vm78_vm5 }
 0x10b   :  { %v73_v52 = vmul.f32 %v434_v48, %v72_v50  ;;  %v207_v53 = vsel %vm206_vm4, %v432_v42, %v203_v49 }
 0x10c   :  { %v208_v54 = vmul.f32 %v207_v53, %v530_v14 }
 0x10d   :  { %v74_v56 = vmul.f32 0.5, %v73_v52 }
 0x10e   :  { %v212_v57 = vmul.f32 %v425_v51, %v208_v54 }
 0x10f   :  { %v75_v58 = vsub.f32 1.5, %v74_v56 }
 0x110   :  { %v216_v59 = vadd.f32 %v426_v55, %v212_v57 }
 0x111   :  { %v76_v60 = vmul.f32 %v434_v48, %v75_v58 }
 0x112   :  { %v217_v61 = vpack.c.bf16 %v216_v59, %v216_v59 }
 0x113   :  { %v80_v63 = vsel %vm79_vm7, %v434_v48, %v76_v60 }
 0x114   :  { %290 = vmatmul.bf16.vlgmr.msra.gmra.mxu1 %v217_v61  ;;  %v81_v0 = vmul.f32 %v80_v63, %v535_v19 }
 0x116   :  { %v85_v2 = vmul.f32 %v427_v62, %v81_v0 }
 0x118   :  { %v89_v3 = vadd.f32 %v428_v1, %v85_v2 }
 0x11a   :  { %v90_v4 = vpack.c.bf16 %v89_v3, %v89_v3 }
 0x11c   :  { %163 = vmatmul.bf16.vlgmr.msra.gmra.mxu0 %v90_v4 }
 0x191   :  { %v291_v5 = vpop.f32.mrf.mxu1 }
 0x192   :  { %v295_v6 = vmul.f32 %v291_v5, %v291_v5 }
 0x194   :  { %v296_v7 = vsel %vm52_vm0, %v295_v6, 0.0 }
 0x195   :  { %297 = vadd.xlane.f32.xlu2 %v296_v7 }
 0x199   :  { %v164_v8 = vpop.f32.mrf.mxu0  ;;  %v293_v9 = vpop.f32.mrf.mxu1 }
 0x19a   :  { %v168_v10 = vmul.f32 %v164_v8, %v164_v8 }
 0x19c   :  { %v169_v11 = vsel %vm52_vm0, %v168_v10, 0.0 }
 0x19d   :  { %170 = vadd.xlane.f32.xlu2 %v169_v11 }
 0x1a1   :  { %v166_v12 = vpop.f32.mrf.mxu0 }
 0x208   :  { %v298_v13 = vpop.xlane.xlu2 %297 }
 0x209   :  { %v299_v14 = vadd.f32 1e-12, %v298_v13 }
 0x20b   :  { %435 = vrsqrt.f32 %v299_v14  ;;  %vm306_vm9 = vweird.f32 %v299_v14 }
 0x210   :  { %v171_v15 = vpop.xlane.xlu2 %170 }
 0x211   :  { %v436_v16 = vpop.eup %435  ;;  %v172_v17 = vadd.f32 1e-12, %v171_v15 }
 0x212   :  { %v301_v18 = vmul.f32 %v436_v16, %v299_v14  ;;  %vm307_vm8 = vweird.f32 %v436_v16 }
 0x213   :  { %437 = vrsqrt.f32 %v172_v17  ;;  %vm308_vm10 = vmor %vm306_vm9, %vm307_vm8  ;;  %vm179_vm12 = vweird.f32 %v172_v17 }
 0x214   :  { %v302_v19 = vmul.f32 %v436_v16, %v301_v18 }
 0x216   :  { %v303_v20 = vmul.f32 0.5, %v302_v19 }
 0x218   :  { %v304_v21 = vsub.f32 1.5, %v303_v20 }
 0x219   :  { %v438_v22 = vpop.eup %437 }
 0x21a   :  { %v174_v23 = vmul.f32 %v438_v22, %v172_v17  ;;  %v305_v24 = vmul.f32 %v436_v16, %v304_v21  ;;  %vm180_vm11 = vweird.f32 %v438_v22 }
 0x21b   :  { %vm181_vm13 = vmor %vm179_vm12, %vm180_vm11 }
 0x21c   :  { %v175_v25 = vmul.f32 %v438_v22, %v174_v23  ;;  %v309_v26 = vsel %vm308_vm10, %v436_v16, %v305_v24 }
 0x21d   :  { %v310_v27 = vmul.f32 %v309_v26, %v291_v5 }
 0x21e   :  { %v176_v28 = vmul.f32 0.5, %v175_v25 }
 0x21f   :  { %327 = vmatpush.xpose.msra.mxu2 %v310_v27 }
 0x220   :  { %v177_v29 = vsub.f32 1.5, %v176_v28 }
 0x222   :  { %v178_v30 = vmul.f32 %v438_v22, %v177_v29 }
 0x224   :  { %v182_v31 = vsel %vm181_vm13, %v438_v22, %v178_v30 }
 0x225   :  { %v183_v32 = vmul.f32 %v182_v31, %v164_v8 }
 0x227   :  { %328 = vmatmul.f32.vlgmr.msra.gmra.mxu2 %v183_v32 }
 0x2aa   :  { %v329_v34 = vpop.f32.mrf.mxu2 }
 0x2ab   :  { %v333_v35 = vmul.f32 %v332_v33, %v329_v34 }
 0x2ad   :  { %335 = vst.msk [vmem:[%s595_s9] sm:$0x3] %vm334_vm14, %v333_v35 }
 0x2ae   :  { %340 = vsyncpa [#allocation4], 1 }

// kernel: frozen_clip_forward.5
= control target key start
LH: loop header
LB: loop body
LE: loop exit
PB: predicated region body
PF: predicated region fallthrough
CT: control target
= control target key end

     0   :  { %s3146_s21 = smov [#allocation4]   ;;  %s3747_s0 = inlined_call_operand.vmem [shape: s32[2], index: 0, kind: input, shape index: {}]   ;;  %s3748_s1 = inlined_call_operand.vmem [shape: f32[8,8], index: 1, kind: input, shape index: {}]   ;;  %s3749_s2 = inlined_call_operand.vmem [shape: f32[2,8,128], index: 2, kind: input, shape index: {}]   ;;  %s3750_s3 = inlined_call_operand.vmem [shape: f32[2,1,128], index: 3, kind: input, shape index: {}, may-alias: {3,9}]   ;;  %s3751_s4 = inlined_call_operand.vmem [shape: f32[2,1,128], index: 4, kind: input, shape index: {}, may-alias: {4,10}]   ;;  %s3752_s5 = inlined_call_operand.hbm [shape: bf16[2,128,384], index: 5, kind: input, shape index: {}]   ;;  %s3753_s6 = inlined_call_operand.vmem [shape: f32[2,1,384], index: 6, kind: input, shape index: {}]   ;;  %s3754_s7 = inlined_call_operand.hbm [shape: bf16[2,128,128], index: 7, kind: input, shape index: {}]   ;;  %s3755_s8 = inlined_call_operand.vmem [shape: f32[2,1,128], index: 8, kind: input, shape index: {}]   ;;  %s3756_s9 = inlined_call_operand.vmem [shape: f32[2,1,128], index: 9, kind: input, shape index: {}, may-alias: {3,9}]   ;;  %s3757_s10 = inlined_call_operand.vmem [shape: f32[2,1,128], index: 10, kind: input, shape index: {}, may-alias: {4,10}]   ;;  %s3758_s11 = inlined_call_operand.hbm [shape: bf16[2,128,512], index: 11, kind: input, shape index: {}]   ;;  %s3759_s12 = inlined_call_operand.vmem [shape: f32[2,1,512], index: 12, kind: input, shape index: {}]   ;;  %s3760_s13 = inlined_call_operand.hbm [shape: bf16[2,512,128], index: 13, kind: input, shape index: {}]   ;;  %s3761_s14 = inlined_call_operand.vmem [shape: f32[2,1,128], index: 14, kind: input, shape index: {}]   ;;  %s3762_s15 = inlined_call_operand.vmem [shape: f32[2,1,128], index: 15, kind: output, shape index: {}]  }
   0x1   :  { %3772 = sst [smem:[#allocation24_spill]] %s3748_s1  ;;  %s21_s20 = sshll.u32 %s3747_s0, 4  ;;  %s22_s20 = int_to_ptr.vmem [resolvable:$true] %s21_s20 }
   0x2   :  { %3773 = sst [smem:[#allocation25_spill]] %s3749_s2 }
   0x3   :  { %3774 = sst [smem:[#allocation26_spill]] %s3750_s3 }
   0x4   :  { %3775 = sst [smem:[#allocation27_spill]] %s3751_s4 }
   0x5   :  { %3776 = sst [smem:[#allocation28_spill]] %s3752_s5 }
   0x6   :  { %3777 = sst [smem:[#allocation29_spill]] %s3753_s6 }
   0x7   :  { %3778 = sst [smem:[#allocation30_spill]] %s3754_s7 }
   0x8   :  { %3779 = sst [smem:[#allocation31_spill]] %s3755_s8 }
   0x9   :  { %3780 = sst [smem:[#allocation32_spill]] %s3756_s9 }
   0xa   :  { %3781 = sst [smem:[#allocation33_spill]] %s3757_s10 }
   0xb   :  { %3782 = sst [smem:[#allocation34_spill]] %s3758_s11 }
   0xc   :  { %3783 = sst [smem:[#allocation35_spill]] %s3759_s12 }
   0xd   :  { %3784 = sst [smem:[#allocation36_spill]] %s3760_s13 }
   0xe   :  { %3785 = sst [smem:[#allocation37_spill]] %s3761_s14 }
   0xf   :  { %3786 = sst [smem:[#allocation38_spill]] %s3762_s15 }
  0x10   :  { %24 = dma.vmem_to_smem %s22_s20, 16, %s3146_s21, [#allocation3] }
  0x11   :  { %3100 = dma.done.wait [#allocation3], 16 }
  0x12   :  { %3101 = vsyncadd [#allocation3], 4294967280 }
  0x13   :  { %27 = sfence }
  0x14   :  { %28 = vsyncpa [#allocation6], 0 }
  0x15   :  { %30 = vsyncpa [#allocation6 + $0x1], 0 }
  0x16   :  { %31 = vsyncpa [#allocation8], 0 }
  0x17   :  { %33 = vsyncpa [#allocation8 + $0x1], 0 }
  0x18   :  { %34 = vsyncpa [#allocation11], 0 }
  0x19   :  { %36 = vsyncpa [#allocation11 + $0x1], 0  ;;  %s3240_s22 = smov 0   ;;  %s3242_s23 = smov 0  }
  0x1a   :  { %s3244_s24 = smov 0   ;;  %s3246_s25 = smov 0  }
  0x1b   :  { %s3248_s0 = smov 0   ;;  %s3250_s26 = smov 0  }
  0x1c   :  { %s3252_s27 = smov 0   ;;  %s3254_s28 = smov 0  }
  0x1d LB: > { %3787 = sst [smem:[#allocation16_spill]] %s3120_s23  ;;  %s3764_s29 = sadd.s32 4294967295, %s3144_s28   ;;  %s3144_s28 = sphi %s3254_s28, %s42_s28   ;;  %s3140_s27 = sphi %s3252_s27, %s3838_s27   ;;  %s3136_s26 = sphi %s3250_s26, %s3837_s26   ;;  %s3132_s0 = sphi %s3248_s0, %s3836_s0   ;;  %s3128_s25 = sphi %s3246_s25, %s3835_s25   ;;  %s3124_s24 = sphi %s3244_s24, %s3834_s24   ;;  %s3120_s23 = sphi %s3242_s23, %s3833_s23   ;;  %s3116_s22 = sphi %s3240_s22, %s3832_s22  }
  0x1e   : > { %3788 = sst [smem:[#allocation17_spill]] %s3124_s24  ;;  %s51_s30 = sadd.s32 1, %s3136_s26 }
  0x1f   : > { %3789 = sst [smem:[#allocation18_spill]] %s3136_s26  ;;  %p52_p0 = scmp.ge.s32.totalorder %s51_s30, 2 }
  0x20   : > { %3790 = sst [smem:[#allocation19_spill]] %s3140_s27  ;;  %s54_s16 = sadd.s32 1, %s3140_s27 }
  0x21   : > { %3791 = sst [smem:[#allocation20_spill]] %s3144_s28  ;;  %s160_s17 = sadd.s32 1, %s3124_s24 }
  0x22   : > { %p167_p1 = scmp.ne.s32.totalorder %s3124_s24, %s3120_s23  ;;  %s3840_s30 = smov (%p52_p0, %s51_s30), 0 }
  0x23   : > { %3792 = sst [smem:[#allocation21_spill]] %s3840_s30  ;;  %s3842_s16 = smov (!%p52_p0, %s54_s16), %s3140_s27 }
  0x24   : > { %s157_s18 = ssub.s32 %s3136_s26, %s3840_s30  ;;  %p168_p2 = scmp.eq.s32.totalorder %s3144_s28, 0 }
  0x25   : > { %p56_p3 = scmp.ge.s32.totalorder %s3842_s16, 2  ;;  %p158_p4 = scmp.eq.s32.totalorder %s157_s18, 0 }
  0x26   : > { %p169_p5 = por %p168_p2, %p167_p1  ;;  %p173_p6 = scmp.ne.s32.totalorder %s3120_s23, %s3116_s22 }
  0x27   : > { %s3844_s16 = smov (%p56_p3, %s3842_s16), 0  ;;  %p174_p7 = scmp.eq.s32.totalorder %s3764_s29, 0 }
  0x28   : > { %3793 = sst [smem:[#allocation22_spill]] %s3844_s16  ;;  %p2816_p8 = scmp.lt.s32.totalorder %s3144_s28, 4 }
  0x29   : > { %s3294_s19 = scalar_select %p158_p4, %s3124_s24, %s160_s17  }
  0x2a   : > { %s3300_s20 = sand.u32 1, %s3124_s24   ;;  %p3302_p9 = por %p174_p7, %p173_p6 }
  0x2b   : > { %3794 = sst [smem:[#allocation23_spill]] %s3294_s19  ;;  %s508_s30 = sand.u32 1, %s3144_s28  }
  0x2c   : > { %p3307_p10 = pnand %p2816_p8, %p169_p5  ;;  %s2277_s22 = sshll.u32 %s3300_s20, 6 }
  0x2d   : > { %s2692_s17 = sshll.u32 %s3136_s26, 6  ;;  %s3797_s7 = sld [smem:[#allocation30_spill]] }
  0x2e   : > { %s512_s19 = scalar_lea.vmem [#allocation7], %s2277_s22  ;;  %p2286_p11 = scmp.ge.s32.totalorder %s3144_s28, 1 }
  0x2f   : > { %s520_s24 = sshll.u32 %s512_s19, 4  ;;  %s3317_s12 = scalar_lea.sflag [#allocation8], %s508_s30  ;;  %s521_s24 = int_to_ptr.vmem [resolvable:$true] %s520_s24 }
  0x30   : > { %s3767_s14 = smov 64   ;;  %s3768_s10 = smov 4  }
  0x31   : > { %p603_p12 = scmp.lt.s32.totalorder %s3144_s28, 5  ;;  %s2791_s29 = smul.u32 192, %s3300_s20 }
  0x32   : > { %s2792_s16 = smul.u32 192, %s3136_s26  ;;  %s3799_s5 = sld [smem:[#allocation28_spill]] }
  0x33   : > { %s517_s27 = scalar_lea.hbm %s3797_s7, %s2692_s17  ;;  %p3326_p13 = pnand %p2286_p11, %p603_p12 }
  0x34   : > { %s518_s1 = sshll.u32 %s517_s27, 4  ;;  %s483_s17 = scalar_lea.vmem [#allocation5], %s2791_s29  ;;  %s519_s1 = int_to_ptr.hbm [resolvable:$true] %s518_s1 }
  0x35   : > { %2809 = dma.hbm_to_vmem [thread:$0]  (!%p3307_p10), %s519_s1, 1024, %s521_s24, %s3317_s12, %s3767_s14, %s3767_s14, %s3768_s10  }
  0x36   : > { %s491_s7 = sshll.u32 %s483_s17, 4  ;;  %s2280_s1 = sshll.u32 %s3300_s20, 8  ;;  %s492_s7 = int_to_ptr.vmem [resolvable:$true] %s491_s7 }
  0x37   : > { %s480_s24 = scalar_lea.sflag [#allocation6], %s3300_s20  ;;  %s3149_s14 = smov 192  }
  0x38   : > { %s488_s22 = scalar_lea.hbm %s3799_s5, %s2792_s16  ;;  %s3150_s10 = smov 12  }
  0x39   : > { %s489_s6 = sshll.u32 %s488_s22, 4  ;;  %s2693_s9 = sshll.u32 %s3136_s26, 8  ;;  %s490_s6 = int_to_ptr.hbm [resolvable:$true] %s489_s6 }
  0x3a   : > { %2806 = dma.hbm_to_vmem [thread:$0]  (!%p3307_p10), %s490_s6, 3072, %s492_s7, %s480_s24, %s3149_s14, %s3149_s14, %s3150_s10  }
  0x3b   : > { %s3800_s11 = sld [smem:[#allocation34_spill]]  ;;  %s552_s29 = scalar_lea.vmem [#allocation9], %s2280_s1 }
  0x3c   : > { %s560_s16 = sshll.u32 %s552_s29, 4  ;;  %s3151_s22 = smov 256   ;;  %s561_s16 = int_to_ptr.vmem [resolvable:$true] %s560_s16 }
  0x3d   : > { %s3152_s17 = smov 16   ;;  %s3801_s13 = sld [smem:[#allocation36_spill]] }
  0x3e   : > { %s581_s10 = scalar_lea.vmem [#allocation10], %s2280_s1  ;;  %s578_s4 = scalar_lea.sflag [#allocation11], %s3300_s20 }
  0x3f   : > { %s589_s14 = sshll.u32 %s581_s10, 4  ;;  %s3802_s8 = smov 4   ;;  %s590_s14 = int_to_ptr.vmem [resolvable:$true] %s589_s14 }
  0x40   : > { %s3803_s24 = smov 64  }
  0x41   : > { %s557_s19 = scalar_lea.hbm %s3800_s11, %s2693_s9 }
  0x42   : > { %s558_s30 = sshll.u32 %s557_s19, 4  ;;  %607 = sbr.rel (%p3326_p13) target bundleno = 2016 (0x7e0), region = 76  ;;  %s559_s30 = int_to_ptr.hbm [resolvable:$true] %s558_s30 }
  0x43   : > { %2812 = dma.hbm_to_vmem [thread:$0]  (!%p3307_p10), %s559_s30, 4096, %s561_s16, %s3317_s12, %s3151_s22, %s3151_s22, %s3152_s17  }
  0x44   : > { %s586_s6 = scalar_lea.hbm %s3801_s13, %s2693_s9  ;;  %s609_s12 = sand.u32 (!%p3326_p13), 1, %s3120_s23  }
  0x45   : > { %s587_s7 = sshll.u32 %s586_s6, 4  ;;  %s2793_s19 = smul.u32 (!%p3326_p13), 192, %s609_s12  ;;  %s588_s7 = int_to_ptr.hbm [resolvable:$true] %s587_s7 }
  0x46   : > { %2815 = dma.hbm_to_vmem [thread:$0]  (!%p3307_p10), %s588_s7, 4096, %s590_s14, %s578_s4, %s3803_s24, %s3803_s24, %s3802_s8  }
  0x47   : > { %s610_s3 = scalar_lea.sflag [#allocation6], %s609_s12  ;;  %s3358_s5 = scalar_lea.vmem [#allocation5], %s2793_s19 }
  0x48   : > { %3103 = dma.done.wait (%p3302_p9), %s610_s3, 3072  }
  0x49   : > { %3105 = vsyncadd (%p3302_p9), %s610_s3, 4294964224  ;;  %s3804_s9 = sadd.s32 4294967295, %s3144_s28   ;;  %s2287_s18 = sshll.u32 %s609_s12, 6 }
  0x4a   : > { %s619_s20 = sand.u32 1, %s3804_s9   ;;  %s3366_s27 = scalar_lea.vmem [#allocation7], %s2287_s18 }
  0x4b   : > { %s620_s1 = scalar_lea.sflag [#allocation8], %s619_s20 }
  0x4c   : > { %3107 = dma.done.wait (%p3302_p9), %s620_s1, 5120  }
  0x4d   : > { %3109 = vsyncadd (%p3302_p9), %s620_s1, 4294962176  ;;  %s2288_s29 = sshll.u32 %s609_s12, 8  ;;  %s640_s30 = scalar_lea.sflag [#allocation11], %s609_s12 }
  0x4e   : > { %s3372_s16 = scalar_lea.vmem [#allocation9], %s2288_s29  ;;  %s3374_s22 = scalar_lea.vmem [#allocation10], %s2288_s29 }
  0x4f   : > { %3111 = dma.done.wait (%p3302_p9), %s640_s30, 4096  }
  0x50   : > { %3113 = vsyncadd (%p3302_p9), %s640_s30, 4294963200  ;;  %p732_p0 = scmp.lt.s32.totalorder %s3132_s0, 1  ;;  %p736_p1 = scmp.lt.s32.totalorder %s3128_s25, 1 }
  0x51   : > { %s3806_s2 = sld [smem:[#allocation25_spill]]  ;;  %p2292_p2 = scmp.ne.s32.totalorder %s3128_s25, 0 }
  0x52   : > { %s3383_s17 = scalar_select %p732_p0, %s3132_s0, 1 }
  0x53   : > { %s3386_s6 = scalar_select %p736_p1, %s3128_s25, 1 }
  0x54   : > { %s2290_s21 = sshll.u32 %s3383_s17, 3  ;;  %s3810_s10 = sld [smem:[#allocation32_spill]] }
  0x55   : > { %s2794_s30 = smul.u32 3, %s3386_s6  ;;  %s3812_s3 = sld [smem:[#allocation33_spill]] }
  0x56   : > { %s2291_s20 = sshll.u32 %s3386_s6, 2  ;;  %s3813_s29 = sld [smem:[#allocation37_spill]] }
  0x57   : > { %s735_s24 = scalar_lea.vmem %s3806_s2, %s2290_s21  ;;  %s3811_s21 = sld [smem:[#allocation29_spill]] }
  0x58   : > { %s3814_s26 = sld [smem:[#allocation35_spill]] }
  0x5a   : > { %s751_s14 = scalar_lea.vmem %s3810_s10, %s3386_s6  ;;  %769 = sbr.rel (%p2292_p2) target bundleno = 97 (0x61), region = 96 }
  0x5b   : > { %s754_s9 = scalar_lea.vmem %s3812_s3, %s3386_s6 }
  0x5c   : > { %s761_s2 = scalar_lea.vmem %s3813_s29, %s3386_s6 }
  0x5d   : > { %s3416_s8 = scalar_lea.vmem %s3811_s21, %s2794_s30 }
  0x5e   : > { %s3430_s23 = scalar_lea.vmem %s3814_s26, %s2291_s20 }
  0x5f   : > { %v770_v0 = vld [vmem:[%s735_s24] sm:$0xff] }
  0x60   : > { %771 = vst [vmem:[#allocation2] sm:$0xff] %v770_v0 }
  0x61 PF: > { %v3153_v2 = vmov 128.0   ;;  %v2379_v3 = vld [vmem:[%s3358_s5 + $0xa8] sm:$0xf]  ;;  %v2717_v4 = vld [vmem:[%s3358_s5 + $0xb0] sm:$0xf0]  ;;  %s3817_s7 = sld [smem:[#allocation27_spill]] }
  0x62   : > { %2898 = vrcp.f32 %v3153_v2  ;;  %v2716_v5 = vld [vmem:[%s3358_s5 + $0xac] sm:$0xf]  ;;  %v2380_v6 = vor.u32 %v2717_v4, %v2379_v3  ;;  %v2381_v7 = vld [vmem:[%s3358_s5 + $0xb4] sm:$0xf0]  ;;  %v2387_v8 = vld [vmem:[%s3358_s5 + $0xb0] sm:$0xf] }
  0x63   : > { %v2718_v9 = vld [vmem:[%s3358_s5 + $0xb8] sm:$0xf0]  ;;  %v2384_v10 = vor.u32 %v2716_v5, %v2381_v7  ;;  %v2367_v22 = vld [vmem:[%s3358_s5 + $0x90] sm:$0xf]  ;;  %v2713_v24 = vld [vmem:[%s3358_s5 + $0x94] sm:$0xf] }
  0x64   : > { %v2388_v11 = vor.u32 %v2718_v9, %v2387_v8  ;;  %979 = vmatpush.bf16.msra.mxu0 %v2380_v6  ;;  %v2714_v23 = vld [vmem:[%s3358_s5 + $0x98] sm:$0xf0]  ;;  %v2369_v26 = vld [vmem:[%s3358_s5 + $0x9c] sm:$0xf0]  ;;  %v2375_v27 = vld [vmem:[%s3358_s5 + $0x98] sm:$0xf] }
  0x65   : > { %992 = vmatpush.bf16.msra.mxu1 %v2384_v10  ;;  %v2368_v25 = vor.u32 %v2714_v23, %v2367_v22  ;;  %v2715_v28 = vld [vmem:[%s3358_s5 + $0xa0] sm:$0xf0]  ;;  %v2372_v29 = vor.u32 %v2713_v24, %v2369_v26  ;;  %v2355_v31 = vld [vmem:[%s3358_s5 + $0x78] sm:$0xf]  ;;  %v2710_v33 = vld [vmem:[%s3358_s5 + $0x7c] sm:$0xf] }
  0x66   : > { %1005 = vmatpush.bf16.msra.mxu2 %v2388_v11  ;;  %v2376_v30 = vor.u32 %v2715_v28, %v2375_v27  ;;  %v2711_v32 = vld [vmem:[%s3358_s5 + $0x80] sm:$0xf0]  ;;  %v2357_v35 = vld [vmem:[%s3358_s5 + $0x84] sm:$0xf0]  ;;  %v2363_v36 = vld [vmem:[%s3358_s5 + $0x80] sm:$0xf] }
  0x67   : > { %v3433_v1 = vld [vmem:[#allocation2] sm:$0xff]  ;;  %v2356_v34 = vor.u32 %v2711_v32, %v2355_v31  ;;  %v2712_v37 = vld [vmem:[%s3358_s5 + $0x88] sm:$0xf0]  ;;  %v2360_v38 = vor.u32 %v2710_v33, %v2357_v35  ;;  %v2343_v40 = vld [vmem:[%s3358_s5 + $0x60] sm:$0xf]  ;;  %s3818_s10 = scalar_lea.vmem %s3817_s7, %s3386_s6  ;;  %vm1038_vm4 = vcmask 261120  }
  0x68   : > { %775 = vadd.xlane.f32.xlu0 %v3433_v1  ;;  %v2899_v12 = vpop.eup %2898  ;;  %980 = vmatpush.bf16.msra.mxu0 %v2368_v25  ;;  %v2364_v39 = vor.u32 %v2712_v37, %v2363_v36  ;;  %v2708_v41 = vld [vmem:[%s3358_s5 + $0x68] sm:$0xf0]  ;;  %v2707_v42 = vld [vmem:[%s3358_s5 + $0x64] sm:$0xf]  ;;  %v2345_v44 = vld [vmem:[%s3358_s5 + $0x6c] sm:$0xf0] }
  0x69   : > { %v778_v13 = vmul.f32 128.0, %v2899_v12  ;;  %vm782_vm0 = vweird.f32 %v2899_v12  ;;  %993 = vmatpush.bf16.msra.mxu1 %v2372_v29  ;;  %v2344_v43 = vor.u32 %v2708_v41, %v2343_v40  ;;  %v2351_v45 = vld [vmem:[%s3358_s5 + $0x68] sm:$0xf]  ;;  %v2709_v46 = vld [vmem:[%s3358_s5 + $0x70] sm:$0xf0]  ;;  %v2348_v47 = vor.u32 %v2707_v42, %v2345_v44  ;;  %s3154_s4 = smov 32  }
  0x6a   : > { %1006 = vmatpush.bf16.msra.mxu2 %v2376_v30  ;;  %v2352_v48 = vor.u32 %v2709_v46, %v2351_v45  ;;  %v2331_v49 = vld [vmem:[%s3358_s5 + $0x48] sm:$0xf]  ;;  %v2705_v50 = vld [vmem:[%s3358_s5 + $0x50] sm:$0xf0]  ;;  %v2704_v51 = vld [vmem:[%s3358_s5 + $0x4c] sm:$0xf] }
  0x6b   : > { %v779_v14 = vsub.f32 1.0, %v778_v13  ;;  %v2332_v52 = vor.u32 %v2705_v50, %v2331_v49  ;;  %v2333_v53 = vld [vmem:[%s3358_s5 + $0x54] sm:$0xf0]  ;;  %v2339_v54 = vld [vmem:[%s3358_s5 + $0x50] sm:$0xf]  ;;  %s3155_s21 = smov 96  }
  0x6c   : > { %981 = vmatpush.bf16.msra.mxu0 %v2356_v34  ;;  %v2706_v55 = vld [vmem:[%s3358_s5 + $0x58] sm:$0xf0]  ;;  %v2336_v56 = vor.u32 %v2704_v51, %v2333_v53  ;;  %v2319_v58 = vld [vmem:[%s3358_s5 + $0x30] sm:$0xf]  ;;  %v2701_v60 = vld [vmem:[%s3358_s5 + $0x34] sm:$0xf] }
  0x6d   : > { %v780_v15 = vmul.f32 %v2899_v12, %v779_v14  ;;  %994 = vmatpush.bf16.msra.mxu1 %v2360_v38  ;;  %v2340_v57 = vor.u32 %v2706_v55, %v2339_v54  ;;  %v2702_v59 = vld [vmem:[%s3358_s5 + $0x38] sm:$0xf0]  ;;  %v2321_v62 = vld [vmem:[%s3358_s5 + $0x3c] sm:$0xf0]  ;;  %v2327_v63 = vld [vmem:[%s3358_s5 + $0x38] sm:$0xf] }
  0x6e   : > { %1007 = vmatpush.bf16.msra.mxu2 %v2364_v39  ;;  %v2320_v61 = vor.u32 %v2702_v59, %v2319_v58  ;;  %v2703_v0 = vld [vmem:[%s3358_s5 + $0x40] sm:$0xf0]  ;;  %v2324_v2 = vor.u32 %v2701_v60, %v2321_v62  ;;  %v2307_v4 = vld [vmem:[%s3358_s5 + $0x18] sm:$0xf]  ;;  %v2698_v6 = vld [vmem:[%s3358_s5 + $0x1c] sm:$0xf] }
  0x6f   : > { %v781_v16 = vadd.f32 %v2899_v12, %v780_v15  ;;  %v2328_v3 = vor.u32 %v2703_v0, %v2327_v63  ;;  %v2699_v5 = vld [vmem:[%s3358_s5 + $0x20] sm:$0xf0]  ;;  %v2309_v8 = vld [vmem:[%s3358_s5 + $0x24] sm:$0xf0]  ;;  %v2315_v9 = vld [vmem:[%s3358_s5 + $0x20] sm:$0xf] }
  0x70   : > { %982 = vmatpush.bf16.msra.mxu0 %v2344_v43  ;;  %v2308_v7 = vor.u32 %v2699_v5, %v2307_v4  ;;  %v2700_v10 = vld [vmem:[%s3358_s5 + $0x28] sm:$0xf0]  ;;  %v2312_v11 = vor.u32 %v2698_v6, %v2309_v8  ;;  %v2295_v13 = vld [vmem:[%s3358_s5] sm:$0xf]  ;;  %v2695_v15 = vld [vmem:[%s3358_s5 + $0x4] sm:$0xf] }
  0x71   : > { %v3442_v17 = vsel %vm782_vm0, %v2899_v12, %v781_v16  ;;  %995 = vmatpush.bf16.msra.mxu1 %v2348_v47  ;;  %v2316_v12 = vor.u32 %v2700_v10, %v2315_v9  ;;  %v2696_v14 = vld [vmem:[%s3358_s5 + $0x8] sm:$0xf0]  ;;  %v2893_v36 = vld [vmem:[%s3818_s10] ss:$0 sm:$0xff]  ;;  %vm1176_vm5 = vcmask 1043456   ;;  %s3819_s3 = sld [smem:[#allocation24_spill]] }
  0x72   : > { %1008 = vmatpush.bf16.msra.mxu2 %v2352_v48  ;;  %v2296_v16 = vor.u32 %v2696_v14, %v2295_v13  ;;  %v843_v40 = vld [vmem:[%s3416_s8] sm:$0x7]  ;;  %s3156_s8 = smov 64   ;;  %vm1124_vm6 = vcmask 64512   ;;  %vm1263_vm7 = vcmask 523264   ;;  %vm1265_vm8 = vcmask 785408  }
  0x73   : > { %v845_v41 = vperm.slane %v843_v40, 0  ;;  %v846_v42 = vperm.slane %v843_v40, 1  ;;  %s3820_s18 = sld [smem:[#allocation31_spill]]  ;;  %p2689_p3 = scmp.ne.s32.totalorder %s3128_s25, 1 }
  0x74   : > { %983 = vmatpush.bf16.msra.mxu0 %v2332_v52 }
  0x75   : > { %996 = vmatpush.bf16.msra.mxu1 %v2336_v56 }
  0x76   : > { %1009 = vmatpush.bf16.msra.mxu2 %v2340_v57 }
  0x77   : > { %v1119_v4 = vld [vmem:[%s3819_s3] sm:$0xff] }
  0x78   : > { %984 = vmatpush.bf16.msra.mxu0 %v2320_v61 }
  0x79   : > { %997 = vmatpush.bf16.msra.mxu1 %v2324_v2  ;;  %s3821_s1 = scalar_lea.vmem %s3820_s18, %s3386_s6 }
  0x7a   : > { %1010 = vmatpush.bf16.msra.mxu2 %v2328_v3 }
  0x7c   : > { %985 = vmatpush.bf16.msra.mxu0 %v2308_v7 }
  0x7d   : > { %998 = vmatpush.bf16.msra.mxu1 %v2312_v11 }
  0x7e   : > { %1011 = vmatpush.bf16.msra.mxu2 %v2316_v12 }
  0x80   : > { %986 = vmatpush.bf16.msra.mxu0 %v2296_v16 }
  0xdb   : > { %v776_v18 = vpop.xlane.xlu0 %775 }
  0xdc   : > { %v784_v19 = vmul.f32 %v3442_v17, %v776_v18  ;;  %v2297_v18 = vld [vmem:[%s3358_s5 + $0xc] sm:$0xf0] }
  0xdd   : > { %v2300_v22 = vor.u32 %v2695_v15, %v2297_v18 }
  0xde   : > { %v3446_v20 = vsub.f32 %v3433_v1, %v784_v19  ;;  %v2303_v19 = vld [vmem:[%s3358_s5 + $0x8] sm:$0xf] }
  0xdf   : > { %999 = vmatpush.bf16.msra.mxu1 %v2300_v22 }
  0xe0   : > { %v786_v21 = vmul.f32 %v3446_v20, %v3446_v20 }
  0xe2   : > { %787 = vadd.xlane.f32.xlu0 %v786_v21  ;;  %v2697_v21 = vld [vmem:[%s3358_s5 + $0x10] sm:$0xf0]  ;;  %s3815_s5 = sld [smem:[#allocation26_spill]] }
  0xe3   : > { %v2304_v23 = vor.u32 %v2697_v21, %v2303_v19 }
  0xe5   : > { %1012 = vmatpush.bf16.msra.mxu2 %v2304_v23 }
  0xe8   : > { %s3816_s24 = scalar_lea.vmem %s3815_s5, %s3386_s6 }
  0xe9   : > { %v2892_v33 = vld [vmem:[%s3816_s24] ss:$0 sm:$0xff]  ;;  %s3829_s24 = sld [smem:[#allocation38_spill]] (!%p2689_p3) }
  0xef   : > { %s3830_s29 = scalar_lea.vmem (!%p2689_p3), %s3829_s24, %s3383_s17 }
 0x155   : > { %v788_v24 = vpop.xlane.xlu0 %787 }
 0x156   : > { %v789_v25 = vmul.f32 %v788_v24, %v3442_v17 }
 0x158   : > { %v790_v26 = vadd.f32 1e-05, %v789_v25 }
 0x15a   : > { %2900 = vrsqrt.f32 %v790_v26  ;;  %vm797_vm2 = vweird.f32 %v790_v26 }
 0x160   : > { %v2901_v27 = vpop.eup %2900 }
 0x161   : > { %v792_v28 = vmul.f32 %v2901_v27, %v790_v26  ;;  %vm798_vm1 = vweird.f32 %v2901_v27 }
 0x162   : > { %vm799_vm3 = vmor %vm797_vm2, %vm798_vm1 }
 0x163   : > { %v793_v29 = vmul.f32 %v2901_v27, %v792_v28 }
 0x165   : > { %v794_v30 = vmul.f32 0.5, %v793_v29 }
 0x167   : > { %v795_v31 = vsub.f32 1.5, %v794_v30 }
 0x169   : > { %v796_v32 = vmul.f32 %v2901_v27, %v795_v31 }
 0x16b   : > { %v800_v34 = vsel %vm799_vm3, %v2901_v27, %v796_v32 }
 0x16c   : > { %v801_v35 = vmul.f32 %v800_v34, %v3446_v20  ;;  %v847_v20 = vperm.slane %v843_v40, 2 }
 0x16e   : > { %v805_v37 = vmul.f32 %v2892_v33, %v801_v35 }
 0x170   : > { %v809_v38 = vadd.f32 %v2893_v36, %v805_v37 }
 0x172   : > { %v810_v39 = vpack.c.bf16 %v809_v38, %v809_v38 }
 0x174   : > { %987 = vmatmul.bf16.vlgmr.msra.gmra.mxu0 %v810_v39  ;;  %1000 = vmatmul.bf16.vlgmr.msra.gmra.mxu1 %v810_v39 }
 0x175   : > { %1013 = vmatmul.bf16.vlgmr.msra.gmra.mxu2 %v810_v39 }
 0x1f1   : > { %v988_v43 = vpop.f32.mrf.mxu0  ;;  %v1001_v44 = vpop.f32.mrf.mxu1 }
 0x1f2   : > { %v989_v45 = vadd.f32 %v988_v43, %v845_v41  ;;  %v1002_v46 = vadd.f32 %v1001_v44, %v846_v42 }
 0x1f4   : > { %v1018_v47 = vpack.c.bf16 %v1002_v46, %v989_v45 }
 0x1f6   : > { %1025 = vrot.lane.b32.xlu2 %v1018_v47, %s3154_s4  ;;  %1021 = vrot.lane.b32.xlu1 %v1018_v47, %s3155_s21  ;;  %v1027_v48 = vrot.slane %v1018_v47, 4 }
 0x1f8   : > { %v1014_v49 = vpop.f32.mrf.mxu2  ;;  %v1043_v50 = vsel %vm1038_vm4, %v1027_v48, 0 }
 0x1f9   : > { %v1015_v51 = vadd.f32 %v1014_v49, %v847_v20  ;;  %v990_v52 = vpop.f32.mrf.mxu0  ;;  %v1003_v53 = vpop.f32.mrf.mxu1  ;;  %1052 = vmatpush.bf16.xpose.msra.mxu3 %v1043_v50 }
 0x1fb   : > { %v3508_v54 = vpack.c.bf16 %v1015_v51, %v1015_v51 }
 0x1fd   : > { %v1178_v55 = vsel %vm1176_vm5, %v3508_v54, 0 }
 0x1fe   : > { %1187 = vmatpush.bf16.msrb.mxu2 %v1178_v55  ;;  %1023 = vrot.lane.b32.xlu1 %v1018_v47, %s3156_s8 }
 0x200   : > { %v1016_v56 = vpop.f32.mrf.mxu2  ;;  %2389 = vmatmul.msk.bf16.vlgmr.msra.gmra.mxu3 %vm1038_vm4, %v1018_v47 }
 0x250   : > { %v1026_v57 = vpop.permute.xlu2 %1025 }
 0x251   : > { %v1030_v58 = vrot.slane %v1026_v57, 4 }
 0x253   : > { %v1100_v59 = vsel %vm1038_vm4, %v1030_v58, 0 }
 0x254   : > { %1109 = vmatpush.bf16.xpose.msrb.mxu0 %v1100_v59 }
 0x25b   : > { %2392 = vmatmul.msk.bf16.vlgmr.msrb.gmra.mxu0 %vm1038_vm4, %v1026_v57 }
 0x268   : > { %v1022_v60 = vpop.permute.xlu1 %1021 }
 0x269   : > { %v1028_v61 = vrot.slane %v1022_v60, 4 }
 0x26b   : > { %v1062_v62 = vsel %vm1038_vm4, %v1028_v61, 0 }
 0x26c   : > { %1071 = vmatpush.bf16.xpose.msrb.mxu3 %v1062_v62 }
 0x270   : > { %v1024_v63 = vpop.permute.xlu1 %1023 }
 0x271   : > { %v1029_v0 = vrot.slane %v1024_v63, 4 }
 0x273   : > { %2390 = vmatmul.msk.bf16.vlgmr.msrb.gmra.mxu3 %vm1038_vm4, %v1022_v60  ;;  %v1081_v2 = vsel %vm1038_vm4, %v1029_v0, 0 }
 0x274   : > { %1090 = vmatpush.bf16.xpose.msra.mxu3 %v1081_v2 }
 0x283   : > { %v1054_v3 = vpop.f32.mrf.mxu3  ;;  %2391 = vmatmul.msk.bf16.vlgmr.msra.gmra.mxu3 %vm1038_vm4, %v1024_v63 }
 0x284   : > { %v1115_v5 = vmul.f32 0.17677669, %v1054_v3 }
 0x286   : > { %v1120_v6 = vadd.f32 %v1119_v4, %v1115_v5 }
 0x288   : > { %v1125_v7 = vsel %vm1124_vm6, %v1120_v6, -inf }
 0x289   : > { %1126 = vmax.xlane.f32.xlu2 %v1125_v7 }
 0x28b   : > { %v1056_v8 = vpop.f32.mrf.mxu3 }
 0x2a1   : > { %1032 = vrot.lane.b32.xlu2 %v3508_v54, %s3155_s21 }
 0x2d8   : > { %v1111_v9 = vpop.f32.mrf.mxu0 }
 0x2d9   : > { %v1118_v14 = vmul.f32 0.17677669, %v1111_v9 }
 0x2db   : > { %v1123_v22 = vadd.f32 %v1119_v4, %v1118_v14  ;;  %v2724_v14 = vld [vmem:[%s3366_s27 + $0x28] sm:$0xff] }
 0x2dd   : > { %v1134_v23 = vsel %vm1124_vm6, %v1123_v22, -inf }
 0x2e0   : > { %v1113_v10 = vpop.f32.mrf.mxu0 }
 0x2f6   : > { %v1073_v11 = vpop.f32.mrf.mxu3 }
 0x2f7   : > { %v1116_v12 = vmul.f32 0.17677669, %v1073_v11 }
 0x2f9   : > { %v1121_v13 = vadd.f32 %v1119_v4, %v1116_v12  ;;  %v2726_v12 = vld [vmem:[%s3366_s27 + $0x38] sm:$0xff] }
 0x2fa   : > { %1336 = vmatpush.bf16.msrb.mxu1 %v2726_v12 }
 0x2fb   : > { %v1128_v15 = vsel %vm1124_vm6, %v1121_v13, -inf }
 0x2fc   : > { %v1127_v16 = vpop.xlane.xlu2 %1126  ;;  %1129 = vmax.xlane.f32.xlu0 %v1128_v15  ;;  %v2723_v15 = vld [vmem:[%s3366_s27 + $0x20] sm:$0xff] }
 0x2fd   : > { %v1137_v18 = vsub.f32 %v1120_v6, %v1127_v16  ;;  %v2722_v16 = vld [vmem:[%s3366_s27 + $0x18] sm:$0xff] }
 0x2fe   : > { %v1075_v19 = vpop.f32.mrf.mxu3 }
 0x2ff   : > { %v1141_v21 = vmul.f32 1.442695, %v1137_v18  ;;  %v2721_v18 = vld [vmem:[%s3366_s27 + $0x10] sm:$0xff]  ;;  %v2720_v19 = vld [vmem:[%s3366_s27 + $0x8] sm:$0xff] }
 0x301   : > { %2902 = vpow2.f32 %v1141_v21  ;;  %v2719_v21 = vld [vmem:[%s3366_s27] sm:$0xff] }
 0x304   : > { %v1033_v24 = vpop.permute.xlu2 %1032  ;;  %1135 = vmax.xlane.f32.xlu0 %v1134_v23 }
 0x305   : > { %v1197_v25 = vsel %vm1176_vm5, %v1033_v24, 0 }
 0x306   : > { %v1092_v26 = vpop.f32.mrf.mxu3  ;;  %1206 = vmatpush.bf16.msra.mxu2 %v1197_v25 }
 0x307   : > { %v1117_v27 = vmul.f32 0.17677669, %v1092_v26  ;;  %v2903_v28 = vpop.eup %2902 }
 0x308   : > { %v1149_v30 = vsel %vm1124_vm6, %v2903_v28, 0.0 }
 0x309   : > { %v1122_v29 = vadd.f32 %v1119_v4, %v1117_v27 }
 0x30b   : > { %v1131_v31 = vsel %vm1124_vm6, %v1122_v29, -inf }
 0x30c   : > { %1150 = vadd.xlane.f32.xlu0 %v1149_v30  ;;  %1132 = vmax.xlane.f32.xlu1 %v1131_v31 }
 0x30e   : > { %v1094_v32 = vpop.f32.mrf.mxu3 }
 0x325   : > { %1034 = vrot.lane.b32.xlu1 %v3508_v54, %s3156_s8 }
 0x36f   : > { %v1130_v33 = vpop.xlane.xlu0 %1129 }
 0x370   : > { %v1138_v36 = vsub.f32 %v1121_v13, %v1130_v33  ;;  %v2725_v13 = vld [vmem:[%s3366_s27 + $0x30] sm:$0xff] }
 0x371   : > { %1337 = vmatpush.bf16.msrb.mxu1 %v2725_v13  ;;  %v2497_v13 = vld [vmem:[%s3372_s16 + $0x90] sm:$0xf0] }
 0x372   : > { %v1143_v38 = vmul.f32 1.442695, %v1138_v36  ;;  %v2755_v36 = vld [vmem:[%s3372_s16 + $0xe4] sm:$0xf] }
 0x375   : > { %1338 = vmatpush.bf16.msrb.mxu1 %v2724_v14  ;;  %v2503_v14 = vld [vmem:[%s3372_s16 + $0x88] sm:$0xf] }
 0x377   : > { %v1136_v34 = vpop.xlane.xlu0 %1135 }
 0x378   : > { %v1140_v35 = vsub.f32 %v1123_v22, %v1136_v34  ;;  %v2543_v34 = vld [vmem:[%s3372_s16 + $0xe0] sm:$0xf] }
 0x379   : > { %1339 = vmatpush.bf16.msrb.mxu1 %v2723_v15  ;;  %v2746_v15 = vld [vmem:[%s3372_s16 + $0x94] sm:$0xf0] }
 0x37a   : > { %v1147_v37 = vmul.f32 1.442695, %v1140_v35  ;;  %v2757_v35 = vld [vmem:[%s3372_s16 + $0xec] sm:$0xf0] }
 0x37c   : > { %2904 = vpow2.f32 %v1147_v37  ;;  %v2544_v37 = vor.u32 %v2757_v35, %v2543_v34  ;;  %v2489_v34 = vld [vmem:[%s3372_s16 + $0x78] sm:$0xf0] }
 0x37d   : > { %1340 = vmatpush.bf16.msrb.mxu1 %v2722_v16 }
 0x37f   : > { %v1151_v39 = vpop.xlane.xlu0 %1150  ;;  %v1133_v40 = vpop.xlane.xlu1 %1132 }
 0x380   : > { %2906 = vrcp.f32 %v1151_v39  ;;  %v1139_v42 = vsub.f32 %v1122_v29, %v1133_v40  ;;  %v2894_v29 = vld [vmem:[%s3821_s1] ss:$0 sm:$0xff]  ;;  %v2551_v39 = vld [vmem:[%s3372_s16 + $0xe8] sm:$0xf] }
 0x381   : > { %2908 = vpow2.f32 %v1143_v38  ;;  %1341 = vmatpush.bf16.msrb.mxu1 %v2721_v18  ;;  %v2545_v38 = vld [vmem:[%s3372_s16 + $0xf0] sm:$0xf0]  ;;  %v2758_v40 = vld [vmem:[%s3372_s16 + $0xf4] sm:$0xf0]  ;;  %v2504_v18 = vor.u32 %v2746_v15, %v2503_v14 }
 0x382   : > { %v2905_v41 = vpop.eup %2904  ;;  %v1145_v45 = vmul.f32 1.442695, %v1139_v42  ;;  %v2552_v42 = vor.u32 %v2758_v40, %v2551_v39  ;;  %v2465_v40 = vld [vmem:[%s3372_s16 + $0x50] sm:$0xf0] }
 0x383   : > { %v1158_v43 = vsel %vm1124_vm6, %v2905_v41, 0.0 }
 0x384   : > { %1159 = vadd.xlane.f32.xlu0 %v1158_v43  ;;  %2910 = vpow2.f32 %v1145_v45  ;;  %v2756_v43 = vld [vmem:[%s3372_s16 + $0xec] sm:$0xf] }
 0x385   : > { %1342 = vmatpush.bf16.msrb.mxu1 %v2720_v19  ;;  %v2744_v19 = vld [vmem:[%s3372_s16 + $0x8c] sm:$0xf] }
 0x386   : > { %v2907_v44 = vpop.eup %2906 }
 0x387   : > { %v1165_v46 = vmul.f32 %v2907_v44, %v2903_v28  ;;  %v2909_v47 = vpop.eup %2908  ;;  %v2553_v44 = vld [vmem:[%s3372_s16 + $0xf8] sm:$0xf0] }
 0x388   : > { %v1152_v48 = vsel %vm1124_vm6, %v2909_v47, 0.0 }
 0x389   : > { %v1169_v20 = vpack.c.bf16 %v1165_v46, %v1165_v46  ;;  %1343 = vmatpush.bf16.msrb.mxu1 %v2719_v21  ;;  %v2505_v21 = vld [vmem:[%s3372_s16 + $0x98] sm:$0xf0] }
 0x38a   : > { %v2911_v49 = vpop.eup %2910 }
 0x38b   : > { %2393 = vmatmul.msk.bf16.vlgmr.msrb.gmra.mxu2 %vm1124_vm6, %v1169_v20  ;;  %v1155_v50 = vsel %vm1124_vm6, %v2911_v49, 0.0 }
 0x38c   : > { %1153 = vadd.xlane.f32.xlu0 %v1152_v48  ;;  %1583 = vmatpush.bf16.msrb.mxu2 %v2544_v37  ;;  %v2527_v48 = vld [vmem:[%s3372_s16 + $0xc0] sm:$0xf]  ;;  %v2737_v37 = vld [vmem:[%s3372_s16 + $0x4c] sm:$0xf0] }
 0x394   : > { %1156 = vadd.xlane.f32.xlu0 %v1155_v50  ;;  %v2751_v50 = vld [vmem:[%s3372_s16 + $0xc4] sm:$0xf] }
 0x397   : > { %v1035_v51 = vpop.permute.xlu1 %1034 }
 0x398   : > { %v1216_v52 = vsel %vm1176_vm5, %v1035_v51, 0 }
 0x399   : > { %1225 = vmatpush.bf16.msrb.mxu3 %v1216_v52  ;;  %v2529_v52 = vld [vmem:[%s3372_s16 + $0xd0] sm:$0xf0] }
 0x3a8   : > { %1036 = vrot.lane.b32.xlu0 %v3508_v54, %s3154_s4 }
 0x3f7   : > { %v1160_v53 = vpop.xlane.xlu0 %1159 }
 0x3ff   : > { %v1154_v55 = vpop.xlane.xlu0 %1153 }
 0x400   : > { %2912 = vrcp.f32 %v1154_v55  ;;  %v2754_v55 = vld [vmem:[%s3372_s16 + $0xd4] sm:$0xf0] }
 0x406   : > { %v2913_v56 = vpop.eup %2912 }
 0x407   : > { %v1166_v57 = vmul.f32 %v2913_v56, %v2909_v47  ;;  %v1157_v58 = vpop.xlane.xlu0 %1156  ;;  %v2532_v56 = vor.u32 %v2751_v50, %v2529_v52  ;;  %v2455_v52 = vld [vmem:[%s3372_s16 + $0x28] sm:$0xf] }
 0x408   : > { %2914 = vrcp.f32 %v1157_v58  ;;  %v2752_v58 = vld [vmem:[%s3372_s16 + $0xcc] sm:$0xf] }
 0x409   : > { %v1170_v59 = vpack.c.bf16 %v1166_v57, %v1166_v57  ;;  %2916 = vrcp.f32 %v1160_v53  ;;  %v2535_v53 = vld [vmem:[%s3372_s16 + $0xc8] sm:$0xf] }
 0x40a   : > { %v2536_v57 = vor.u32 %v2754_v55, %v2535_v53  ;;  %v2734_v53 = vld [vmem:[%s3372_s16 + $0x34] sm:$0xf0] }
 0x40b   : > { %2394 = vmatmul.msk.bf16.vlgmr.msra.gmra.mxu2 %vm1124_vm6, %v1170_v59  ;;  %v2537_v59 = vld [vmem:[%s3372_s16 + $0xd8] sm:$0xf0] }
 0x40e   : > { %v2915_v60 = vpop.eup %2914  ;;  %v1189_v61 = vpop.f32.mrf.mxu2 }
 0x40f   : > { %v1167_v62 = vmul.f32 %v2915_v60, %v2911_v49  ;;  %v2917_v0 = vpop.eup %2916  ;;  %v2753_v49 = vld [vmem:[%s3372_s16 + $0xcc] sm:$0xf0]  ;;  %v2540_v60 = vor.u32 %v2752_v58, %v2537_v59  ;;  %v2457_v58 = vld [vmem:[%s3372_s16 + $0x38] sm:$0xf0]  ;;  %v2431_v59 = vld [vmem:[%s3372_s16] sm:$0xf] }
 0x410   : > { %v1168_v54 = vmul.f32 %v2917_v0, %v2905_v41  ;;  %v2548_v41 = vor.u32 %v2755_v36, %v2545_v38  ;;  %v2528_v51 = vor.u32 %v2753_v49, %v2527_v48  ;;  %v2463_v36 = vld [vmem:[%s3372_s16 + $0x40] sm:$0xf]  ;;  %v2735_v38 = vld [vmem:[%s3372_s16 + $0x44] sm:$0xf]  ;;  %v2733_v48 = vld [vmem:[%s3372_s16 + $0x2c] sm:$0xf0] }
 0x411   : > { %v1171_v63 = vpack.c.bf16 %v1167_v62, %v1167_v62  ;;  %v2749_v62 = vld [vmem:[%s3372_s16 + $0xac] sm:$0xf0]  ;;  %v2464_v39 = vor.u32 %v2737_v37, %v2463_v36  ;;  %v2731_v49 = vld [vmem:[%s3372_s16 + $0x24] sm:$0xf]  ;;  %v2764_v37 = vld [vmem:[%s3374_s22 + $0x28] sm:$0xff] }
 0x412   : > { %v1172_v5 = vpack.c.bf16 %v1168_v54, %v1168_v54  ;;  %1596 = vmatpush.bf16.msra.mxu3 %v2548_v41  ;;  %1584 = vmatpush.bf16.msrb.mxu2 %v2528_v51  ;;  %v2519_v54 = vld [vmem:[%s3372_s16 + $0xa8] sm:$0xf]  ;;  %v2449_v51 = vld [vmem:[%s3372_s16 + $0x30] sm:$0xf0]  ;;  %v2787_v36 = vld [vmem:[%s3374_s22 + $0xe0] sm:$0xff] }
 0x413   : > { %2395 = vmatmul.msk.bf16.vlgmr.msrb.gmra.mxu3 %vm1124_vm6, %v1171_v63  ;;  %v2747_v63 = vld [vmem:[%s3372_s16 + $0xa4] sm:$0xf]  ;;  %v2471_v41 = vld [vmem:[%s3372_s16 + $0x48] sm:$0xf]  ;;  %v2452_v55 = vor.u32 %v2731_v49, %v2449_v51  ;;  %v2761_v51 = vld [vmem:[%s3374_s22 + $0x10] sm:$0xff] }
 0x414   : > { %v2776_v49 = vld [vmem:[%s3374_s22 + $0x88] sm:$0xff] }
 0x416   : > { %v1191_v2 = vpop.f32.mrf.mxu2  ;;  %1597 = vmatpush.bf16.msra.mxu3 %v2532_v56  ;;  %v2456_v56 = vor.u32 %v2734_v53, %v2455_v52  ;;  %v2769_v52 = vld [vmem:[%s3374_s22 + $0x50] sm:$0xff] }
 0x417   : > { %v2513_v2 = vld [vmem:[%s3372_s16 + $0xb0] sm:$0xf0] }
 0x41a   : > { %v1037_v3 = vpop.permute.xlu0 %1036 }
 0x41b   : > { %v1235_v4 = vsel %vm1176_vm5, %v1037_v3, 0  ;;  %v2750_v3 = vld [vmem:[%s3372_s16 + $0xb4] sm:$0xf0] }
 0x41c   : > { %1244 = vmatpush.bf16.msra.mxu0 %v1235_v4  ;;  %v2516_v4 = vor.u32 %v2747_v63, %v2513_v2  ;;  %v2433_v63 = vld [vmem:[%s3372_s16 + $0x10] sm:$0xf0] }
 0x41e   : > { %1598 = vmatpush.bf16.msra.mxu3 %v2516_v4  ;;  %v2728_v4 = vld [vmem:[%s3372_s16 + $0xc] sm:$0xf] }
 0x41f   : > { %2396 = vmatmul.msk.bf16.vlgmr.msra.gmra.mxu0 %vm1124_vm6, %v1172_v5  ;;  %v2520_v5 = vor.u32 %v2750_v3, %v2519_v54  ;;  %v2439_v54 = vld [vmem:[%s3372_s16 + $0x8] sm:$0xf]  ;;  %v2730_v3 = vld [vmem:[%s3372_s16 + $0x14] sm:$0xf0] }
 0x420   : > { %1609 = vmatpush.bf16.msrb.mxu0 %v2552_v42  ;;  %v2738_v42 = vld [vmem:[%s3372_s16 + $0x54] sm:$0xf0] }
 0x424   : > { %1610 = vmatpush.bf16.msrb.mxu0 %v2536_v57  ;;  %v2732_v57 = vld [vmem:[%s3372_s16 + $0x2c] sm:$0xf] }
 0x428   : > { %1611 = vmatpush.bf16.msrb.mxu0 %v2520_v5  ;;  %v2440_v5 = vor.u32 %v2730_v3, %v2439_v54 }
 0x42c   : > { %1612 = vmatpush.bf16.msrb.mxu0 %v2504_v18  ;;  %v2895_v18 = vld [vmem:[%s751_s14] ss:$0 sm:$0xff] }
 0x48e   : > { %v1208_v6 = vpop.f32.mrf.mxu2 }
 0x48f   : > { %1251 = vrot.lane.b32.xlu2 %v1208_v6, %s3154_s4  ;;  %v2748_v6 = vld [vmem:[%s3372_s16 + $0xac] sm:$0xf] }
 0x496   : > { %v1210_v7 = vpop.f32.mrf.mxu2  ;;  %v1227_v8 = vpop.f32.mrf.mxu3 }
 0x497   : > { %1255 = vrot.lane.b32.xlu2 %v1227_v8, %s3156_s8  ;;  %v2521_v7 = vld [vmem:[%s3372_s16 + $0xb8] sm:$0xf0] }
 0x498   : > { %v2524_v8 = vor.u32 %v2748_v6, %v2521_v7  ;;  %v2441_v6 = vld [vmem:[%s3372_s16 + $0x18] sm:$0xf0] }
 0x499   : > { %v2444_v7 = vor.u32 %v2728_v4, %v2441_v6 }
 0x49c   : > { %v1246_v9 = vpop.f32.mrf.mxu0 }
 0x49d   : > { %1259 = vrot.lane.b32.xlu1 %v1246_v9, %s3155_s21  ;;  %v2495_v9 = vld [vmem:[%s3372_s16 + $0x80] sm:$0xf] }
 0x49e   : > { %v1229_v10 = vpop.f32.mrf.mxu3 }
 0x49f   : > { %v2745_v10 = vld [vmem:[%s3372_s16 + $0x8c] sm:$0xf0] }
 0x4a0   : > { %v2496_v12 = vor.u32 %v2745_v10, %v2495_v9 }
 0x4a4   : > { %v1248_v11 = vpop.f32.mrf.mxu0 }
 0x4a5   : > { %v2743_v11 = vld [vmem:[%s3372_s16 + $0x84] sm:$0xf] }
 0x4a6   : > { %v2500_v16 = vor.u32 %v2743_v11, %v2497_v13 }
 0x4a8   : > { %1599 = vmatpush.bf16.msra.mxu3 %v2500_v16 }
 0x4e9   : > { %v1252_v22 = vpop.permute.xlu2 %1251 }
 0x4ea   : > { %v1262_v24 = vsel %vm1038_vm4, %v1189_v61, %v1252_v22  ;;  %v2511_v61 = vld [vmem:[%s3372_s16 + $0xa0] sm:$0xf]  ;;  %v2508_v22 = vor.u32 %v2744_v19, %v2505_v21  ;;  %v2896_v21 = vld [vmem:[%s754_s9] ss:$0 sm:$0xff]  ;;  %s2041_s9 = sld [smem:[#allocation4 + %s3132_s0]] (!%p2689_p3) }
 0x4eb   : > { %v2512_v0 = vor.u32 %v2749_v62, %v2511_v61  ;;  %v2729_v61 = vld [vmem:[%s3372_s16 + $0xc] sm:$0xf0]  ;;  %v2727_v62 = vld [vmem:[%s3372_s16 + $0x4] sm:$0xf] }
 0x4ec   : > { %v2436_v2 = vor.u32 %v2727_v62, %v2433_v63 }
 0x4ed   : > { %1585 = vmatpush.bf16.msrb.mxu2 %v2512_v0  ;;  %v2432_v0 = vor.u32 %v2729_v61, %v2431_v59  ;;  %v2783_v59 = vld [vmem:[%s3374_s22 + $0xc0] sm:$0xff] }
 0x4f0   : > { %s2042_s6 = scalar_lea.vmem (!%p2689_p3), [#allocation2], %s2041_s9 }
 0x4f1   : > { %v1256_v23 = vpop.permute.xlu2 %1255  ;;  %1586 = vmatpush.bf16.msrb.mxu2 %v2496_v12 }
 0x4f2   : > { %v1264_v25 = vsel %vm1263_vm7, %v1262_v24, %v1256_v23  ;;  %v2479_v23 = vld [vmem:[%s3372_s16 + $0x60] sm:$0xf]  ;;  %v2741_v24 = vld [vmem:[%s3372_s16 + $0x6c] sm:$0xf0] }
 0x50f   : > { %v1260_v26 = vpop.permute.xlu1 %1259 }
 0x510   : > { %v1266_v27 = vsel %vm1265_vm8, %v1264_v25, %v1260_v26  ;;  %v2739_v25 = vld [vmem:[%s3372_s16 + $0x64] sm:$0xf]  ;;  %v2480_v26 = vor.u32 %v2741_v24, %v2479_v23 }
 0x511   : > { %v1267_v28 = vpack.c.bf16 %v1266_v27, %v1266_v27  ;;  %v2481_v27 = vld [vmem:[%s3372_s16 + $0x70] sm:$0xf0] }
 0x512   : > { %1587 = vmatpush.bf16.msrb.mxu2 %v2480_v26  ;;  %v2790_v26 = vld [vmem:[%s3374_s22 + $0xf8] sm:$0xff] }
 0x513   : > { %1344 = vmatmul.bf16.vlgmr.msrb.gmra.mxu1 %v1267_v28  ;;  %v2487_v28 = vld [vmem:[%s3372_s16 + $0x68] sm:$0xf] }
 0x516   : > { %1588 = vmatpush.bf16.msrb.mxu2 %v2464_v39  ;;  %v2778_v39 = vld [vmem:[%s3374_s22 + $0x98] sm:$0xff] }
 0x590   : > { %v1345_v30 = vpop.f32.mrf.mxu1 }
 0x591   : > { %v1346_v31 = vadd.f32 %v2894_v29, %v1345_v30  ;;  %v2742_v29 = vld [vmem:[%s3372_s16 + $0x74] sm:$0xf0]  ;;  %v2484_v30 = vor.u32 %v2739_v25, %v2481_v27  ;;  %v2789_v27 = vld [vmem:[%s3374_s22 + $0xf0] sm:$0xff] }
 0x592   : > { %v2782_v25 = vld [vmem:[%s3374_s22 + $0xb8] sm:$0xff] }
 0x593   : > { %v3562_v32 = vadd.f32 %v1346_v31, %v3433_v1  ;;  %v2556_v1 = vor.u32 %v2756_v43, %v2553_v44  ;;  %v2488_v31 = vor.u32 %v2742_v29, %v2487_v28  ;;  %1600 = vmatpush.bf16.msra.mxu3 %v2484_v30  ;;  %v2468_v43 = vor.u32 %v2735_v38, %v2465_v40  ;;  %v2766_v28 = vld [vmem:[%s3374_s22 + $0x38] sm:$0xff]  ;;  %v2780_v30 = vld [vmem:[%s3374_s22 + $0xa8] sm:$0xff] }
 0x594   : > { %v2472_v44 = vor.u32 %v2738_v42, %v2471_v41  ;;  %v2774_v29 = vld [vmem:[%s3374_s22 + $0x78] sm:$0xff]  ;;  %v2772_v38 = vld [vmem:[%s3374_s22 + $0x68] sm:$0xff]  ;;  %v2763_v41 = vld [vmem:[%s3374_s22 + $0x20] sm:$0xff] }
 0x595   : > { %1352 = vadd.xlane.f32.xlu0 %v3562_v32  ;;  %1622 = vmatpush.bf16.msra.mxu1 %v2556_v1  ;;  %v2736_v1 = vld [vmem:[%s3372_s16 + $0x4c] sm:$0xf]  ;;  %v2786_v40 = vld [vmem:[%s3374_s22 + $0xd8] sm:$0xff]  ;;  %v2771_v42 = vld [vmem:[%s3374_s22 + $0x60] sm:$0xff] }
 0x596   : > { %1613 = vmatpush.bf16.msrb.mxu0 %v2488_v31  ;;  %v2788_v31 = vld [vmem:[%s3374_s22 + $0xe8] sm:$0xff] }
 0x597   : > { %1601 = vmatpush.bf16.msra.mxu3 %v2468_v43  ;;  %v2777_v43 = vld [vmem:[%s3374_s22 + $0x90] sm:$0xff] }
 0x598   : > { %v1347_v33 = vpop.f32.mrf.mxu1 }
 0x599   : > { %1623 = vmatpush.bf16.msra.mxu1 %v2540_v60  ;;  %v2740_v33 = vld [vmem:[%s3372_s16 + $0x6c] sm:$0xf]  ;;  %v2460_v60 = vor.u32 %v2732_v57, %v2457_v58  ;;  %v2775_v58 = vld [vmem:[%s3374_s22 + $0x80] sm:$0xff] }
 0x59a   : > { %v2492_v35 = vor.u32 %v2740_v33, %v2489_v34  ;;  %1614 = vmatpush.bf16.msrb.mxu0 %v2472_v44  ;;  %v2765_v33 = vld [vmem:[%s3374_s22 + $0x30] sm:$0xff] }
 0x59b   : > { %1602 = vmatpush.bf16.msra.mxu3 %v2452_v55  ;;  %v2773_v34 = vld [vmem:[%s3374_s22 + $0x70] sm:$0xff] }
 0x59c   : > { %v2785_v44 = vld [vmem:[%s3374_s22 + $0xd0] sm:$0xff] }
 0x59d   : > { %1624 = vmatpush.bf16.msra.mxu1 %v2524_v8 }
 0x59e   : > { %1615 = vmatpush.bf16.msrb.mxu0 %v2456_v56 }
 0x59f   : > { %1603 = vmatpush.bf16.msra.mxu3 %v2436_v2  ;;  %v2768_v2 = vld [vmem:[%s3374_s22 + $0x48] sm:$0xff] }
 0x5a1   : > { %1625 = vmatpush.bf16.msra.mxu1 %v2508_v22 }
 0x5a2   : > { %1616 = vmatpush.bf16.msrb.mxu0 %v2440_v5 }
 0x5a3   : > { %1996 = vmatpush.bf16.msrb.mxu3 %v2774_v29 }
 0x5a5   : > { %1626 = vmatpush.bf16.msra.mxu1 %v2492_v35  ;;  %v2779_v35 = vld [vmem:[%s3374_s22 + $0xa0] sm:$0xff] }
 0x5a6   : > { %2009 = vmatpush.bf16.msra.mxu0 %v2782_v25 }
 0x5a7   : > { %1997 = vmatpush.bf16.msrb.mxu3 %v2773_v34 }
 0x5ab   : > { %1998 = vmatpush.bf16.msrb.mxu3 %v2772_v38 }
 0x5af   : > { %1999 = vmatpush.bf16.msrb.mxu3 %v2771_v42 }
 0x608   : > { %v1353_v45 = vpop.xlane.xlu0 %1352 }
 0x609   : > { %v1354_v46 = vmul.f32 %v1353_v45, %v3442_v17  ;;  %v2473_v45 = vld [vmem:[%s3372_s16 + $0x58] sm:$0xf0] }
 0x60b   : > { %v3575_v47 = vsub.f32 %v3562_v32, %v1354_v46  ;;  %v2476_v46 = vor.u32 %v2736_v1, %v2473_v45  ;;  %v1413_v1 = vld [vmem:[%s3430_s23] sm:$0xf] }
 0x60c   : > { %v2762_v45 = vld [vmem:[%s3374_s22 + $0x18] sm:$0xff]  ;;  %v1416_v61 = vperm.slane %v1413_v1, 1 }
 0x60d   : > { %v1356_v20 = vmul.f32 %v3575_v47, %v3575_v47  ;;  %1627 = vmatpush.bf16.msra.mxu1 %v2476_v46  ;;  %v2770_v46 = vld [vmem:[%s3374_s22 + $0x58] sm:$0xff] }
 0x60e   : > { %2000 = vmatpush.bf16.msrb.mxu3 %v2770_v46 }
 0x60f   : > { %1357 = vadd.xlane.f32.xlu2 %v1356_v20  ;;  %v2447_v20 = vld [vmem:[%s3372_s16 + $0x20] sm:$0xf] }
 0x610   : > { %v2448_v50 = vor.u32 %v2733_v48, %v2447_v20  ;;  %v1417_v20 = vperm.slane %v1413_v1, 2  ;;  %v1418_v48 = vperm.slane %v1413_v1, 3 }
 0x611   : > { %1628 = vmatpush.bf16.msra.mxu1 %v2460_v60  ;;  %v1415_v60 = vperm.slane %v1413_v1, 0 }
 0x612   : > { %1589 = vmatpush.bf16.msrb.mxu2 %v2448_v50  ;;  %v2784_v50 = vld [vmem:[%s3374_s22 + $0xc8] sm:$0xff]  ;;  %2001 = vmatpush.bf16.msrb.mxu3 %v2769_v52 }
 0x615   : > { %1629 = vmatpush.bf16.msra.mxu1 %v2444_v7 }
 0x616   : > { %1590 = vmatpush.bf16.msrb.mxu2 %v2432_v0  ;;  %v2760_v0 = vld [vmem:[%s3374_s22 + $0x8] sm:$0xff]  ;;  %2002 = vmatpush.bf16.msrb.mxu3 %v2768_v2 }
 0x619   : > { %2022 = vmatpush.bf16.msrb.mxu1 %v2790_v26 }
 0x61a   : > { %1983 = vmatpush.bf16.msra.mxu2 %v2766_v28 }
 0x61d   : > { %2023 = vmatpush.bf16.msrb.mxu1 %v2789_v27 }
 0x61e   : > { %1984 = vmatpush.bf16.msra.mxu2 %v2765_v33 }
 0x621   : > { %2024 = vmatpush.bf16.msrb.mxu1 %v2788_v31 }
 0x622   : > { %1985 = vmatpush.bf16.msra.mxu2 %v2764_v37 }
 0x625   : > { %2025 = vmatpush.bf16.msrb.mxu1 %v2787_v36 }
 0x626   : > { %1986 = vmatpush.bf16.msra.mxu2 %v2763_v41 }
 0x629   : > { %2026 = vmatpush.bf16.msrb.mxu1 %v2786_v40 }
 0x62a   : > { %1987 = vmatpush.bf16.msra.mxu2 %v2762_v45 }
 0x62d   : > { %2027 = vmatpush.bf16.msrb.mxu1 %v2785_v44 }
 0x62e   : > { %1988 = vmatpush.bf16.msra.mxu2 %v2761_v51 }
 0x631   : > { %2028 = vmatpush.bf16.msrb.mxu1 %v2784_v50 }
 0x632   : > { %1989 = vmatpush.bf16.msra.mxu2 %v2760_v0 }
 0x635   : > { %2029 = vmatpush.bf16.msrb.mxu1 %v2783_v59 }
 0x682   : > { %v1358_v8 = vpop.xlane.xlu2 %1357 }
 0x683   : > { %v1359_v9 = vmul.f32 %v1358_v8, %v3442_v17  ;;  %v2759_v8 = vld [vmem:[%s3374_s22] sm:$0xff] }
 0x684   : > { %1990 = vmatpush.bf16.msra.mxu2 %v2759_v8 }
 0x685   : > { %v1360_v10 = vadd.f32 1e-05, %v1359_v9  ;;  %v2767_v9 = vld [vmem:[%s3374_s22 + $0x40] sm:$0xff] }
 0x686   : > { %2003 = vmatpush.bf16.msrb.mxu3 %v2767_v9 }
 0x687   : > { %2918 = vrsqrt.f32 %v1360_v10  ;;  %vm1367_vm10 = vweird.f32 %v1360_v10 }
 0x68d   : > { %v2919_v11 = vpop.eup %2918 }
 0x68e   : > { %v1362_v12 = vmul.f32 %v2919_v11, %v1360_v10  ;;  %vm1368_vm9 = vweird.f32 %v2919_v11 }
 0x68f   : > { %vm1369_vm11 = vmor %vm1367_vm10, %vm1368_vm9 }
 0x690   : > { %v1363_v13 = vmul.f32 %v2919_v11, %v1362_v12 }
 0x692   : > { %v1364_v14 = vmul.f32 0.5, %v1363_v13 }
 0x694   : > { %v1365_v15 = vsub.f32 1.5, %v1364_v14 }
 0x696   : > { %v1366_v16 = vmul.f32 %v2919_v11, %v1365_v15 }
 0x698   : > { %v1370_v17 = vsel %vm1369_vm11, %v2919_v11, %v1366_v16 }
 0x699   : > { %v1371_v19 = vmul.f32 %v1370_v17, %v3575_v47  ;;  %v2781_v47 = vld [vmem:[%s3374_s22 + $0xb0] sm:$0xff] }
 0x69a   : > { %2010 = vmatpush.bf16.msra.mxu0 %v2781_v47 }
 0x69b   : > { %v1375_v22 = vmul.f32 %v2895_v18, %v1371_v19 }
 0x69d   : > { %v1379_v23 = vadd.f32 %v2896_v21, %v1375_v22 }
 0x69e   : > { %2011 = vmatpush.bf16.msra.mxu0 %v2780_v30 }
 0x69f   : > { %v1380_v24 = vpack.c.bf16 %v1379_v23, %v1379_v23 }
 0x6a1   : > { %1591 = vmatmul.bf16.vlgmr.msrb.gmra.mxu2 %v1380_v24  ;;  %1604 = vmatmul.bf16.vlgmr.msra.gmra.mxu3 %v1380_v24 }
 0x6a2   : > { %1617 = vmatmul.bf16.vlgmr.msrb.gmra.mxu0 %v1380_v24  ;;  %1630 = vmatmul.bf16.vlgmr.msra.gmra.mxu1 %v1380_v24 }
 0x6a3   : > { %2012 = vmatpush.bf16.msra.mxu0 %v2779_v35 }
 0x6a7   : > { %2013 = vmatpush.bf16.msra.mxu0 %v2778_v39 }
 0x6ab   : > { %2014 = vmatpush.bf16.msra.mxu0 %v2777_v43 }
 0x6af   : > { %2015 = vmatpush.bf16.msra.mxu0 %v2776_v49 }
 0x6b3   : > { %2016 = vmatpush.bf16.msra.mxu0 %v2775_v58 }
 0x71f   : > { %v1618_v53 = vpop.f32.mrf.mxu0  ;;  %v1631_v55 = vpop.f32.mrf.mxu1 }
 0x720   : > { %v3674_v56 = vadd.f32 %v1618_v53, %v1417_v20  ;;  %v3676_v57 = vadd.f32 %v1631_v55, %v1418_v48 }
 0x722   : > { %v2559_v62 = vmul.f32 -1.702, %v3674_v56  ;;  %v2560_v63 = vmul.f32 -1.702, %v3676_v57 }
 0x724   : > { %v1647_v54 = vmul.f32 1.442695, %v2559_v62  ;;  %v1649_v3 = vmul.f32 1.442695, %v2560_v63  ;;  %v1592_v4 = vpop.f32.mrf.mxu2  ;;  %v1605_v5 = vpop.f32.mrf.mxu3 }
 0x725   : > { %v3684_v6 = vadd.f32 %v1592_v4, %v1415_v60  ;;  %v3686_v7 = vadd.f32 %v1605_v5, %v1416_v61 }
 0x726   : > { %2920 = vpow2.f32 %v1647_v54 }
 0x727   : > { %2922 = vpow2.f32 %v1649_v3  ;;  %v2557_v10 = vmul.f32 -1.702, %v3684_v6  ;;  %v2558_v11 = vmul.f32 -1.702, %v3686_v7  ;;  %v1620_v12 = vpop.f32.mrf.mxu0  ;;  %v1633_v13 = vpop.f32.mrf.mxu1 }
 0x729   : > { %v1643_v14 = vmul.f32 1.442695, %v2557_v10  ;;  %v1645_v15 = vmul.f32 1.442695, %v2558_v11 }
 0x72b   : > { %2924 = vpow2.f32 %v1643_v14 }
 0x72c   : > { %v2921_v16 = vpop.eup %2920  ;;  %2926 = vpow2.f32 %v1645_v15  ;;  %v1594_v18 = vpop.f32.mrf.mxu2 }
 0x72d   : > { %v1607_v17 = vpop.f32.mrf.mxu3  ;;  %v2923_v19 = vpop.eup %2922  ;;  %v1653_v21 = vadd.f32 1.0, %v2921_v16 }
 0x72e   : > { %v1654_v22 = vadd.f32 1.0, %v2923_v19  ;;  %v2897_v17 = vld [vmem:[%s761_s2] ss:$0 sm:$0xff] }
 0x72f   : > { %2928 = vrcp.f32 %v1653_v21  ;;  %v1694_v29 = vand.u32 2147483647, %v1653_v21  ;;  %v1696_v30 = vand.u32 2147483648, %v1653_v21  ;;  %vm1690_vm12 = vweird.f32 %v1653_v21 }
 0x730   : > { %2930 = vrcp.f32 %v1654_v22  ;;  %v1709_v34 = vand.u32 2147483647, %v1654_v22  ;;  %v1711_v35 = vand.u32 2147483648, %v1654_v22  ;;  %vm1705_vm15 = vweird.f32 %v1654_v22 }
 0x731   : > { %v2925_v23 = vpop.eup %2924  ;;  %vm3692_vm14 = vcmp.eq.f32.partialorder %v1694_v29, 8.507059e+37  ;;  %v1697_v41 = vor.u32 1.1754944e-38, %v1696_v30 }
 0x732   : > { %v2927_v24 = vpop.eup %2926  ;;  %v1651_v25 = vadd.f32 1.0, %v2925_v23  ;;  %vm3696_vm1 = vcmp.eq.f32.partialorder %v1709_v34, 8.507059e+37  ;;  %v1712_v45 = vor.u32 1.1754944e-38, %v1711_v35 }
 0x733   : > { %v1652_v26 = vadd.f32 1.0, %v2927_v24 }
 0x734   : > { %2932 = vrcp.f32 %v1651_v25  ;;  %v1664_v49 = vand.u32 2147483647, %v1651_v25  ;;  %v1666_v50 = vand.u32 2147483648, %v1651_v25  ;;  %vm1660_vm6 = vweird.f32 %v1651_v25 }
 0x735   : > { %v2929_v47 = vpop.eup %2928  ;;  %2934 = vrcp.f32 %v1652_v26  ;;  %v1679_v53 = vand.u32 2147483647, %v1652_v26  ;;  %v1681_v55 = vand.u32 2147483648, %v1652_v26  ;;  %vm1675_vm8 = vweird.f32 %v1652_v26 }
 0x736   : > { %v2931_v27 = vpop.eup %2930  ;;  %v1686_v28 = vmul.f32 %v2929_v47, %v1653_v21  ;;  %vm1691_vm13 = vweird.f32 %v2929_v47  ;;  %v1667_v3 = vor.u32 1.1754944e-38, %v1666_v50  ;;  %vm1665_vm9 = vcmp.eq.f32.partialorder %v1664_v49, 8.507059e+37 }
 0x737   : > { %v1701_v31 = vmul.f32 %v2931_v27, %v1654_v22  ;;  %vm1706_vm0 = vweird.f32 %v2931_v27  ;;  %vm1692_vm2 = vmor %vm1690_vm12, %vm1691_vm13  ;;  %v1682_v9 = vor.u32 1.1754944e-38, %v1681_v55  ;;  %vm1680_vm11 = vcmp.eq.f32.partialorder %v1679_v53, 8.507059e+37 }
 0x738   : > { %v1687_v33 = vsub.f32 1.0, %v1686_v28  ;;  %vm1707_vm3 = vmor %vm1705_vm15, %vm1706_vm0 }
 0x739   : > { %v1702_v36 = vsub.f32 1.0, %v1701_v31 }
 0x73a   : > { %v2933_v37 = vpop.eup %2932  ;;  %v1688_v38 = vmul.f32 %v2929_v47, %v1687_v33 }
 0x73b   : > { %v2935_v40 = vpop.eup %2934  ;;  %v1703_v42 = vmul.f32 %v2931_v27, %v1702_v36  ;;  %v1656_v43 = vmul.f32 %v2933_v37, %v1651_v25  ;;  %vm1661_vm4 = vweird.f32 %v2933_v37 }
 0x73c   : > { %v1689_v44 = vadd.f32 %v2929_v47, %v1688_v38  ;;  %v1671_v46 = vmul.f32 %v2935_v40, %v1652_v26  ;;  %vm1676_vm5 = vweird.f32 %v2935_v40  ;;  %vm1662_vm7 = vmor %vm1660_vm6, %vm1661_vm4 }
 0x73d   : > { %v1704_v20 = vadd.f32 %v2931_v27, %v1703_v42  ;;  %v1657_v48 = vsub.f32 1.0, %v1656_v43  ;;  %vm1677_vm10 = vmor %vm1675_vm8, %vm1676_vm5 }
 0x73e   : > { %v1693_v51 = vsel %vm1692_vm2, %v2929_v47, %v1689_v44  ;;  %v1672_v52 = vsub.f32 1.0, %v1671_v46 }
 0x73f   : > { %v1698_v58 = vsel %vm3692_vm14, %v1697_v41, %v1693_v51  ;;  %v1708_v59 = vsel %vm1707_vm3, %v2931_v27, %v1704_v20  ;;  %v1658_v60 = vmul.f32 %v2933_v37, %v1657_v48 }
 0x740   : > { %v1717_v61 = vmul.f32 %v1698_v58, %v3674_v56  ;;  %v1713_v62 = vsel %vm3696_vm1, %v1712_v45, %v1708_v59  ;;  %v1673_v63 = vmul.f32 %v2935_v40, %v1672_v52 }
 0x741   : > { %v1718_v0 = vmul.f32 %v1713_v62, %v3676_v57  ;;  %v1659_v2 = vadd.f32 %v2933_v37, %v1658_v60 }
 0x742   : > { %v1721_v54 = vpack.c.bf16 %v1717_v61, %v1717_v61  ;;  %v1674_v4 = vadd.f32 %v2935_v40, %v1673_v63 }
 0x743   : > { %v1722_v5 = vpack.c.bf16 %v1718_v0, %v1718_v0  ;;  %v1663_v8 = vsel %vm1662_vm7, %v2933_v37, %v1659_v2 }
 0x744   : > { %v1668_v56 = vsel %vm1665_vm9, %v1667_v3, %v1663_v8  ;;  %v1678_v10 = vsel %vm1677_vm10, %v2935_v40, %v1674_v4  ;;  %2017 = vmatmul.bf16.vlgmr.msra.gmra.mxu0 %v1721_v54 }
 0x745   : > { %v1715_v11 = vmul.f32 %v1668_v56, %v3684_v6  ;;  %v1683_v57 = vsel %vm1680_vm11, %v1682_v9, %v1678_v10  ;;  %2030 = vmatmul.bf16.vlgmr.msrb.gmra.mxu1 %v1722_v5 }
 0x746   : > { %v1716_v12 = vmul.f32 %v1683_v57, %v3686_v7 }
 0x747   : > { %v1719_v13 = vpack.c.bf16 %v1715_v11, %v1715_v11 }
 0x748   : > { %v1720_v14 = vpack.c.bf16 %v1716_v12, %v1716_v12 }
 0x749   : > { %1991 = vmatmul.bf16.vlgmr.msra.gmra.mxu2 %v1719_v13 }
 0x74a   : > { %2004 = vmatmul.bf16.vlgmr.msrb.gmra.mxu3 %v1720_v14 }
 0x7c1   : > { %v2018_v15 = vpop.f32.mrf.mxu0 }
 0x7c2   : > { %v2031_v16 = vpop.f32.mrf.mxu1 }
 0x7c9   : > { %v2020_v18 = vpop.f32.mrf.mxu0 }
 0x7ca   : > { %v2033_v19 = vpop.f32.mrf.mxu1 }
 0x7cc   : > { %v1992_v21 = vpop.f32.mrf.mxu2 }
 0x7cd   : > { %v1993_v22 = vadd.f32 %v2897_v17, %v1992_v21  ;;  %v2005_v6 = vpop.f32.mrf.mxu3 }
 0x7cf   : > { %v2006_v23 = vadd.f32 %v2005_v6, %v1993_v22 }
 0x7d1   : > { %v2019_v24 = vadd.f32 %v2018_v15, %v2006_v23 }
 0x7d3   : > { %v2032_v25 = vadd.f32 %v2031_v16, %v2019_v24  ;;  %2040 = sbr.rel (%p2689_p3) target bundleno = 2016 (0x7e0), region = 100 }
 0x7d4   : > { %v1994_v7 = vpop.f32.mrf.mxu2 }
 0x7d5   : > { %v2035_v26 = vadd.f32 %v2032_v25, %v3562_v32  ;;  %v2007_v47 = vpop.f32.mrf.mxu3 }
 0x7d7   : > { %2036 = vst [vmem:[#allocation2] sm:$0xff] %v2035_v26 }
 0x7de   : > { %v2043_v27 = vld [vmem:[%s2042_s6] sm:$0x1] }
 0x7df   : > { %2044 = vst [vmem:[%s3830_s29] sm:$0x1] %v2043_v27 }
 0x7e0 PF: > { %s3831_s30 = sld [smem:[#allocation20_spill]] }
 0x7e1   : > { %s3832_s22 = sld [smem:[#allocation16_spill]] }
 0x7e2   : > { %s3833_s23 = sld [smem:[#allocation17_spill]] }
 0x7e3   : > { %s3834_s24 = sld [smem:[#allocation23_spill]] }
 0x7e4   : > { %s3835_s25 = sld [smem:[#allocation18_spill]] }
 0x7e5   : > { %s3836_s0 = sld [smem:[#allocation19_spill]] }
 0x7e6   : > { %s42_s28 = sadd.s32 1, %s3831_s30   ;;  %s3837_s26 = sld [smem:[#allocation21_spill]] }
 0x7e7   : > { %p39_p4 = scmp.ge.s32.totalorder %s42_s28, 6   ;;  %s3838_s27 = sld [smem:[#allocation22_spill]] }
 0x7e9   :  { %41 = sbr.rel (!%p39_p4) target bundleno = 29 (0x1d), region = 189 }
 0x7ee   :  { %2062 = vsyncpa [#allocation6], 1 }
 0x7ef   :  { %2064 = vsyncpa [#allocation6 + $0x1], 1 }
 0x7f0   :  { %2065 = vsyncpa [#allocation8], 1 }
 0x7f1   :  { %2067 = vsyncpa [#allocation8 + $0x1], 1 }
 0x7f2   :  { %2068 = vsyncpa [#allocation11], 1 }
 0x7f3   :  { %2070 = vsyncpa [#allocation11 + $0x1], 1 }

// kernel: frozen_clip_forward.6
= control target key start
LH: loop header
LB: loop body
LE: loop exit
PB: predicated region body
PF: predicated region fallthrough
CT: control target
= control target key end

     0   :  { %s2930_s21 = smov [#allocation4]   ;;  %s3486_s0 = inlined_call_operand.vmem [shape: s32[2], index: 0, kind: input, shape index: {}]   ;;  %s3487_s1 = inlined_call_operand.vmem [shape: f32[8,8], index: 1, kind: input, shape index: {}]   ;;  %s3488_s2 = inlined_call_operand.vmem [shape: f32[2,8,128], index: 2, kind: input, shape index: {}]   ;;  %s3489_s3 = inlined_call_operand.vmem [shape: f32[2,1,128], index: 3, kind: input, shape index: {}, may-alias: {3,9}]   ;;  %s3490_s4 = inlined_call_operand.vmem [shape: f32[2,1,128], index: 4, kind: input, shape index: {}, may-alias: {4,10}]   ;;  %s3491_s5 = inlined_call_operand.vmem [shape: bf16[2,128,384], index: 5, kind: input, shape index: {}]   ;;  %s3492_s6 = inlined_call_operand.vmem [shape: f32[2,1,384], index: 6, kind: input, shape index: {}]   ;;  %s3493_s7 = inlined_call_operand.vmem [shape: bf16[2,128,128], index: 7, kind: input, shape index: {}]   ;;  %s3494_s8 = inlined_call_operand.vmem [shape: f32[2,1,128], index: 8, kind: input, shape index: {}]   ;;  %s3495_s9 = inlined_call_operand.vmem [shape: f32[2,1,128], index: 9, kind: input, shape index: {}, may-alias: {3,9}]   ;;  %s3496_s10 = inlined_call_operand.vmem [shape: f32[2,1,128], index: 10, kind: input, shape index: {}, may-alias: {4,10}]   ;;  %s3497_s11 = inlined_call_operand.vmem [shape: bf16[2,128,512], index: 11, kind: input, shape index: {}]   ;;  %s3498_s12 = inlined_call_operand.vmem [shape: f32[2,1,512], index: 12, kind: input, shape index: {}]   ;;  %s3499_s13 = inlined_call_operand.hbm [shape: bf16[2,512,128], index: 13, kind: input, shape index: {}]   ;;  %s3500_s14 = inlined_call_operand.vmem [shape: f32[2,1,128], index: 14, kind: input, shape index: {}]   ;;  %s3501_s15 = inlined_call_operand.vmem [shape: f32[2,1,128], index: 15, kind: output, shape index: {}]  }
   0x1   :  { %3509 = sst [smem:[#allocation18_spill]] %s3487_s1  ;;  %s21_s20 = sshll.u32 %s3486_s0, 4  ;;  %s22_s20 = int_to_ptr.vmem [resolvable:$true] %s21_s20 }
   0x2   :  { %3510 = sst [smem:[#allocation19_spill]] %s3488_s2 }
   0x3   :  { %3511 = sst [smem:[#allocation20_spill]] %s3491_s5 }
   0x4   :  { %3512 = sst [smem:[#allocation21_spill]] %s3492_s6 }
   0x5   :  { %3513 = sst [smem:[#allocation22_spill]] %s3493_s7 }
   0x6   :  { %3514 = sst [smem:[#allocation23_spill]] %s3496_s10 }
   0x7   :  { %3515 = sst [smem:[#allocation24_spill]] %s3497_s11 }
   0x8   :  { %3516 = sst [smem:[#allocation25_spill]] %s3498_s12 }
   0x9   :  { %3517 = sst [smem:[#allocation26_spill]] %s3499_s13 }
   0xa   :  { %3518 = sst [smem:[#allocation27_spill]] %s3500_s14 }
   0xb   :  { %3519 = sst [smem:[#allocation28_spill]] %s3501_s15 }
   0xc   :  { %24 = dma.vmem_to_smem %s22_s20, 16, %s2930_s21, [#allocation3] }
   0xd   :  { %2892 = dma.done.wait [#allocation3], 16 }
   0xe   :  { %2893 = vsyncadd [#allocation3], 4294967280 }
   0xf   :  { %27 = sfence }
  0x10   :  { %28 = vsyncpa [#allocation6], 0 }
  0x11   :  { %30 = vsyncpa [#allocation6 + $0x1], 0  ;;  %s3020_s22 = smov 0   ;;  %s3022_s23 = smov 0  }
  0x12   :  { %s3024_s24 = smov 0   ;;  %s3026_s25 = smov 0  }
  0x13   :  { %s3028_s26 = smov 0   ;;  %s3030_s27 = smov 0  }
  0x14   :  { %s3032_s0 = smov 0   ;;  %s3034_s28 = smov 0  }
  0x15 LB: > { %3520 = sst [smem:[#allocation9_spill]] %s2904_s23  ;;  %s2179_s29 = sadd.s32 4294967295, %s2928_s28   ;;  %s2928_s28 = sphi %s3034_s28, %s36_s28   ;;  %s2924_s0 = sphi %s3032_s0, %s3561_s0   ;;  %s2920_s27 = sphi %s3030_s27, %s3560_s27   ;;  %s2916_s26 = sphi %s3028_s26, %s3559_s26   ;;  %s2912_s25 = sphi %s3026_s25, %s3558_s25   ;;  %s2908_s24 = sphi %s3024_s24, %s3557_s24   ;;  %s2904_s23 = sphi %s3022_s23, %s3556_s23   ;;  %s2900_s22 = sphi %s3020_s22, %s3555_s22  }
  0x16   : > { %3521 = sst [smem:[#allocation10_spill]] %s2908_s24  ;;  %s45_s30 = sadd.s32 1, %s2920_s27 }
  0x17   : > { %3522 = sst [smem:[#allocation11_spill]] %s2916_s26  ;;  %p46_p0 = scmp.ge.s32.totalorder %s45_s30, 2 }
  0x18   : > { %3523 = sst [smem:[#allocation12_spill]] %s2920_s27  ;;  %s48_s16 = sadd.s32 1, %s2924_s0 }
  0x19   : > { %3524 = sst [smem:[#allocation13_spill]] %s2924_s0  ;;  %s362_s17 = sadd.s32 1, %s2908_s24 }
  0x1a   : > { %3525 = sst [smem:[#allocation14_spill]] %s2928_s28  ;;  %p369_p1 = scmp.ne.s32.totalorder %s2908_s24, %s2904_s23 }
  0x1b   : > { %s3563_s30 = smov (%p46_p0, %s45_s30), 0  ;;  %s3565_s16 = smov (!%p46_p0, %s48_s16), %s2924_s0 }
  0x1c   : > { %3526 = sst [smem:[#allocation15_spill]] %s3563_s30  ;;  %s359_s18 = ssub.s32 %s2920_s27, %s3563_s30 }
  0x1d   : > { %p370_p2 = scmp.eq.s32.totalorder %s2928_s28, 0  ;;  %p50_p3 = scmp.ge.s32.totalorder %s3565_s16, 2 }
  0x1e   : > { %p360_p4 = scmp.eq.s32.totalorder %s359_s18, 0  ;;  %p375_p6 = scmp.ne.s32.totalorder %s2904_s23, %s2900_s22 }
  0x1f   : > { %p3070_p5 = por %p370_p2, %p369_p1  ;;  %s3567_s16 = smov (%p50_p3, %s3565_s16), 0 }
  0x20   : > { %3528 = sst [smem:[#allocation16_spill]] %s3567_s16  ;;  %p376_p7 = scmp.eq.s32.totalorder %s2179_s29, 0 }
  0x21   : > { %s3078_s20 = scalar_select %p360_p4, %s2908_s24, %s362_s17  }
  0x22   : > { %p2702_p8 = scmp.lt.s32.totalorder %s2928_s28, 4  ;;  %s529_s21 = sand.u32 1, %s2908_s24  }
  0x23   : > { %3529 = sst [smem:[#allocation17_spill]] %s3078_s20  ;;  %p3082_p9 = por %p376_p7, %p375_p6 }
  0x24   : > { %s2183_s18 = sshll.u32 %s529_s21, 8  ;;  %s2595_s0 = sshll.u32 %s2920_s27, 8 }
  0x25   : > { %s3531_s13 = sld [smem:[#allocation26_spill]]  ;;  %s533_s11 = scalar_lea.vmem [#allocation5], %s2183_s18 }
  0x26   : > { %s541_s10 = sshll.u32 %s533_s11, 4  ;;  %p2699_p10 = pnand %p2702_p8, %p3070_p5  ;;  %s542_s10 = int_to_ptr.vmem [resolvable:$true] %s541_s10 }
  0x27   : > { %p2186_p11 = scmp.ge.s32.totalorder %s2928_s28, 1  ;;  %p555_p12 = scmp.lt.s32.totalorder %s2928_s28, 5 }
  0x28   : > { %s530_s29 = scalar_lea.sflag [#allocation6], %s529_s21  ;;  %s2931_s17 = smov 64  }
  0x29   : > { %s2932_s16 = smov 4   ;;  %p556_p13 = pnand %p2186_p11, %p555_p12 }
  0x2a   : > { %s561_s27 = sand.u32 (!%p556_p13), 1, %s2904_s23  }
  0x2b   : > { %s538_s12 = scalar_lea.hbm %s3531_s13, %s2595_s0  ;;  %559 = sbr.rel (%p556_p13) target bundleno = 1990 (0x7c6), region = 76 }
  0x2c   : > { %s539_s22 = sshll.u32 %s538_s12, 4  ;;  %s2187_s1 = sshll.u32 (!%p556_p13), %s561_s27, 8  ;;  %s540_s22 = int_to_ptr.hbm [resolvable:$true] %s539_s22 }
  0x2d   : > { %2701 = dma.hbm_to_vmem [thread:$0]  (!%p2699_p10), %s540_s22, 4096, %s542_s10, %s530_s29, %s2931_s17, %s2931_s17, %s2932_s16  }
  0x2e   : > { %s562_s14 = scalar_lea.sflag (!%p556_p13), [#allocation6], %s561_s27  ;;  %s3095_s12 = scalar_lea.vmem (!%p556_p13), [#allocation5], %s2187_s1 }
  0x30   : > { %2895 = dma.done.wait (%p3082_p9), %s562_s14, 4096  }
  0x31   : > { %2897 = vsyncadd (%p3082_p9), %s562_s14, 4294963200  ;;  %p654_p0 = scmp.lt.s32.totalorder %s2916_s26, 1  ;;  %p658_p1 = scmp.lt.s32.totalorder %s2912_s25, 1 }
  0x32   : > { %s3533_s2 = sld [smem:[#allocation19_spill]]  ;;  %p2195_p2 = scmp.ne.s32.totalorder %s2912_s25, 0 }
  0x33   : > { %s3104_s10 = scalar_select %p654_p0, %s2916_s26, 1 }
  0x34   : > { %s3107_s11 = scalar_select %p658_p1, %s2912_s25, 1 }
  0x35   : > { %s2188_s27 = sshll.u32 %s3104_s10, 3  ;;  %s3534_s5 = sld [smem:[#allocation20_spill]] }
  0x36   : > { %s2694_s20 = smul.u32 192, %s3107_s11  ;;  %s2596_s23 = sshll.u32 %s3107_s11, 6 }
  0x37   : > { %s2695_s24 = smul.u32 3, %s3107_s11  ;;  %s3535_s7 = sld [smem:[#allocation22_spill]] }
  0x38   : > { %s657_s18 = scalar_lea.vmem %s3533_s2, %s2188_s27  ;;  %s3536_s6 = sld [smem:[#allocation21_spill]] }
  0x39   : > { %s683_s26 = scalar_lea.vmem %s3495_s9, %s3107_s11  ;;  %s3537_s2 = sld [smem:[#allocation23_spill]] }
  0x3a   : > { %s2597_s30 = sshll.u32 %s3107_s11, 8  ;;  %s3538_s15 = sld [smem:[#allocation24_spill]] }
  0x3b   : > { %s3131_s0 = scalar_lea.vmem %s3534_s5, %s2694_s20  ;;  %s3540_s13 = sld [smem:[#allocation27_spill]] }
  0x3d   : > { %s3136_s27 = scalar_lea.vmem %s3535_s7, %s2596_s23  ;;  %s2194_s23 = sshll.u32 %s3107_s11, 2 }
  0x3e   : > { %s3141_s29 = scalar_lea.vmem %s3536_s6, %s2695_s24  ;;  %s3539_s6 = sld [smem:[#allocation25_spill]] }
  0x3f   : > { %s686_s5 = scalar_lea.vmem %s3537_s2, %s3107_s11 }
  0x40   : > { %s3160_s21 = scalar_lea.vmem %s3538_s15, %s2597_s30  ;;  %706 = sbr.rel (%p2195_p2) target bundleno = 71 (0x47), region = 84 }
  0x41   : > { %s698_s17 = scalar_lea.vmem %s3540_s13, %s3107_s11 }
  0x44   : > { %s3165_s1 = scalar_lea.vmem %s3539_s6, %s2194_s23 }
  0x45   : > { %v707_v0 = vld [vmem:[%s657_s18] sm:$0xff] }
  0x46   : > { %708 = vst [vmem:[#allocation2] sm:$0xff] %v707_v0 }
  0x47 PF: > { %v2933_v2 = vmov 128.0   ;;  %v2282_v3 = vld [vmem:[%s3131_s0 + $0xa8] sm:$0xf]  ;;  %v2620_v4 = vld [vmem:[%s3131_s0 + $0xb0] sm:$0xf0]  ;;  %s3541_s7 = scalar_lea.vmem %s3489_s3, %s3107_s11  ;;  %s3542_s18 = scalar_lea.vmem %s3490_s4, %s3107_s11  ;;  %vm975_vm4 = vcmask 261120  }
  0x48   : > { %2780 = vrcp.f32 %v2933_v2  ;;  %v2619_v5 = vld [vmem:[%s3131_s0 + $0xac] sm:$0xf]  ;;  %v2283_v6 = vor.u32 %v2620_v4, %v2282_v3  ;;  %v2284_v7 = vld [vmem:[%s3131_s0 + $0xb4] sm:$0xf0]  ;;  %v2290_v8 = vld [vmem:[%s3131_s0 + $0xb0] sm:$0xf]  ;;  %s3544_s24 = scalar_lea.vmem %s3494_s8, %s3107_s11 }
  0x49   : > { %v2621_v9 = vld [vmem:[%s3131_s0 + $0xb8] sm:$0xf0]  ;;  %v2287_v10 = vor.u32 %v2619_v5, %v2284_v7  ;;  %v2270_v22 = vld [vmem:[%s3131_s0 + $0x90] sm:$0xf]  ;;  %v2616_v24 = vld [vmem:[%s3131_s0 + $0x94] sm:$0xf] }
  0x4a   : > { %v2291_v11 = vor.u32 %v2621_v9, %v2290_v8  ;;  %916 = vmatpush.bf16.msra.mxu0 %v2283_v6  ;;  %v2617_v23 = vld [vmem:[%s3131_s0 + $0x98] sm:$0xf0]  ;;  %v2272_v26 = vld [vmem:[%s3131_s0 + $0x9c] sm:$0xf0]  ;;  %v2278_v27 = vld [vmem:[%s3131_s0 + $0x98] sm:$0xf] }
  0x4b   : > { %929 = vmatpush.bf16.msra.mxu1 %v2287_v10  ;;  %v2271_v25 = vor.u32 %v2617_v23, %v2270_v22  ;;  %v2618_v28 = vld [vmem:[%s3131_s0 + $0xa0] sm:$0xf0]  ;;  %v2275_v29 = vor.u32 %v2616_v24, %v2272_v26  ;;  %v2258_v31 = vld [vmem:[%s3131_s0 + $0x78] sm:$0xf]  ;;  %v2613_v33 = vld [vmem:[%s3131_s0 + $0x7c] sm:$0xf] }
  0x4c   : > { %942 = vmatpush.bf16.msra.mxu2 %v2291_v11  ;;  %v2279_v30 = vor.u32 %v2618_v28, %v2278_v27  ;;  %v2614_v32 = vld [vmem:[%s3131_s0 + $0x80] sm:$0xf0]  ;;  %v2260_v35 = vld [vmem:[%s3131_s0 + $0x84] sm:$0xf0]  ;;  %v2266_v36 = vld [vmem:[%s3131_s0 + $0x80] sm:$0xf] }
  0x4d   : > { %v3172_v1 = vld [vmem:[#allocation2] sm:$0xff]  ;;  %v2259_v34 = vor.u32 %v2614_v32, %v2258_v31  ;;  %v2615_v37 = vld [vmem:[%s3131_s0 + $0x88] sm:$0xf0]  ;;  %v2263_v38 = vor.u32 %v2613_v33, %v2260_v35  ;;  %v2248_v44 = vld [vmem:[%s3131_s0 + $0x6c] sm:$0xf0]  ;;  %s2935_s28 = smov 96  }
  0x4e   : > { %712 = vadd.xlane.f32.xlu0 %v3172_v1  ;;  %v2781_v12 = vpop.eup %2780  ;;  %917 = vmatpush.bf16.msra.mxu0 %v2271_v25  ;;  %v2267_v39 = vor.u32 %v2615_v37, %v2266_v36  ;;  %v2246_v40 = vld [vmem:[%s3131_s0 + $0x60] sm:$0xf]  ;;  %v2611_v41 = vld [vmem:[%s3131_s0 + $0x68] sm:$0xf0]  ;;  %v2610_v42 = vld [vmem:[%s3131_s0 + $0x64] sm:$0xf] }
  0x4f   : > { %v715_v13 = vmul.f32 128.0, %v2781_v12  ;;  %vm719_vm0 = vweird.f32 %v2781_v12  ;;  %930 = vmatpush.bf16.msra.mxu1 %v2275_v29  ;;  %v2247_v43 = vor.u32 %v2611_v41, %v2246_v40  ;;  %v2254_v45 = vld [vmem:[%s3131_s0 + $0x68] sm:$0xf]  ;;  %v2612_v46 = vld [vmem:[%s3131_s0 + $0x70] sm:$0xf0]  ;;  %v2251_v47 = vor.u32 %v2610_v42, %v2248_v44  ;;  %s3543_s23 = sld [smem:[#allocation18_spill]] }
  0x50   : > { %943 = vmatpush.bf16.msra.mxu2 %v2279_v30  ;;  %v2255_v48 = vor.u32 %v2612_v46, %v2254_v45  ;;  %v2234_v49 = vld [vmem:[%s3131_s0 + $0x48] sm:$0xf]  ;;  %v2608_v50 = vld [vmem:[%s3131_s0 + $0x50] sm:$0xf0]  ;;  %v2607_v51 = vld [vmem:[%s3131_s0 + $0x4c] sm:$0xf] }
  0x51   : > { %v716_v14 = vsub.f32 1.0, %v715_v13  ;;  %v2235_v52 = vor.u32 %v2608_v50, %v2234_v49  ;;  %v2236_v53 = vld [vmem:[%s3131_s0 + $0x54] sm:$0xf0]  ;;  %v2242_v54 = vld [vmem:[%s3131_s0 + $0x50] sm:$0xf]  ;;  %vm1113_vm5 = vcmask 1043456  }
  0x52   : > { %918 = vmatpush.bf16.msra.mxu0 %v2259_v34  ;;  %v2609_v55 = vld [vmem:[%s3131_s0 + $0x58] sm:$0xf0]  ;;  %v2239_v56 = vor.u32 %v2607_v51, %v2236_v53  ;;  %v2222_v58 = vld [vmem:[%s3131_s0 + $0x30] sm:$0xf]  ;;  %v2604_v60 = vld [vmem:[%s3131_s0 + $0x34] sm:$0xf] }
  0x53   : > { %v717_v15 = vmul.f32 %v2781_v12, %v716_v14  ;;  %931 = vmatpush.bf16.msra.mxu1 %v2263_v38  ;;  %v2243_v57 = vor.u32 %v2609_v55, %v2242_v54  ;;  %v2605_v59 = vld [vmem:[%s3131_s0 + $0x38] sm:$0xf0]  ;;  %v2224_v62 = vld [vmem:[%s3131_s0 + $0x3c] sm:$0xf0]  ;;  %v2230_v63 = vld [vmem:[%s3131_s0 + $0x38] sm:$0xf] }
  0x54   : > { %944 = vmatpush.bf16.msra.mxu2 %v2267_v39  ;;  %v2223_v61 = vor.u32 %v2605_v59, %v2222_v58  ;;  %v2606_v0 = vld [vmem:[%s3131_s0 + $0x40] sm:$0xf0]  ;;  %v2227_v2 = vor.u32 %v2604_v60, %v2224_v62  ;;  %v2210_v4 = vld [vmem:[%s3131_s0 + $0x18] sm:$0xf]  ;;  %v2601_v6 = vld [vmem:[%s3131_s0 + $0x1c] sm:$0xf] }
  0x55   : > { %v718_v16 = vadd.f32 %v2781_v12, %v717_v15  ;;  %v2231_v3 = vor.u32 %v2606_v0, %v2230_v63  ;;  %v2602_v5 = vld [vmem:[%s3131_s0 + $0x20] sm:$0xf0]  ;;  %v2212_v8 = vld [vmem:[%s3131_s0 + $0x24] sm:$0xf0]  ;;  %v2218_v9 = vld [vmem:[%s3131_s0 + $0x20] sm:$0xf] }
  0x56   : > { %919 = vmatpush.bf16.msra.mxu0 %v2247_v43  ;;  %v2211_v7 = vor.u32 %v2602_v5, %v2210_v4  ;;  %v2603_v10 = vld [vmem:[%s3131_s0 + $0x28] sm:$0xf0]  ;;  %v2215_v11 = vor.u32 %v2601_v6, %v2212_v8  ;;  %v2198_v13 = vld [vmem:[%s3131_s0] sm:$0xf]  ;;  %v2598_v15 = vld [vmem:[%s3131_s0 + $0x4] sm:$0xf] }
  0x57   : > { %v3181_v17 = vsel %vm719_vm0, %v2781_v12, %v718_v16  ;;  %932 = vmatpush.bf16.msra.mxu1 %v2251_v47  ;;  %v2219_v12 = vor.u32 %v2603_v10, %v2218_v9  ;;  %v2599_v14 = vld [vmem:[%s3131_s0 + $0x8] sm:$0xf0]  ;;  %v2774_v33 = vld [vmem:[%s3541_s7] ss:$0 sm:$0xff]  ;;  %vm1061_vm6 = vcmask 64512   ;;  %vm1200_vm7 = vcmask 523264  }
  0x58   : > { %945 = vmatpush.bf16.msra.mxu2 %v2255_v48  ;;  %v2199_v16 = vor.u32 %v2599_v14, %v2198_v13  ;;  %v2775_v36 = vld [vmem:[%s3542_s18] ss:$0 sm:$0xff]  ;;  %vm1202_vm8 = vcmask 785408   ;;  %p2592_p3 = scmp.ne.s32.totalorder %s2912_s25, 1 }
  0x59   : > { %v780_v40 = vld [vmem:[%s3141_s29] sm:$0x7]  ;;  %s2936_s29 = smov 64   ;;  %s3552_s15 = sld [smem:[#allocation28_spill]] (!%p2592_p3) }
  0x5a   : > { %920 = vmatpush.bf16.msra.mxu0 %v2235_v52  ;;  %v782_v41 = vperm.slane %v780_v40, 0  ;;  %v783_v42 = vperm.slane %v780_v40, 1  ;;  %v1056_v4 = vld [vmem:[%s3543_s23] sm:$0xff] }
  0x5b   : > { %933 = vmatpush.bf16.msra.mxu1 %v2239_v56 }
  0x5c   : > { %946 = vmatpush.bf16.msra.mxu2 %v2243_v57 }
  0x5e   : > { %921 = vmatpush.bf16.msra.mxu0 %v2223_v61 }
  0x5f   : > { %934 = vmatpush.bf16.msra.mxu1 %v2227_v2  ;;  %s3553_s16 = scalar_lea.vmem (!%p2592_p3), %s3552_s15, %s3104_s10 }
  0x60   : > { %947 = vmatpush.bf16.msra.mxu2 %v2231_v3 }
  0x62   : > { %922 = vmatpush.bf16.msra.mxu0 %v2211_v7 }
  0x63   : > { %935 = vmatpush.bf16.msra.mxu1 %v2215_v11 }
  0x64   : > { %948 = vmatpush.bf16.msra.mxu2 %v2219_v12 }
  0x66   : > { %923 = vmatpush.bf16.msra.mxu0 %v2199_v16 }
  0xc1   : > { %v713_v18 = vpop.xlane.xlu0 %712 }
  0xc2   : > { %v721_v19 = vmul.f32 %v3181_v17, %v713_v18  ;;  %v2200_v18 = vld [vmem:[%s3131_s0 + $0xc] sm:$0xf0] }
  0xc3   : > { %v2203_v22 = vor.u32 %v2598_v15, %v2200_v18 }
  0xc4   : > { %v3185_v20 = vsub.f32 %v3172_v1, %v721_v19  ;;  %v2206_v19 = vld [vmem:[%s3131_s0 + $0x8] sm:$0xf] }
  0xc5   : > { %936 = vmatpush.bf16.msra.mxu1 %v2203_v22 }
  0xc6   : > { %v723_v21 = vmul.f32 %v3185_v20, %v3185_v20 }
  0xc8   : > { %724 = vadd.xlane.f32.xlu0 %v723_v21  ;;  %v2600_v21 = vld [vmem:[%s3131_s0 + $0x10] sm:$0xf0]  ;;  %s2934_s0 = smov 32  }
  0xc9   : > { %v2207_v23 = vor.u32 %v2600_v21, %v2206_v19 }
  0xcb   : > { %949 = vmatpush.bf16.msra.mxu2 %v2207_v23 }
 0x13b   : > { %v725_v24 = vpop.xlane.xlu0 %724 }
 0x13c   : > { %v726_v25 = vmul.f32 %v725_v24, %v3181_v17 }
 0x13e   : > { %v727_v26 = vadd.f32 1e-05, %v726_v25 }
 0x140   : > { %2782 = vrsqrt.f32 %v727_v26  ;;  %vm734_vm2 = vweird.f32 %v727_v26 }
 0x146   : > { %v2783_v27 = vpop.eup %2782 }
 0x147   : > { %v729_v28 = vmul.f32 %v2783_v27, %v727_v26  ;;  %vm735_vm1 = vweird.f32 %v2783_v27 }
 0x148   : > { %vm736_vm3 = vmor %vm734_vm2, %vm735_vm1 }
 0x149   : > { %v730_v29 = vmul.f32 %v2783_v27, %v729_v28 }
 0x14b   : > { %v731_v30 = vmul.f32 0.5, %v730_v29 }
 0x14d   : > { %v732_v31 = vsub.f32 1.5, %v731_v30 }
 0x14f   : > { %v733_v32 = vmul.f32 %v2783_v27, %v732_v31 }
 0x151   : > { %v737_v34 = vsel %vm736_vm3, %v2783_v27, %v733_v32 }
 0x152   : > { %v738_v35 = vmul.f32 %v737_v34, %v3185_v20  ;;  %v784_v20 = vperm.slane %v780_v40, 2 }
 0x154   : > { %v742_v37 = vmul.f32 %v2774_v33, %v738_v35 }
 0x156   : > { %v746_v38 = vadd.f32 %v2775_v36, %v742_v37 }
 0x158   : > { %v747_v39 = vpack.c.bf16 %v746_v38, %v746_v38 }
 0x15a   : > { %924 = vmatmul.bf16.vlgmr.msra.gmra.mxu0 %v747_v39  ;;  %937 = vmatmul.bf16.vlgmr.msra.gmra.mxu1 %v747_v39 }
 0x15b   : > { %950 = vmatmul.bf16.vlgmr.msra.gmra.mxu2 %v747_v39 }
 0x1d7   : > { %v925_v43 = vpop.f32.mrf.mxu0  ;;  %v938_v44 = vpop.f32.mrf.mxu1 }
 0x1d8   : > { %v926_v45 = vadd.f32 %v925_v43, %v782_v41  ;;  %v939_v46 = vadd.f32 %v938_v44, %v783_v42 }
 0x1da   : > { %v955_v47 = vpack.c.bf16 %v939_v46, %v926_v45 }
 0x1dc   : > { %962 = vrot.lane.b32.xlu2 %v955_v47, %s2934_s0  ;;  %958 = vrot.lane.b32.xlu1 %v955_v47, %s2935_s28  ;;  %v964_v48 = vrot.slane %v955_v47, 4 }
 0x1de   : > { %v951_v49 = vpop.f32.mrf.mxu2  ;;  %v980_v50 = vsel %vm975_vm4, %v964_v48, 0 }
 0x1df   : > { %v952_v51 = vadd.f32 %v951_v49, %v784_v20  ;;  %v927_v52 = vpop.f32.mrf.mxu0  ;;  %v940_v53 = vpop.f32.mrf.mxu1  ;;  %989 = vmatpush.bf16.xpose.msra.mxu3 %v980_v50 }
 0x1e1   : > { %v3247_v54 = vpack.c.bf16 %v952_v51, %v952_v51 }
 0x1e3   : > { %v1115_v55 = vsel %vm1113_vm5, %v3247_v54, 0 }
 0x1e4   : > { %1124 = vmatpush.bf16.msrb.mxu2 %v1115_v55  ;;  %960 = vrot.lane.b32.xlu1 %v955_v47, %s2936_s29 }
 0x1e6   : > { %v953_v56 = vpop.f32.mrf.mxu2  ;;  %2292 = vmatmul.msk.bf16.vlgmr.msra.gmra.mxu3 %vm975_vm4, %v955_v47 }
 0x236   : > { %v963_v57 = vpop.permute.xlu2 %962 }
 0x237   : > { %v967_v58 = vrot.slane %v963_v57, 4 }
 0x239   : > { %v1037_v59 = vsel %vm975_vm4, %v967_v58, 0 }
 0x23a   : > { %1046 = vmatpush.bf16.xpose.msrb.mxu0 %v1037_v59 }
 0x241   : > { %2295 = vmatmul.msk.bf16.vlgmr.msrb.gmra.mxu0 %vm975_vm4, %v963_v57 }
 0x24e   : > { %v959_v60 = vpop.permute.xlu1 %958 }
 0x24f   : > { %v965_v61 = vrot.slane %v959_v60, 4 }
 0x251   : > { %v999_v62 = vsel %vm975_vm4, %v965_v61, 0 }
 0x252   : > { %1008 = vmatpush.bf16.xpose.msrb.mxu3 %v999_v62 }
 0x256   : > { %v961_v63 = vpop.permute.xlu1 %960 }
 0x257   : > { %v966_v0 = vrot.slane %v961_v63, 4 }
 0x259   : > { %2293 = vmatmul.msk.bf16.vlgmr.msrb.gmra.mxu3 %vm975_vm4, %v959_v60  ;;  %v1018_v2 = vsel %vm975_vm4, %v966_v0, 0 }
 0x25a   : > { %1027 = vmatpush.bf16.xpose.msra.mxu3 %v1018_v2 }
 0x269   : > { %v991_v3 = vpop.f32.mrf.mxu3  ;;  %2294 = vmatmul.msk.bf16.vlgmr.msra.gmra.mxu3 %vm975_vm4, %v961_v63 }
 0x26a   : > { %v1052_v5 = vmul.f32 0.17677669, %v991_v3 }
 0x26c   : > { %v1057_v6 = vadd.f32 %v1056_v4, %v1052_v5 }
 0x26e   : > { %v1062_v7 = vsel %vm1061_vm6, %v1057_v6, -inf }
 0x26f   : > { %1063 = vmax.xlane.f32.xlu2 %v1062_v7 }
 0x271   : > { %v993_v8 = vpop.f32.mrf.mxu3 }
 0x287   : > { %969 = vrot.lane.b32.xlu2 %v3247_v54, %s2935_s28 }
 0x2be   : > { %v1048_v9 = vpop.f32.mrf.mxu0 }
 0x2bf   : > { %v1055_v14 = vmul.f32 0.17677669, %v1048_v9 }
 0x2c1   : > { %v1060_v22 = vadd.f32 %v1056_v4, %v1055_v14  ;;  %v2627_v14 = vld [vmem:[%s3136_s27 + $0x28] sm:$0xff] }
 0x2c3   : > { %v1071_v23 = vsel %vm1061_vm6, %v1060_v22, -inf }
 0x2c6   : > { %v1050_v10 = vpop.f32.mrf.mxu0 }
 0x2dc   : > { %v1010_v11 = vpop.f32.mrf.mxu3 }
 0x2dd   : > { %v1053_v12 = vmul.f32 0.17677669, %v1010_v11 }
 0x2df   : > { %v1058_v13 = vadd.f32 %v1056_v4, %v1053_v12  ;;  %v2629_v12 = vld [vmem:[%s3136_s27 + $0x38] sm:$0xff] }
 0x2e0   : > { %1273 = vmatpush.bf16.msrb.mxu1 %v2629_v12 }
 0x2e1   : > { %v1065_v15 = vsel %vm1061_vm6, %v1058_v13, -inf }
 0x2e2   : > { %v1064_v16 = vpop.xlane.xlu2 %1063  ;;  %1066 = vmax.xlane.f32.xlu0 %v1065_v15  ;;  %v2626_v15 = vld [vmem:[%s3136_s27 + $0x20] sm:$0xff] }
 0x2e3   : > { %v1074_v18 = vsub.f32 %v1057_v6, %v1064_v16  ;;  %v2625_v16 = vld [vmem:[%s3136_s27 + $0x18] sm:$0xff] }
 0x2e4   : > { %v1012_v19 = vpop.f32.mrf.mxu3 }
 0x2e5   : > { %v1078_v21 = vmul.f32 1.442695, %v1074_v18  ;;  %v2624_v18 = vld [vmem:[%s3136_s27 + $0x10] sm:$0xff]  ;;  %v2623_v19 = vld [vmem:[%s3136_s27 + $0x8] sm:$0xff] }
 0x2e7   : > { %2784 = vpow2.f32 %v1078_v21  ;;  %v2622_v21 = vld [vmem:[%s3136_s27] sm:$0xff] }
 0x2ea   : > { %v970_v24 = vpop.permute.xlu2 %969  ;;  %1072 = vmax.xlane.f32.xlu0 %v1071_v23 }
 0x2eb   : > { %v1134_v25 = vsel %vm1113_vm5, %v970_v24, 0 }
 0x2ec   : > { %v1029_v26 = vpop.f32.mrf.mxu3  ;;  %1143 = vmatpush.bf16.msra.mxu2 %v1134_v25 }
 0x2ed   : > { %v1054_v27 = vmul.f32 0.17677669, %v1029_v26  ;;  %v2785_v28 = vpop.eup %2784 }
 0x2ee   : > { %v1086_v30 = vsel %vm1061_vm6, %v2785_v28, 0.0 }
 0x2ef   : > { %v1059_v29 = vadd.f32 %v1056_v4, %v1054_v27 }
 0x2f1   : > { %v1068_v31 = vsel %vm1061_vm6, %v1059_v29, -inf }
 0x2f2   : > { %1087 = vadd.xlane.f32.xlu0 %v1086_v30  ;;  %1069 = vmax.xlane.f32.xlu1 %v1068_v31 }
 0x2f4   : > { %v1031_v32 = vpop.f32.mrf.mxu3 }
 0x30b   : > { %971 = vrot.lane.b32.xlu1 %v3247_v54, %s2936_s29 }
 0x355   : > { %v1067_v33 = vpop.xlane.xlu0 %1066 }
 0x356   : > { %v1075_v36 = vsub.f32 %v1058_v13, %v1067_v33  ;;  %v2628_v13 = vld [vmem:[%s3136_s27 + $0x30] sm:$0xff] }
 0x357   : > { %1274 = vmatpush.bf16.msrb.mxu1 %v2628_v13  ;;  %v2400_v13 = vld [vmem:[%s3160_s21 + $0x90] sm:$0xf0] }
 0x358   : > { %v1080_v38 = vmul.f32 1.442695, %v1075_v36  ;;  %v2658_v36 = vld [vmem:[%s3160_s21 + $0xe4] sm:$0xf] }
 0x35b   : > { %1275 = vmatpush.bf16.msrb.mxu1 %v2627_v14  ;;  %v2406_v14 = vld [vmem:[%s3160_s21 + $0x88] sm:$0xf] }
 0x35d   : > { %v1073_v34 = vpop.xlane.xlu0 %1072 }
 0x35e   : > { %v1077_v35 = vsub.f32 %v1060_v22, %v1073_v34  ;;  %v2446_v34 = vld [vmem:[%s3160_s21 + $0xe0] sm:$0xf] }
 0x35f   : > { %1276 = vmatpush.bf16.msrb.mxu1 %v2626_v15  ;;  %v2649_v15 = vld [vmem:[%s3160_s21 + $0x94] sm:$0xf0] }
 0x360   : > { %v1084_v37 = vmul.f32 1.442695, %v1077_v35  ;;  %v2660_v35 = vld [vmem:[%s3160_s21 + $0xec] sm:$0xf0] }
 0x362   : > { %2786 = vpow2.f32 %v1084_v37  ;;  %v2447_v37 = vor.u32 %v2660_v35, %v2446_v34  ;;  %v2392_v34 = vld [vmem:[%s3160_s21 + $0x78] sm:$0xf0] }
 0x363   : > { %1277 = vmatpush.bf16.msrb.mxu1 %v2625_v16 }
 0x365   : > { %v1088_v39 = vpop.xlane.xlu0 %1087  ;;  %v1070_v40 = vpop.xlane.xlu1 %1069 }
 0x366   : > { %2788 = vrcp.f32 %v1088_v39  ;;  %v1076_v42 = vsub.f32 %v1059_v29, %v1070_v40  ;;  %v2776_v29 = vld [vmem:[%s3544_s24] ss:$0 sm:$0xff]  ;;  %v2454_v39 = vld [vmem:[%s3160_s21 + $0xe8] sm:$0xf]  ;;  %v2661_v40 = vld [vmem:[%s3160_s21 + $0xf4] sm:$0xf0] }
 0x367   : > { %2790 = vpow2.f32 %v1080_v38  ;;  %1278 = vmatpush.bf16.msrb.mxu1 %v2624_v18  ;;  %v2448_v38 = vld [vmem:[%s3160_s21 + $0xf0] sm:$0xf0]  ;;  %v2407_v18 = vor.u32 %v2649_v15, %v2406_v14 }
 0x368   : > { %v2787_v41 = vpop.eup %2786  ;;  %v1082_v45 = vmul.f32 1.442695, %v1076_v42  ;;  %v2455_v42 = vor.u32 %v2661_v40, %v2454_v39  ;;  %v2368_v40 = vld [vmem:[%s3160_s21 + $0x50] sm:$0xf0] }
 0x369   : > { %v1095_v43 = vsel %vm1061_vm6, %v2787_v41, 0.0 }
 0x36a   : > { %1096 = vadd.xlane.f32.xlu0 %v1095_v43  ;;  %2792 = vpow2.f32 %v1082_v45  ;;  %v2659_v43 = vld [vmem:[%s3160_s21 + $0xec] sm:$0xf] }
 0x36b   : > { %1279 = vmatpush.bf16.msrb.mxu1 %v2623_v19  ;;  %v2647_v19 = vld [vmem:[%s3160_s21 + $0x8c] sm:$0xf] }
 0x36c   : > { %v2789_v44 = vpop.eup %2788 }
 0x36d   : > { %v1102_v46 = vmul.f32 %v2789_v44, %v2785_v28  ;;  %v2791_v47 = vpop.eup %2790  ;;  %v2456_v44 = vld [vmem:[%s3160_s21 + $0xf8] sm:$0xf0] }
 0x36e   : > { %v1089_v48 = vsel %vm1061_vm6, %v2791_v47, 0.0 }
 0x36f   : > { %v1106_v20 = vpack.c.bf16 %v1102_v46, %v1102_v46  ;;  %1280 = vmatpush.bf16.msrb.mxu1 %v2622_v21  ;;  %v2408_v21 = vld [vmem:[%s3160_s21 + $0x98] sm:$0xf0] }
 0x370   : > { %v2793_v49 = vpop.eup %2792 }
 0x371   : > { %2296 = vmatmul.msk.bf16.vlgmr.msrb.gmra.mxu2 %vm1061_vm6, %v1106_v20  ;;  %v1092_v50 = vsel %vm1061_vm6, %v2793_v49, 0.0 }
 0x372   : > { %1090 = vadd.xlane.f32.xlu0 %v1089_v48  ;;  %1520 = vmatpush.bf16.msrb.mxu2 %v2447_v37  ;;  %v2430_v48 = vld [vmem:[%s3160_s21 + $0xc0] sm:$0xf]  ;;  %v2640_v37 = vld [vmem:[%s3160_s21 + $0x4c] sm:$0xf0] }
 0x37a   : > { %1093 = vadd.xlane.f32.xlu0 %v1092_v50  ;;  %v2654_v50 = vld [vmem:[%s3160_s21 + $0xc4] sm:$0xf] }
 0x37d   : > { %v972_v51 = vpop.permute.xlu1 %971 }
 0x37e   : > { %v1153_v52 = vsel %vm1113_vm5, %v972_v51, 0 }
 0x37f   : > { %1162 = vmatpush.bf16.msrb.mxu3 %v1153_v52  ;;  %v2432_v52 = vld [vmem:[%s3160_s21 + $0xd0] sm:$0xf0] }
 0x38e   : > { %973 = vrot.lane.b32.xlu0 %v3247_v54, %s2934_s0 }
 0x3dd   : > { %v1097_v53 = vpop.xlane.xlu0 %1096 }
 0x3e5   : > { %v1091_v55 = vpop.xlane.xlu0 %1090 }
 0x3e6   : > { %2794 = vrcp.f32 %v1091_v55  ;;  %v2657_v55 = vld [vmem:[%s3160_s21 + $0xd4] sm:$0xf0] }
 0x3ec   : > { %v2795_v56 = vpop.eup %2794 }
 0x3ed   : > { %v1103_v57 = vmul.f32 %v2795_v56, %v2791_v47  ;;  %v1094_v58 = vpop.xlane.xlu0 %1093  ;;  %v2435_v56 = vor.u32 %v2654_v50, %v2432_v52  ;;  %v2358_v52 = vld [vmem:[%s3160_s21 + $0x28] sm:$0xf] }
 0x3ee   : > { %2796 = vrcp.f32 %v1094_v58  ;;  %v2655_v58 = vld [vmem:[%s3160_s21 + $0xcc] sm:$0xf] }
 0x3ef   : > { %v1107_v59 = vpack.c.bf16 %v1103_v57, %v1103_v57  ;;  %2798 = vrcp.f32 %v1097_v53  ;;  %v2438_v53 = vld [vmem:[%s3160_s21 + $0xc8] sm:$0xf] }
 0x3f0   : > { %v2439_v57 = vor.u32 %v2657_v55, %v2438_v53  ;;  %v2637_v53 = vld [vmem:[%s3160_s21 + $0x34] sm:$0xf0] }
 0x3f1   : > { %2297 = vmatmul.msk.bf16.vlgmr.msra.gmra.mxu2 %vm1061_vm6, %v1107_v59  ;;  %v2440_v59 = vld [vmem:[%s3160_s21 + $0xd8] sm:$0xf0] }
 0x3f4   : > { %v2797_v60 = vpop.eup %2796  ;;  %v1126_v61 = vpop.f32.mrf.mxu2 }
 0x3f5   : > { %v1104_v62 = vmul.f32 %v2797_v60, %v2793_v49  ;;  %v2799_v0 = vpop.eup %2798  ;;  %v2656_v49 = vld [vmem:[%s3160_s21 + $0xcc] sm:$0xf0]  ;;  %v2443_v60 = vor.u32 %v2655_v58, %v2440_v59  ;;  %v2360_v58 = vld [vmem:[%s3160_s21 + $0x38] sm:$0xf0]  ;;  %v2334_v59 = vld [vmem:[%s3160_s21] sm:$0xf] }
 0x3f6   : > { %v1105_v54 = vmul.f32 %v2799_v0, %v2787_v41  ;;  %v2451_v41 = vor.u32 %v2658_v36, %v2448_v38  ;;  %v2431_v51 = vor.u32 %v2656_v49, %v2430_v48  ;;  %v2366_v36 = vld [vmem:[%s3160_s21 + $0x40] sm:$0xf]  ;;  %v2638_v38 = vld [vmem:[%s3160_s21 + $0x44] sm:$0xf]  ;;  %v2636_v48 = vld [vmem:[%s3160_s21 + $0x2c] sm:$0xf0] }
 0x3f7   : > { %v1108_v63 = vpack.c.bf16 %v1104_v62, %v1104_v62  ;;  %v2652_v62 = vld [vmem:[%s3160_s21 + $0xac] sm:$0xf0]  ;;  %v2367_v39 = vor.u32 %v2640_v37, %v2366_v36  ;;  %v2634_v49 = vld [vmem:[%s3160_s21 + $0x24] sm:$0xf]  ;;  %v2690_v36 = vld [vmem:[%s3095_s12 + $0xe0] sm:$0xff] }
 0x3f8   : > { %v1109_v5 = vpack.c.bf16 %v1105_v54, %v1105_v54  ;;  %1533 = vmatpush.bf16.msra.mxu3 %v2451_v41  ;;  %1521 = vmatpush.bf16.msrb.mxu2 %v2431_v51  ;;  %v2422_v54 = vld [vmem:[%s3160_s21 + $0xa8] sm:$0xf]  ;;  %v2352_v51 = vld [vmem:[%s3160_s21 + $0x30] sm:$0xf0] }
 0x3f9   : > { %2298 = vmatmul.msk.bf16.vlgmr.msrb.gmra.mxu3 %vm1061_vm6, %v1108_v63  ;;  %v2650_v63 = vld [vmem:[%s3160_s21 + $0xa4] sm:$0xf]  ;;  %v2374_v41 = vld [vmem:[%s3160_s21 + $0x48] sm:$0xf]  ;;  %v2355_v55 = vor.u32 %v2634_v49, %v2352_v51  ;;  %v2667_v37 = vld [vmem:[%s3095_s12 + $0x28] sm:$0xff] }
 0x3fa   : > { %v2679_v49 = vld [vmem:[%s3095_s12 + $0x88] sm:$0xff]  ;;  %v2664_v51 = vld [vmem:[%s3095_s12 + $0x10] sm:$0xff] }
 0x3fc   : > { %v1128_v2 = vpop.f32.mrf.mxu2  ;;  %1534 = vmatpush.bf16.msra.mxu3 %v2435_v56  ;;  %v2359_v56 = vor.u32 %v2637_v53, %v2358_v52  ;;  %v2672_v52 = vld [vmem:[%s3095_s12 + $0x50] sm:$0xff] }
 0x3fd   : > { %v2416_v2 = vld [vmem:[%s3160_s21 + $0xb0] sm:$0xf0] }
 0x400   : > { %v974_v3 = vpop.permute.xlu0 %973 }
 0x401   : > { %v1172_v4 = vsel %vm1113_vm5, %v974_v3, 0  ;;  %v2653_v3 = vld [vmem:[%s3160_s21 + $0xb4] sm:$0xf0] }
 0x402   : > { %1181 = vmatpush.bf16.msra.mxu0 %v1172_v4  ;;  %v2419_v4 = vor.u32 %v2650_v63, %v2416_v2  ;;  %v2336_v63 = vld [vmem:[%s3160_s21 + $0x10] sm:$0xf0] }
 0x404   : > { %1535 = vmatpush.bf16.msra.mxu3 %v2419_v4  ;;  %v2631_v4 = vld [vmem:[%s3160_s21 + $0xc] sm:$0xf] }
 0x405   : > { %2299 = vmatmul.msk.bf16.vlgmr.msra.gmra.mxu0 %vm1061_vm6, %v1109_v5  ;;  %v2423_v5 = vor.u32 %v2653_v3, %v2422_v54  ;;  %v2342_v54 = vld [vmem:[%s3160_s21 + $0x8] sm:$0xf]  ;;  %v2633_v3 = vld [vmem:[%s3160_s21 + $0x14] sm:$0xf0] }
 0x406   : > { %1546 = vmatpush.bf16.msrb.mxu0 %v2455_v42  ;;  %v2641_v42 = vld [vmem:[%s3160_s21 + $0x54] sm:$0xf0] }
 0x40a   : > { %1547 = vmatpush.bf16.msrb.mxu0 %v2439_v57  ;;  %v2635_v57 = vld [vmem:[%s3160_s21 + $0x2c] sm:$0xf] }
 0x40e   : > { %1548 = vmatpush.bf16.msrb.mxu0 %v2423_v5  ;;  %v2343_v5 = vor.u32 %v2633_v3, %v2342_v54 }
 0x412   : > { %1549 = vmatpush.bf16.msrb.mxu0 %v2407_v18  ;;  %v2777_v18 = vld [vmem:[%s683_s26] ss:$0 sm:$0xff] }
 0x474   : > { %v1145_v6 = vpop.f32.mrf.mxu2 }
 0x475   : > { %1188 = vrot.lane.b32.xlu2 %v1145_v6, %s2934_s0  ;;  %v2651_v6 = vld [vmem:[%s3160_s21 + $0xac] sm:$0xf] }
 0x47c   : > { %v1147_v7 = vpop.f32.mrf.mxu2  ;;  %v1164_v8 = vpop.f32.mrf.mxu3 }
 0x47d   : > { %1192 = vrot.lane.b32.xlu2 %v1164_v8, %s2936_s29  ;;  %v2424_v7 = vld [vmem:[%s3160_s21 + $0xb8] sm:$0xf0] }
 0x47e   : > { %v2427_v8 = vor.u32 %v2651_v6, %v2424_v7  ;;  %v2344_v6 = vld [vmem:[%s3160_s21 + $0x18] sm:$0xf0] }
 0x47f   : > { %v2347_v7 = vor.u32 %v2631_v4, %v2344_v6 }
 0x482   : > { %v1183_v9 = vpop.f32.mrf.mxu0 }
 0x483   : > { %1196 = vrot.lane.b32.xlu1 %v1183_v9, %s2935_s28  ;;  %v2398_v9 = vld [vmem:[%s3160_s21 + $0x80] sm:$0xf] }
 0x484   : > { %v1166_v10 = vpop.f32.mrf.mxu3 }
 0x485   : > { %v2648_v10 = vld [vmem:[%s3160_s21 + $0x8c] sm:$0xf0] }
 0x486   : > { %v2399_v12 = vor.u32 %v2648_v10, %v2398_v9 }
 0x48a   : > { %v1185_v11 = vpop.f32.mrf.mxu0 }
 0x48b   : > { %v2646_v11 = vld [vmem:[%s3160_s21 + $0x84] sm:$0xf] }
 0x48c   : > { %v2403_v16 = vor.u32 %v2646_v11, %v2400_v13 }
 0x48e   : > { %1536 = vmatpush.bf16.msra.mxu3 %v2403_v16 }
 0x4cf   : > { %v1189_v22 = vpop.permute.xlu2 %1188 }
 0x4d0   : > { %v1199_v24 = vsel %vm975_vm4, %v1126_v61, %v1189_v22  ;;  %v2414_v61 = vld [vmem:[%s3160_s21 + $0xa0] sm:$0xf]  ;;  %v2411_v22 = vor.u32 %v2647_v19, %v2408_v21 }
 0x4d1   : > { %v2415_v0 = vor.u32 %v2652_v62, %v2414_v61  ;;  %v2632_v61 = vld [vmem:[%s3160_s21 + $0xc] sm:$0xf0]  ;;  %v2630_v62 = vld [vmem:[%s3160_s21 + $0x4] sm:$0xf]  ;;  %v2778_v21 = vld [vmem:[%s686_s5] ss:$0 sm:$0xff] }
 0x4d2   : > { %v2339_v2 = vor.u32 %v2630_v62, %v2336_v63 }
 0x4d3   : > { %1522 = vmatpush.bf16.msrb.mxu2 %v2415_v0  ;;  %v2335_v0 = vor.u32 %v2632_v61, %v2334_v59  ;;  %v2686_v59 = vld [vmem:[%s3095_s12 + $0xc0] sm:$0xff] }
 0x4d7   : > { %v1193_v23 = vpop.permute.xlu2 %1192  ;;  %1523 = vmatpush.bf16.msrb.mxu2 %v2399_v12 }
 0x4d8   : > { %v1201_v25 = vsel %vm1200_vm7, %v1199_v24, %v1193_v23  ;;  %v2382_v23 = vld [vmem:[%s3160_s21 + $0x60] sm:$0xf]  ;;  %v2644_v24 = vld [vmem:[%s3160_s21 + $0x6c] sm:$0xf0] }
 0x4f5   : > { %v1197_v26 = vpop.permute.xlu1 %1196 }
 0x4f6   : > { %v1203_v27 = vsel %vm1202_vm8, %v1201_v25, %v1197_v26  ;;  %v2642_v25 = vld [vmem:[%s3160_s21 + $0x64] sm:$0xf]  ;;  %v2383_v26 = vor.u32 %v2644_v24, %v2382_v23 }
 0x4f7   : > { %v1204_v28 = vpack.c.bf16 %v1203_v27, %v1203_v27  ;;  %v2384_v27 = vld [vmem:[%s3160_s21 + $0x70] sm:$0xf0] }
 0x4f8   : > { %1524 = vmatpush.bf16.msrb.mxu2 %v2383_v26  ;;  %v2693_v26 = vld [vmem:[%s3095_s12 + $0xf8] sm:$0xff] }
 0x4f9   : > { %1281 = vmatmul.bf16.vlgmr.msrb.gmra.mxu1 %v1204_v28  ;;  %v2390_v28 = vld [vmem:[%s3160_s21 + $0x68] sm:$0xf] }
 0x4fc   : > { %1525 = vmatpush.bf16.msrb.mxu2 %v2367_v39  ;;  %v2681_v39 = vld [vmem:[%s3095_s12 + $0x98] sm:$0xff] }
 0x576   : > { %v1282_v30 = vpop.f32.mrf.mxu1 }
 0x577   : > { %v1283_v31 = vadd.f32 %v2776_v29, %v1282_v30  ;;  %v2645_v29 = vld [vmem:[%s3160_s21 + $0x74] sm:$0xf0]  ;;  %v2387_v30 = vor.u32 %v2642_v25, %v2384_v27  ;;  %v2685_v25 = vld [vmem:[%s3095_s12 + $0xb8] sm:$0xff] }
 0x578   : > { %v2692_v27 = vld [vmem:[%s3095_s12 + $0xf0] sm:$0xff] }
 0x579   : > { %v3301_v32 = vadd.f32 %v1283_v31, %v3172_v1  ;;  %v2459_v1 = vor.u32 %v2659_v43, %v2456_v44  ;;  %v2391_v31 = vor.u32 %v2645_v29, %v2390_v28  ;;  %1537 = vmatpush.bf16.msra.mxu3 %v2387_v30  ;;  %v2371_v43 = vor.u32 %v2638_v38, %v2368_v40  ;;  %v2669_v28 = vld [vmem:[%s3095_s12 + $0x38] sm:$0xff]  ;;  %v2683_v30 = vld [vmem:[%s3095_s12 + $0xa8] sm:$0xff] }
 0x57a   : > { %v2375_v44 = vor.u32 %v2641_v42, %v2374_v41  ;;  %v2677_v29 = vld [vmem:[%s3095_s12 + $0x78] sm:$0xff]  ;;  %v2675_v38 = vld [vmem:[%s3095_s12 + $0x68] sm:$0xff]  ;;  %v2666_v41 = vld [vmem:[%s3095_s12 + $0x20] sm:$0xff] }
 0x57b   : > { %1289 = vadd.xlane.f32.xlu0 %v3301_v32  ;;  %1559 = vmatpush.bf16.msra.mxu1 %v2459_v1  ;;  %v2639_v1 = vld [vmem:[%s3160_s21 + $0x4c] sm:$0xf]  ;;  %v2689_v40 = vld [vmem:[%s3095_s12 + $0xd8] sm:$0xff] }
 0x57c   : > { %1550 = vmatpush.bf16.msrb.mxu0 %v2391_v31  ;;  %v2691_v31 = vld [vmem:[%s3095_s12 + $0xe8] sm:$0xff]  ;;  %v2674_v42 = vld [vmem:[%s3095_s12 + $0x60] sm:$0xff] }
 0x57d   : > { %1538 = vmatpush.bf16.msra.mxu3 %v2371_v43  ;;  %v2680_v43 = vld [vmem:[%s3095_s12 + $0x90] sm:$0xff] }
 0x57e   : > { %v1284_v33 = vpop.f32.mrf.mxu1 }
 0x57f   : > { %1560 = vmatpush.bf16.msra.mxu1 %v2443_v60  ;;  %v2643_v33 = vld [vmem:[%s3160_s21 + $0x6c] sm:$0xf]  ;;  %v2363_v60 = vor.u32 %v2635_v57, %v2360_v58 }
 0x580   : > { %v2395_v35 = vor.u32 %v2643_v33, %v2392_v34  ;;  %1551 = vmatpush.bf16.msrb.mxu0 %v2375_v44  ;;  %v2668_v33 = vld [vmem:[%s3095_s12 + $0x30] sm:$0xff]  ;;  %v2678_v58 = vld [vmem:[%s3095_s12 + $0x80] sm:$0xff] }
 0x581   : > { %1539 = vmatpush.bf16.msra.mxu3 %v2355_v55  ;;  %v2676_v34 = vld [vmem:[%s3095_s12 + $0x70] sm:$0xff] }
 0x582   : > { %v2688_v44 = vld [vmem:[%s3095_s12 + $0xd0] sm:$0xff] }
 0x583   : > { %1561 = vmatpush.bf16.msra.mxu1 %v2427_v8 }
 0x584   : > { %1552 = vmatpush.bf16.msrb.mxu0 %v2359_v56 }
 0x585   : > { %1540 = vmatpush.bf16.msra.mxu3 %v2339_v2  ;;  %v2671_v2 = vld [vmem:[%s3095_s12 + $0x48] sm:$0xff] }
 0x587   : > { %1562 = vmatpush.bf16.msra.mxu1 %v2411_v22 }
 0x588   : > { %1553 = vmatpush.bf16.msrb.mxu0 %v2343_v5 }
 0x589   : > { %1933 = vmatpush.bf16.msrb.mxu3 %v2677_v29 }
 0x58b   : > { %1563 = vmatpush.bf16.msra.mxu1 %v2395_v35  ;;  %v2682_v35 = vld [vmem:[%s3095_s12 + $0xa0] sm:$0xff] }
 0x58c   : > { %1946 = vmatpush.bf16.msra.mxu0 %v2685_v25 }
 0x58d   : > { %1934 = vmatpush.bf16.msrb.mxu3 %v2676_v34 }
 0x591   : > { %1935 = vmatpush.bf16.msrb.mxu3 %v2675_v38 }
 0x595   : > { %1936 = vmatpush.bf16.msrb.mxu3 %v2674_v42 }
 0x5ee   : > { %v1290_v45 = vpop.xlane.xlu0 %1289 }
 0x5ef   : > { %v1291_v46 = vmul.f32 %v1290_v45, %v3181_v17  ;;  %v2376_v45 = vld [vmem:[%s3160_s21 + $0x58] sm:$0xf0] }
 0x5f1   : > { %v3314_v47 = vsub.f32 %v3301_v32, %v1291_v46  ;;  %v2379_v46 = vor.u32 %v2639_v1, %v2376_v45  ;;  %v1350_v1 = vld [vmem:[%s3165_s1] sm:$0xf]  ;;  %s3551_s1 = sld [smem:[#allocation11_spill]] (!%p2592_p3) }
 0x5f2   : > { %v2665_v45 = vld [vmem:[%s3095_s12 + $0x18] sm:$0xff]  ;;  %v1353_v61 = vperm.slane %v1350_v1, 1 }
 0x5f3   : > { %v1293_v20 = vmul.f32 %v3314_v47, %v3314_v47  ;;  %1564 = vmatpush.bf16.msra.mxu1 %v2379_v46  ;;  %v2673_v46 = vld [vmem:[%s3095_s12 + $0x58] sm:$0xff] }
 0x5f4   : > { %1937 = vmatpush.bf16.msrb.mxu3 %v2673_v46 }
 0x5f5   : > { %1294 = vadd.xlane.f32.xlu2 %v1293_v20  ;;  %v2350_v20 = vld [vmem:[%s3160_s21 + $0x20] sm:$0xf] }
 0x5f6   : > { %v2351_v50 = vor.u32 %v2636_v48, %v2350_v20  ;;  %v1354_v20 = vperm.slane %v1350_v1, 2  ;;  %v1355_v48 = vperm.slane %v1350_v1, 3 }
 0x5f7   : > { %1565 = vmatpush.bf16.msra.mxu1 %v2363_v60  ;;  %v1352_v60 = vperm.slane %v1350_v1, 0  ;;  %s1978_s6 = sld [smem:[#allocation4 + %s3551_s1]] (!%p2592_p3) }
 0x5f8   : > { %1526 = vmatpush.bf16.msrb.mxu2 %v2351_v50  ;;  %v2687_v50 = vld [vmem:[%s3095_s12 + $0xc8] sm:$0xff]  ;;  %1938 = vmatpush.bf16.msrb.mxu3 %v2672_v52 }
 0x5fb   : > { %1566 = vmatpush.bf16.msra.mxu1 %v2347_v7 }
 0x5fc   : > { %1527 = vmatpush.bf16.msrb.mxu2 %v2335_v0  ;;  %v2663_v0 = vld [vmem:[%s3095_s12 + $0x8] sm:$0xff]  ;;  %1939 = vmatpush.bf16.msrb.mxu3 %v2671_v2 }
 0x5fd   : > { %s1979_s11 = scalar_lea.vmem (!%p2592_p3), [#allocation2], %s1978_s6 }
 0x5ff   : > { %1959 = vmatpush.bf16.msrb.mxu1 %v2693_v26 }
 0x600   : > { %1920 = vmatpush.bf16.msra.mxu2 %v2669_v28 }
 0x603   : > { %1960 = vmatpush.bf16.msrb.mxu1 %v2692_v27 }
 0x604   : > { %1921 = vmatpush.bf16.msra.mxu2 %v2668_v33 }
 0x607   : > { %1961 = vmatpush.bf16.msrb.mxu1 %v2691_v31 }
 0x608   : > { %1922 = vmatpush.bf16.msra.mxu2 %v2667_v37 }
 0x60b   : > { %1962 = vmatpush.bf16.msrb.mxu1 %v2690_v36 }
 0x60c   : > { %1923 = vmatpush.bf16.msra.mxu2 %v2666_v41 }
 0x60f   : > { %1963 = vmatpush.bf16.msrb.mxu1 %v2689_v40 }
 0x610   : > { %1924 = vmatpush.bf16.msra.mxu2 %v2665_v45 }
 0x613   : > { %1964 = vmatpush.bf16.msrb.mxu1 %v2688_v44 }
 0x614   : > { %1925 = vmatpush.bf16.msra.mxu2 %v2664_v51 }
 0x617   : > { %1965 = vmatpush.bf16.msrb.mxu1 %v2687_v50 }
 0x618   : > { %1926 = vmatpush.bf16.msra.mxu2 %v2663_v0 }
 0x61b   : > { %1966 = vmatpush.bf16.msrb.mxu1 %v2686_v59 }
 0x668   : > { %v1295_v8 = vpop.xlane.xlu2 %1294 }
 0x669   : > { %v1296_v9 = vmul.f32 %v1295_v8, %v3181_v17  ;;  %v2662_v8 = vld [vmem:[%s3095_s12] sm:$0xff] }
 0x66a   : > { %1927 = vmatpush.bf16.msra.mxu2 %v2662_v8 }
 0x66b   : > { %v1297_v10 = vadd.f32 1e-05, %v1296_v9  ;;  %v2670_v9 = vld [vmem:[%s3095_s12 + $0x40] sm:$0xff] }
 0x66c   : > { %1940 = vmatpush.bf16.msrb.mxu3 %v2670_v9 }
 0x66d   : > { %2800 = vrsqrt.f32 %v1297_v10  ;;  %vm1304_vm10 = vweird.f32 %v1297_v10 }
 0x673   : > { %v2801_v11 = vpop.eup %2800 }
 0x674   : > { %v1299_v12 = vmul.f32 %v2801_v11, %v1297_v10  ;;  %vm1305_vm9 = vweird.f32 %v2801_v11 }
 0x675   : > { %vm1306_vm11 = vmor %vm1304_vm10, %vm1305_vm9 }
 0x676   : > { %v1300_v13 = vmul.f32 %v2801_v11, %v1299_v12 }
 0x678   : > { %v1301_v14 = vmul.f32 0.5, %v1300_v13 }
 0x67a   : > { %v1302_v15 = vsub.f32 1.5, %v1301_v14 }
 0x67c   : > { %v1303_v16 = vmul.f32 %v2801_v11, %v1302_v15 }
 0x67e   : > { %v1307_v17 = vsel %vm1306_vm11, %v2801_v11, %v1303_v16 }
 0x67f   : > { %v1308_v19 = vmul.f32 %v1307_v17, %v3314_v47  ;;  %v2684_v47 = vld [vmem:[%s3095_s12 + $0xb0] sm:$0xff] }
 0x680   : > { %1947 = vmatpush.bf16.msra.mxu0 %v2684_v47 }
 0x681   : > { %v1312_v22 = vmul.f32 %v2777_v18, %v1308_v19 }
 0x683   : > { %v1316_v23 = vadd.f32 %v2778_v21, %v1312_v22 }
 0x684   : > { %1948 = vmatpush.bf16.msra.mxu0 %v2683_v30 }
 0x685   : > { %v1317_v24 = vpack.c.bf16 %v1316_v23, %v1316_v23 }
 0x687   : > { %1528 = vmatmul.bf16.vlgmr.msrb.gmra.mxu2 %v1317_v24  ;;  %1541 = vmatmul.bf16.vlgmr.msra.gmra.mxu3 %v1317_v24 }
 0x688   : > { %1554 = vmatmul.bf16.vlgmr.msrb.gmra.mxu0 %v1317_v24  ;;  %1567 = vmatmul.bf16.vlgmr.msra.gmra.mxu1 %v1317_v24 }
 0x689   : > { %1949 = vmatpush.bf16.msra.mxu0 %v2682_v35 }
 0x68d   : > { %1950 = vmatpush.bf16.msra.mxu0 %v2681_v39 }
 0x691   : > { %1951 = vmatpush.bf16.msra.mxu0 %v2680_v43 }
 0x695   : > { %1952 = vmatpush.bf16.msra.mxu0 %v2679_v49 }
 0x699   : > { %1953 = vmatpush.bf16.msra.mxu0 %v2678_v58 }
 0x705   : > { %v1555_v53 = vpop.f32.mrf.mxu0  ;;  %v1568_v55 = vpop.f32.mrf.mxu1 }
 0x706   : > { %v3413_v56 = vadd.f32 %v1555_v53, %v1354_v20  ;;  %v3415_v57 = vadd.f32 %v1568_v55, %v1355_v48 }
 0x708   : > { %v2462_v62 = vmul.f32 -1.702, %v3413_v56  ;;  %v2463_v63 = vmul.f32 -1.702, %v3415_v57 }
 0x70a   : > { %v1584_v54 = vmul.f32 1.442695, %v2462_v62  ;;  %v1586_v3 = vmul.f32 1.442695, %v2463_v63  ;;  %v1529_v4 = vpop.f32.mrf.mxu2  ;;  %v1542_v5 = vpop.f32.mrf.mxu3 }
 0x70b   : > { %v3423_v6 = vadd.f32 %v1529_v4, %v1352_v60  ;;  %v3425_v7 = vadd.f32 %v1542_v5, %v1353_v61 }
 0x70c   : > { %2802 = vpow2.f32 %v1584_v54 }
 0x70d   : > { %2804 = vpow2.f32 %v1586_v3  ;;  %v2460_v10 = vmul.f32 -1.702, %v3423_v6  ;;  %v2461_v11 = vmul.f32 -1.702, %v3425_v7  ;;  %v1557_v12 = vpop.f32.mrf.mxu0  ;;  %v1570_v13 = vpop.f32.mrf.mxu1 }
 0x70f   : > { %v1580_v14 = vmul.f32 1.442695, %v2460_v10  ;;  %v1582_v15 = vmul.f32 1.442695, %v2461_v11 }
 0x711   : > { %2806 = vpow2.f32 %v1580_v14 }
 0x712   : > { %v2803_v16 = vpop.eup %2802  ;;  %2808 = vpow2.f32 %v1582_v15  ;;  %v1531_v18 = vpop.f32.mrf.mxu2 }
 0x713   : > { %v1544_v17 = vpop.f32.mrf.mxu3  ;;  %v2805_v19 = vpop.eup %2804  ;;  %v1590_v21 = vadd.f32 1.0, %v2803_v16 }
 0x714   : > { %v1591_v22 = vadd.f32 1.0, %v2805_v19  ;;  %v2779_v17 = vld [vmem:[%s698_s17] ss:$0 sm:$0xff] }
 0x715   : > { %2810 = vrcp.f32 %v1590_v21  ;;  %v1631_v29 = vand.u32 2147483647, %v1590_v21  ;;  %v1633_v30 = vand.u32 2147483648, %v1590_v21  ;;  %vm1627_vm12 = vweird.f32 %v1590_v21 }
 0x716   : > { %2812 = vrcp.f32 %v1591_v22  ;;  %v1646_v34 = vand.u32 2147483647, %v1591_v22  ;;  %v1648_v35 = vand.u32 2147483648, %v1591_v22  ;;  %vm1642_vm15 = vweird.f32 %v1591_v22 }
 0x717   : > { %v2807_v23 = vpop.eup %2806  ;;  %vm3431_vm14 = vcmp.eq.f32.partialorder %v1631_v29, 8.507059e+37  ;;  %v1634_v41 = vor.u32 1.1754944e-38, %v1633_v30 }
 0x718   : > { %v2809_v24 = vpop.eup %2808  ;;  %v1588_v25 = vadd.f32 1.0, %v2807_v23  ;;  %vm3435_vm1 = vcmp.eq.f32.partialorder %v1646_v34, 8.507059e+37  ;;  %v1649_v45 = vor.u32 1.1754944e-38, %v1648_v35 }
 0x719   : > { %v1589_v26 = vadd.f32 1.0, %v2809_v24 }
 0x71a   : > { %2814 = vrcp.f32 %v1588_v25  ;;  %v1601_v49 = vand.u32 2147483647, %v1588_v25  ;;  %v1603_v50 = vand.u32 2147483648, %v1588_v25  ;;  %vm1597_vm6 = vweird.f32 %v1588_v25 }
 0x71b   : > { %v2811_v47 = vpop.eup %2810  ;;  %2816 = vrcp.f32 %v1589_v26  ;;  %v1616_v53 = vand.u32 2147483647, %v1589_v26  ;;  %v1618_v55 = vand.u32 2147483648, %v1589_v26  ;;  %vm1612_vm8 = vweird.f32 %v1589_v26 }
 0x71c   : > { %v2813_v27 = vpop.eup %2812  ;;  %v1623_v28 = vmul.f32 %v2811_v47, %v1590_v21  ;;  %vm1628_vm13 = vweird.f32 %v2811_v47  ;;  %v1604_v3 = vor.u32 1.1754944e-38, %v1603_v50  ;;  %vm1602_vm9 = vcmp.eq.f32.partialorder %v1601_v49, 8.507059e+37 }
 0x71d   : > { %v1638_v31 = vmul.f32 %v2813_v27, %v1591_v22  ;;  %vm1643_vm0 = vweird.f32 %v2813_v27  ;;  %vm1629_vm2 = vmor %vm1627_vm12, %vm1628_vm13  ;;  %v1619_v9 = vor.u32 1.1754944e-38, %v1618_v55  ;;  %vm1617_vm11 = vcmp.eq.f32.partialorder %v1616_v53, 8.507059e+37 }
 0x71e   : > { %v1624_v33 = vsub.f32 1.0, %v1623_v28  ;;  %vm1644_vm3 = vmor %vm1642_vm15, %vm1643_vm0 }
 0x71f   : > { %v1639_v36 = vsub.f32 1.0, %v1638_v31 }
 0x720   : > { %v2815_v37 = vpop.eup %2814  ;;  %v1625_v38 = vmul.f32 %v2811_v47, %v1624_v33 }
 0x721   : > { %v2817_v40 = vpop.eup %2816  ;;  %v1640_v42 = vmul.f32 %v2813_v27, %v1639_v36  ;;  %v1593_v43 = vmul.f32 %v2815_v37, %v1588_v25  ;;  %vm1598_vm4 = vweird.f32 %v2815_v37 }
 0x722   : > { %v1626_v44 = vadd.f32 %v2811_v47, %v1625_v38  ;;  %v1608_v46 = vmul.f32 %v2817_v40, %v1589_v26  ;;  %vm1613_vm5 = vweird.f32 %v2817_v40  ;;  %vm1599_vm7 = vmor %vm1597_vm6, %vm1598_vm4 }
 0x723   : > { %v1641_v20 = vadd.f32 %v2813_v27, %v1640_v42  ;;  %v1594_v48 = vsub.f32 1.0, %v1593_v43  ;;  %vm1614_vm10 = vmor %vm1612_vm8, %vm1613_vm5 }
 0x724   : > { %v1630_v51 = vsel %vm1629_vm2, %v2811_v47, %v1626_v44  ;;  %v1609_v52 = vsub.f32 1.0, %v1608_v46 }
 0x725   : > { %v1635_v58 = vsel %vm3431_vm14, %v1634_v41, %v1630_v51  ;;  %v1645_v59 = vsel %vm1644_vm3, %v2813_v27, %v1641_v20  ;;  %v1595_v60 = vmul.f32 %v2815_v37, %v1594_v48 }
 0x726   : > { %v1654_v61 = vmul.f32 %v1635_v58, %v3413_v56  ;;  %v1650_v62 = vsel %vm3435_vm1, %v1649_v45, %v1645_v59  ;;  %v1610_v63 = vmul.f32 %v2817_v40, %v1609_v52 }
 0x727   : > { %v1655_v0 = vmul.f32 %v1650_v62, %v3415_v57  ;;  %v1596_v2 = vadd.f32 %v2815_v37, %v1595_v60 }
 0x728   : > { %v1658_v54 = vpack.c.bf16 %v1654_v61, %v1654_v61  ;;  %v1611_v4 = vadd.f32 %v2817_v40, %v1610_v63 }
 0x729   : > { %v1659_v5 = vpack.c.bf16 %v1655_v0, %v1655_v0  ;;  %v1600_v8 = vsel %vm1599_vm7, %v2815_v37, %v1596_v2 }
 0x72a   : > { %v1605_v56 = vsel %vm1602_vm9, %v1604_v3, %v1600_v8  ;;  %v1615_v10 = vsel %vm1614_vm10, %v2817_v40, %v1611_v4  ;;  %1954 = vmatmul.bf16.vlgmr.msra.gmra.mxu0 %v1658_v54 }
 0x72b   : > { %v1652_v11 = vmul.f32 %v1605_v56, %v3423_v6  ;;  %v1620_v57 = vsel %vm1617_vm11, %v1619_v9, %v1615_v10  ;;  %1967 = vmatmul.bf16.vlgmr.msrb.gmra.mxu1 %v1659_v5 }
 0x72c   : > { %v1653_v12 = vmul.f32 %v1620_v57, %v3425_v7 }
 0x72d   : > { %v1656_v13 = vpack.c.bf16 %v1652_v11, %v1652_v11 }
 0x72e   : > { %v1657_v14 = vpack.c.bf16 %v1653_v12, %v1653_v12 }
 0x72f   : > { %1928 = vmatmul.bf16.vlgmr.msra.gmra.mxu2 %v1656_v13 }
 0x730   : > { %1941 = vmatmul.bf16.vlgmr.msrb.gmra.mxu3 %v1657_v14 }
 0x7a7   : > { %v1955_v15 = vpop.f32.mrf.mxu0 }
 0x7a8   : > { %v1968_v16 = vpop.f32.mrf.mxu1 }
 0x7af   : > { %v1957_v18 = vpop.f32.mrf.mxu0 }
 0x7b0   : > { %v1970_v19 = vpop.f32.mrf.mxu1 }
 0x7b2   : > { %v1929_v21 = vpop.f32.mrf.mxu2 }
 0x7b3   : > { %v1930_v22 = vadd.f32 %v2779_v17, %v1929_v21  ;;  %v1942_v6 = vpop.f32.mrf.mxu3 }
 0x7b5   : > { %v1943_v23 = vadd.f32 %v1942_v6, %v1930_v22 }
 0x7b7   : > { %v1956_v24 = vadd.f32 %v1955_v15, %v1943_v23 }
 0x7b9   : > { %v1969_v25 = vadd.f32 %v1968_v16, %v1956_v24  ;;  %1977 = sbr.rel (%p2592_p3) target bundleno = 1990 (0x7c6), region = 88 }
 0x7ba   : > { %v1931_v7 = vpop.f32.mrf.mxu2 }
 0x7bb   : > { %v1972_v26 = vadd.f32 %v1969_v25, %v3301_v32  ;;  %v1944_v47 = vpop.f32.mrf.mxu3 }
 0x7bd   : > { %1973 = vst [vmem:[#allocation2] sm:$0xff] %v1972_v26 }
 0x7c4   : > { %v1980_v27 = vld [vmem:[%s1979_s11] sm:$0x1] }
 0x7c5   : > { %1981 = vst [vmem:[%s3553_s16] sm:$0x1] %v1980_v27 }
 0x7c6 PF: > { %s3554_s18 = sld [smem:[#allocation14_spill]] }
 0x7c7   : > { %s3555_s22 = sld [smem:[#allocation9_spill]] }
 0x7c8   : > { %s3556_s23 = sld [smem:[#allocation10_spill]] }
 0x7c9   : > { %s3557_s24 = sld [smem:[#allocation17_spill]] }
 0x7ca   : > { %s3558_s25 = sld [smem:[#allocation12_spill]] }
 0x7cb   : > { %s3559_s26 = sld [smem:[#allocation13_spill]] }
 0x7cc   : > { %s36_s28 = sadd.s32 1, %s3554_s18   ;;  %s3560_s27 = sld [smem:[#allocation15_spill]] }
 0x7cd   : > { %p33_p4 = scmp.ge.s32.totalorder %s36_s28, 6   ;;  %s3561_s0 = sld [smem:[#allocation16_spill]] }
 0x7cf   :  { %35 = sbr.rel (!%p33_p4) target bundleno = 21 (0x15), region = 161 }
 0x7d4   :  { %1999 = vsyncpa [#allocation6], 1 }
 0x7d5   :  { %2001 = vsyncpa [#allocation6 + $0x1], 1 }

</bundles_post_ra>
